<compile_context>
chip_gen: v7x
topology: tpu7x:2x2x1
jax: 0.10.0
libtpu: 0.0.40
codegen_flags: <defaults>
</compile_context>

<pallas_src>
import functools

import numpy as np
import jax
import jax.numpy as jnp
from jax import lax
from jax.experimental import pallas as pl
from jax.experimental.pallas import tpu as pltpu


VIEW_DIS_DEG = [-30.0, 0.0, 30.0]
CENTER_VIEW = VIEW_DIS_DEG.index(0.0)          # = 1
NV = len(VIEW_DIS_DEG)                         # = 3

LAT_DIM = 32                                   # latent / attention dim
HEAD_STRIDE = 128                              # each head chunk starts on a 128-lane boundary
HEAD_COLS = HEAD_STRIDE * (2 + NV)             # [latent | pd_rot_v0 | pd_rot_v1 | pd_rot_v2 | peak_int]


# --------------------------------------------------------------------------
# Rotation matrix (numpy, same role as the reference helper)
# --------------------------------------------------------------------------
def rotation_matrix(azimuth, elevation):
    # Convention: azimuth rotates about the up (z) axis, elevation about x.
    # The module only ever calls it with elevation=0.
    ca, sa = np.cos(azimuth), np.sin(azimuth)
    ce, se = np.cos(elevation), np.sin(elevation)
    rz = np.array([[ca, -sa, 0.0], [sa, ca, 0.0], [0.0, 0.0, 1.0]])
    rx = np.array([[1.0, 0.0, 0.0], [0.0, ce, -se], [0.0, se, ce]])
    return (rz @ rx).astype(np.float32)


# --------------------------------------------------------------------------
# Parameters (deterministic synthetic init)
# --------------------------------------------------------------------------
def init_params(key, in_ch=4):
    ks = jax.random.split(key, 14)
    w = lambda k, shape: 0.1 * jax.random.normal(k, shape, dtype=jnp.float32)
    return {
        "conv1_w": w(ks[0], (8, in_ch, 3, 3)),  "conv1_b": w(ks[1], (8,)),
        "conv2_w": w(ks[2], (16, 8, 3, 3)),     "conv2_b": w(ks[3], (16,)),
        "shared1_w": w(ks[4], (256, 128)),      "shared1_b": w(ks[5], (128,)),
        "shared2_w": w(ks[6], (128, 64)),       "shared2_b": w(ks[7], (64,)),
        "latent_w": w(ks[8], (64, 32)),         "latent_b": w(ks[9], (32,)),
        "peak_dir_w": w(ks[10], (64, 3)),       "peak_dir_b": w(ks[11], (3,)),
        "peak_int_w": w(ks[12], (64, 3)),       "peak_int_b": w(ks[13], (3,)),
    }


# --------------------------------------------------------------------------
# One-time parameter preparation (host-side numpy):
#   * densify each 3x3/stride-2/pad-1 conv into a per-sample dense matrix
#   * fold the per-view inverse rotation into the peak_dir head weights
#   * concatenate the heads into one lane-aligned matrix and fold the final
#     (linear) shared_mlp layer into it
# --------------------------------------------------------------------------
def _densify_conv(w, b, H, W, stride, pad, input_nhwc):
    """Conv2d (PyTorch (Cout,Cin,kh,kw) weights) as a dense matrix:
       per-sample flat input (NCHW or NHWC) -> per-sample flat NHWC output."""
    Cout, Cin, kh, kw = w.shape
    Ho = (H + 2 * pad - kh) // stride + 1
    Wo = (W + 2 * pad - kw) // stride + 1
    M = np.zeros((Cin * H * W, Ho * Wo * Cout), np.float32)
    for ho in range(Ho):
        for wo in range(Wo):
            q0 = (ho * Wo + wo) * Cout
            for i in range(kh):
                hi = stride * ho - pad + i
                if not (0 <= hi < H):
                    continue
                for j in range(kw):
                    wi = stride * wo - pad + j
                    if not (0 <= wi < W):
                        continue
                    for ci in range(Cin):
                        if input_nhwc:
                            pidx = (hi * W + wi) * Cin + ci
                        else:
                            pidx = ci * H * W + hi * W + wi
                        M[pidx, q0:q0 + Cout] += w[:, ci, i, j]
    be = np.tile(b.astype(np.float32), Ho * Wo)          # bias per NHWC flat index
    return M, be, Ho, Wo, Cout


def prepare_params(params, H=16, W=16):
    p = {k: np.asarray(v, np.float32) for k, v in params.items()}

    m1, b1, H1, W1, C1 = _densify_conv(p["conv1_w"], p["conv1_b"], H, W,
                                       stride=2, pad=1, input_nhwc=False)
    m2, b2, H2, W2, C2 = _densify_conv(p["conv2_w"], p["conv2_b"], H1, W1,
                                       stride=2, pad=1, input_nhwc=True)
    assert H2 * W2 * C2 == p["shared1_w"].shape[0]

    # Concatenated, lane-aligned head matrix acting on dv (64-dim), with the
    # per-view inverse rotation folded into peak_dir.
    dv_dim = p["shared2_w"].shape[1]                      # 64
    wh = np.zeros((dv_dim, HEAD_COLS), np.float32)
    bh = np.zeros((HEAD_COLS,), np.float32)
    wh[:, :LAT_DIM] = p["latent_w"]
    bh[:LAT_DIM] = p["latent_b"]
    for v, deg in enumerate(VIEW_DIS_DEG):
        inv_r = rotation_matrix(azimuth=-np.radians(deg), elevation=0.0)   # (3, 3)
        c0 = HEAD_STRIDE * (1 + v)
        # row-vector form: (inv_R @ p^T)^T == p @ inv_R^T  -> fold inv_R^T on the right
        wh[:, c0:c0 + 3] = p["peak_dir_w"] @ inv_r.T
        bh[c0:c0 + 3] = p["peak_dir_b"] @ inv_r.T
    c0 = HEAD_STRIDE * (1 + NV)
    wh[:, c0:c0 + 3] = p["peak_int_w"]
    bh[c0:c0 + 3] = p["peak_int_b"]

    # Fold the last (linear, no activation) shared_mlp layer into the heads:
    #   heads = (h @ W4 + b4) @ Wh + bh == h @ (W4 @ Wh) + (b4 @ Wh + bh)
    wh_f = p["shared2_w"] @ wh                            # (128, 640)
    bh_f = p["shared2_b"] @ wh + bh                       # (640,)

    return {
        "m1": jnp.asarray(m1), "b1": jnp.asarray(b1[None, :]),
        "m2": jnp.asarray(m2), "b2": jnp.asarray(b2[None, :]),
        "w3": jnp.asarray(p["shared1_w"]), "b3": jnp.asarray(p["shared1_b"][None, :]),
        "wh": jnp.asarray(wh_f), "bh": jnp.asarray(bh_f[None, :]),
    }


# --------------------------------------------------------------------------
# The single fused Pallas kernel
# --------------------------------------------------------------------------
def _fused_forward_kernel(x_ref, m1_ref, b1_ref, m2_ref, b2_ref,
                          w3_ref, b3_ref, wh_ref, bh_ref,
                          lat_out_ref, peak_out_ref,
                          *, tb, nv, lat_dim, center_view, head_stride):
    f32 = jnp.float32
    relu = lambda v: jnp.maximum(v, 0.0)

    # ---- encoder (densified convs) + shared MLP + fused heads (all MXU) ----
    x = x_ref[...]                                                       # (tb*nv, Cin*H*W)
    h = relu(jnp.dot(x, m1_ref[...], preferred_element_type=f32) + b1_ref[...])   # conv1+ReLU
    h = relu(jnp.dot(h, m2_ref[...], preferred_element_type=f32) + b2_ref[...])   # conv2+ReLU
    h = relu(jnp.dot(h, w3_ref[...], preferred_element_type=f32) + b3_ref[...])   # shared_mlp[0]
    heads = jnp.dot(h, wh_ref[...], preferred_element_type=f32) + bh_ref[...]     # shared_mlp[1] + heads

    inv_sqrt_dim = 1.0 / float(np.sqrt(lat_dim))

    # ---- per-batch attention + peak aggregation (tiny, statically unrolled)
    lat_rows = []
    peak_rows = []
    for b in range(tb):
        r0 = b * nv
        lat_b = heads[r0:r0 + nv, :lat_dim]                              # (nv, L) keys/values
        q = heads[r0 + center_view:r0 + center_view + 1, :lat_dim]       # (1, L) center-view query

        # scaled dot-product attention over the nv views
        s = jnp.sum(q * lat_b, axis=-1, keepdims=True) * inv_sqrt_dim    # (nv, 1)
        s = s - jnp.max(s, axis=0, keepdims=True)
        e = jnp.exp(s)
        attn = e / jnp.sum(e, axis=0, keepdims=True)                     # (nv, 1)
        lat_rows.append(jnp.sum(attn * lat_b, axis=0, keepdims=True))    # (1, L)

        # peak direction: per-view (inverse rotation already folded into the
        # head weights), normalise per view, mean over views, re-normalise.
        pd_sum = None
        for v in range(nv):
            c0 = head_stride * (1 + v)
            pv = heads[r0 + v:r0 + v + 1, c0:c0 + 3]                     # (1, 3)
            pv = pv * lax.rsqrt(jnp.sum(pv * pv, axis=-1, keepdims=True))
            pd_sum = pv if pd_sum is None else pd_sum + pv
        pd_mean = pd_sum * (1.0 / nv)
        pd_avg = pd_mean * lax.rsqrt(jnp.sum(pd_mean * pd_mean, axis=-1, keepdims=True))

        # peak intensity: mean over views
        c0 = head_stride * (1 + nv)
        pi_mean = jnp.mean(heads[r0:r0 + nv, c0:c0 + 3], axis=0, keepdims=True)

        peak_rows.append(jnp.concatenate([pd_avg, pi_mean], axis=-1))    # (1, 6)

    # single full-ref store per output (no per-row masked stores)
    lat_out_ref[...] = jnp.concatenate(lat_rows, axis=0)
    peak_out_ref[...] = jnp.concatenate(peak_rows, axis=0)


def avg_multi_view_forward(prepared, x):
    """x: (B, N_view, C, H, W) -> (peak_vector (B, 6), latent_vector (B, 1, 32))."""
    B, Nv, C, H, W = x.shape
    assert Nv == NV
    in_flat = C * H * W
    assert in_flat == prepared["m1"].shape[0]

    # Row layout: (b, view)-major flatten of NCHW per view -- matches the
    # densified conv1 matrix row indexing.  Pure reshape, no data movement.
    x_flat = x.reshape(B * Nv, in_flat)

    def resident(arr):
        nd = arr.ndim
        return pl.BlockSpec(arr.shape, lambda t, _nd=nd: (0,) * _nd)

    kernel = functools.partial(
        _fused_forward_kernel,
        tb=B, nv=Nv, lat_dim=LAT_DIM, center_view=CENTER_VIEW, head_stride=HEAD_STRIDE)

    # Single grid step: at these shapes the whole batch (B*Nv rows) plus all
    # weights (~2.9 MB f32) fit comfortably in VMEM on v5e/v6e/v7x.  For large
    # B, tile the leading grid axis over batch blocks (keep tb*Nv a multiple
    # of 8) and the "parallel" semantics below shards it across TensorCores.
    lat_out, peak_out = pl.pallas_call(
        kernel,
        out_shape=(jax.ShapeDtypeStruct((B, LAT_DIM), jnp.float32),
                   jax.ShapeDtypeStruct((B, 6), jnp.float32)),
        grid=(1,),
        in_specs=[pl.BlockSpec((B * Nv, in_flat), lambda t: (t, 0)),
                  resident(prepared["m1"]), resident(prepared["b1"]),
                  resident(prepared["m2"]), resident(prepared["b2"]),
                  resident(prepared["w3"]), resident(prepared["b3"]),
                  resident(prepared["wh"]), resident(prepared["bh"])],
        out_specs=(pl.BlockSpec((B, LAT_DIM), lambda t: (t, 0)),
                   pl.BlockSpec((B, 6), lambda t: (t, 0))),
        compiler_params=pltpu.CompilerParams(dimension_semantics=("parallel",)),
    )(x_flat, prepared["m1"], prepared["b1"], prepared["m2"], prepared["b2"],
      prepared["w3"], prepared["b3"], prepared["wh"], prepared["bh"])

    return peak_out, lat_out[:, None, :]


# --------------------------------------------------------------------------
# Pure-JAX reference (in-script sanity check of the fused kernel)
# --------------------------------------------------------------------------
def _reference_forward(params, x):
    B, Nv, C, H, W = x.shape
    xf = x.reshape(B * Nv, C, H, W)

    def conv(h, w, b):
        out = lax.conv_general_dilated(
            h, w, window_strides=(2, 2), padding=((1, 1), (1, 1)),
            dimension_numbers=("NCHW", "OIHW", "NCHW"))
        return jax.nn.relu(out + b[None, :, None, None])

    h = conv(xf, params["conv1_w"], params["conv1_b"])
    h = conv(h, params["conv2_w"], params["conv2_b"])
    feat = jnp.transpose(h, (0, 2, 3, 1)).reshape(B * Nv, -1)            # permute + flatten(1)
    dv = jax.nn.relu(feat @ params["shared1_w"] + params["shared1_b"])
    dv = dv @ params["shared2_w"] + params["shared2_b"]

    lat = (dv @ params["latent_w"] + params["latent_b"]).reshape(B, Nv, -1)
    q = lat[:, CENTER_VIEW:CENTER_VIEW + 1]
    s = jnp.einsum("bql,bkl->bqk", q, lat) / np.sqrt(lat.shape[-1])
    attn = jax.nn.softmax(s, axis=-1)
    ctx = jnp.einsum("bqk,bkl->bql", attn, lat)

    pd = (dv @ params["peak_dir_w"] + params["peak_dir_b"]).reshape(B, Nv, 3)
    inv_rots = jnp.asarray(np.stack(
        [rotation_matrix(-np.radians(d), 0.0) for d in VIEW_DIS_DEG]))
    pd = jnp.einsum("nji,bni->bnj", inv_rots, pd)
    pd = pd / jnp.linalg.norm(pd, axis=-1, keepdims=True)
    pdm = pd.mean(axis=1)
    pdm = pdm / jnp.linalg.norm(pdm, axis=-1, keepdims=True)
    pim = (dv @ params["peak_int_w"] + params["peak_int_b"]).reshape(B, Nv, 3).mean(axis=1)
    return jnp.concatenate([pdm, pim], axis=-1), ctx


if __name__ == "__main__":
    key = jax.random.PRNGKey(0)
    pkey, xkey = jax.random.split(key)
    params = init_params(pkey, in_ch=4)
    prepared = prepare_params(params, H=16, W=16)

    # B=2, N_view=3, C=4, H=W=16
    x = jax.random.normal(xkey, (2, 3, 4, 16, 16), dtype=jnp.float32)

    fwd = jax.jit(avg_multi_view_forward)
    peak_vector, latent_vector = fwd(prepared, x)
    jax.block_until_ready(peak_vector)
    jax.block_until_ready(latent_vector)

    assert peak_vector.shape == (2, 6)
    assert latent_vector.shape == (2, 1, 32)

    # Sanity check against a pure-JAX reference (loose tolerance: MXU pass
    # count / accumulation order differ between the two paths).
    with jax.default_matmul_precision("highest"):
        peak_ref, lat_ref = _reference_forward(params, x)
    np.testing.assert_allclose(np.asarray(peak_vector), np.asarray(peak_ref),
                               rtol=5e-2, atol=5e-2)
    np.testing.assert_allclose(np.asarray(latent_vector), np.asarray(lat_ref),
                               rtol=5e-2, atol=5e-2)

    print("KERNEL_OK")
</pallas_src>

<mosaic_0001>
module attributes {stable_mosaic.version = 11 : i64} {
  func.func @_fused_forward_kernel(%arg0: i32, %arg1: memref<6x1024xf32, #tpu.memory_space<vmem>>, %arg2: memref<1024x512xf32, #tpu.memory_space<vmem>>, %arg3: memref<1x512xf32, #tpu.memory_space<vmem>>, %arg4: memref<512x256xf32, #tpu.memory_space<vmem>>, %arg5: memref<1x256xf32, #tpu.memory_space<vmem>>, %arg6: memref<256x128xf32, #tpu.memory_space<vmem>>, %arg7: memref<1x128xf32, #tpu.memory_space<vmem>>, %arg8: memref<128x640xf32, #tpu.memory_space<vmem>>, %arg9: memref<1x640xf32, #tpu.memory_space<vmem>>, %arg10: memref<2x32xf32, #tpu.memory_space<vmem>>, %arg11: memref<2x6xf32, #tpu.memory_space<vmem>>) attributes {dimension_semantics = [#tpu.dimension_semantics<parallel>], iteration_bounds = array<i64: 1>, scalar_prefetch = 0 : i64, scratch_operands = 0 : i64, tpu.core_type = #tpu.core_type<tc>, window_params = [{transform_indices = @transform_0, window_bounds = array<i64: 6, 1024>}, {pipeline_mode = #tpu.pipeline_mode<synchronous>, transform_indices = @transform_1, window_bounds = array<i64: 1024, 512>}, {pipeline_mode = #tpu.pipeline_mode<synchronous>, transform_indices = @transform_2, window_bounds = array<i64: 1, 512>}, {pipeline_mode = #tpu.pipeline_mode<synchronous>, transform_indices = @transform_3, window_bounds = array<i64: 512, 256>}, {pipeline_mode = #tpu.pipeline_mode<synchronous>, transform_indices = @transform_4, window_bounds = array<i64: 1, 256>}, {pipeline_mode = #tpu.pipeline_mode<synchronous>, transform_indices = @transform_5, window_bounds = array<i64: 256, 128>}, {pipeline_mode = #tpu.pipeline_mode<synchronous>, transform_indices = @transform_6, window_bounds = array<i64: 1, 128>}, {pipeline_mode = #tpu.pipeline_mode<synchronous>, transform_indices = @transform_7, window_bounds = array<i64: 128, 640>}, {pipeline_mode = #tpu.pipeline_mode<synchronous>, transform_indices = @transform_8, window_bounds = array<i64: 1, 640>}, {transform_indices = @transform_9, window_bounds = array<i64: 2, 32>}, {transform_indices = @transform_10, window_bounds = array<i64: 2, 6>}]} {
    %c0 = arith.constant 0 : index
    %c0_0 = arith.constant 0 : index
    %0 = vector.load %arg1[%c0, %c0_0] : memref<6x1024xf32, #tpu.memory_space<vmem>>, vector<6x1024xf32>
    %c0_1 = arith.constant 0 : index
    %c0_2 = arith.constant 0 : index
    %1 = vector.load %arg2[%c0_1, %c0_2] : memref<1024x512xf32, #tpu.memory_space<vmem>>, vector<1024x512xf32>
    %cst = arith.constant dense<0.000000e+00> : vector<6x512xf32>
    %2 = tpu.matmul %0, %1, %cst {dimension_numbers = #tpu.dot_dimension_numbers<[1], [0], [0], [1], [0, 0, 1, 1], [], []>} : vector<6x1024xf32>, vector<1024x512xf32>, vector<6x512xf32> -> vector<6x512xf32>
    %c0_3 = arith.constant 0 : index
    %c0_4 = arith.constant 0 : index
    %3 = vector.load %arg3[%c0_3, %c0_4] : memref<1x512xf32, #tpu.memory_space<vmem>>, vector<1x512xf32>
    %4 = vector.broadcast %3 : vector<1x512xf32> to vector<6x512xf32>
    %5 = arith.addf %2, %4 : vector<6x512xf32>
    %cst_5 = arith.constant 0.000000e+00 : f32
    %6 = vector.broadcast %cst_5 : f32 to vector<6x512xf32>
    %7 = arith.maximumf %5, %6 : vector<6x512xf32>
    %c0_6 = arith.constant 0 : index
    %c0_7 = arith.constant 0 : index
    %8 = vector.load %arg4[%c0_6, %c0_7] : memref<512x256xf32, #tpu.memory_space<vmem>>, vector<512x256xf32>
    %cst_8 = arith.constant dense<0.000000e+00> : vector<6x256xf32>
    %9 = tpu.matmul %7, %8, %cst_8 {dimension_numbers = #tpu.dot_dimension_numbers<[1], [0], [0], [1], [0, 0, 1, 1], [], []>} : vector<6x512xf32>, vector<512x256xf32>, vector<6x256xf32> -> vector<6x256xf32>
    %c0_9 = arith.constant 0 : index
    %c0_10 = arith.constant 0 : index
    %10 = vector.load %arg5[%c0_9, %c0_10] : memref<1x256xf32, #tpu.memory_space<vmem>>, vector<1x256xf32>
    %11 = vector.broadcast %10 : vector<1x256xf32> to vector<6x256xf32>
    %12 = arith.addf %9, %11 : vector<6x256xf32>
    %cst_11 = arith.constant 0.000000e+00 : f32
    %13 = vector.broadcast %cst_11 : f32 to vector<6x256xf32>
    %14 = arith.maximumf %12, %13 : vector<6x256xf32>
    %c0_12 = arith.constant 0 : index
    %c0_13 = arith.constant 0 : index
    %15 = vector.load %arg6[%c0_12, %c0_13] : memref<256x128xf32, #tpu.memory_space<vmem>>, vector<256x128xf32>
    %cst_14 = arith.constant dense<0.000000e+00> : vector<6x128xf32>
    %16 = tpu.matmul %14, %15, %cst_14 {dimension_numbers = #tpu.dot_dimension_numbers<[1], [0], [0], [1], [0, 0, 1, 1], [], []>} : vector<6x256xf32>, vector<256x128xf32>, vector<6x128xf32> -> vector<6x128xf32>
    %c0_15 = arith.constant 0 : index
    %c0_16 = arith.constant 0 : index
    %17 = vector.load %arg7[%c0_15, %c0_16] : memref<1x128xf32, #tpu.memory_space<vmem>>, vector<1x128xf32>
    %18 = vector.broadcast %17 : vector<1x128xf32> to vector<6x128xf32>
    %19 = arith.addf %16, %18 : vector<6x128xf32>
    %cst_17 = arith.constant 0.000000e+00 : f32
    %20 = vector.broadcast %cst_17 : f32 to vector<6x128xf32>
    %21 = arith.maximumf %19, %20 : vector<6x128xf32>
    %c0_18 = arith.constant 0 : index
    %c0_19 = arith.constant 0 : index
    %22 = vector.load %arg8[%c0_18, %c0_19] : memref<128x640xf32, #tpu.memory_space<vmem>>, vector<128x640xf32>
    %cst_20 = arith.constant dense<0.000000e+00> : vector<6x640xf32>
    %23 = tpu.matmul %21, %22, %cst_20 {dimension_numbers = #tpu.dot_dimension_numbers<[1], [0], [0], [1], [0, 0, 1, 1], [], []>} : vector<6x128xf32>, vector<128x640xf32>, vector<6x640xf32> -> vector<6x640xf32>
    %c0_21 = arith.constant 0 : index
    %c0_22 = arith.constant 0 : index
    %24 = vector.load %arg9[%c0_21, %c0_22] : memref<1x640xf32, #tpu.memory_space<vmem>>, vector<1x640xf32>
    %25 = vector.broadcast %24 : vector<1x640xf32> to vector<6x640xf32>
    %26 = arith.addf %23, %25 : vector<6x640xf32>
    %27 = vector.extract_strided_slice %26 {offsets = [0, 0], sizes = [3, 32], strides = [1, 1]} : vector<6x640xf32> to vector<3x32xf32>
    %28 = vector.extract_strided_slice %26 {offsets = [1, 0], sizes = [1, 32], strides = [1, 1]} : vector<6x640xf32> to vector<1x32xf32>
    %29 = vector.broadcast %28 : vector<1x32xf32> to vector<3x32xf32>
    %30 = arith.mulf %29, %27 : vector<3x32xf32>
    %cst_23 = arith.constant dense<0.000000e+00> : vector<3xf32>
    %31 = vector.multi_reduction <add>, %30, %cst_23 [1] : vector<3x32xf32> to vector<3xf32>
    %32 = vector.shape_cast %31 : vector<3xf32> to vector<3x1xf32>
    %cst_24 = arith.constant 0.176776692 : f32
    %33 = vector.broadcast %cst_24 : f32 to vector<3x1xf32>
    %34 = arith.mulf %32, %33 : vector<3x1xf32>
    %cst_25 = arith.constant dense<0xFF800000> : vector<1xf32>
    %35 = vector.multi_reduction <maximumf>, %34, %cst_25 [0] : vector<3x1xf32> to vector<1xf32>
    %36 = vector.shape_cast %35 : vector<1xf32> to vector<1x1xf32>
    %37 = vector.broadcast %36 : vector<1x1xf32> to vector<3x1xf32>
    %38 = arith.subf %34, %37 : vector<3x1xf32>
    %39 = math.exp %38 : vector<3x1xf32>
    %cst_26 = arith.constant dense<0.000000e+00> : vector<1xf32>
    %40 = vector.multi_reduction <add>, %39, %cst_26 [0] : vector<3x1xf32> to vector<1xf32>
    %41 = vector.shape_cast %40 : vector<1xf32> to vector<1x1xf32>
    %42 = vector.broadcast %41 : vector<1x1xf32> to vector<3x1xf32>
    %43 = arith.divf %39, %42 : vector<3x1xf32>
    %44 = vector.broadcast %43 : vector<3x1xf32> to vector<3x32xf32>
    %45 = arith.mulf %44, %27 : vector<3x32xf32>
    %cst_27 = arith.constant dense<0.000000e+00> : vector<32xf32>
    %46 = vector.multi_reduction <add>, %45, %cst_27 [0] : vector<3x32xf32> to vector<32xf32>
    %47 = vector.shape_cast %46 : vector<32xf32> to vector<1x32xf32>
    %48 = vector.extract_strided_slice %26 {offsets = [0, 128], sizes = [1, 3], strides = [1, 1]} : vector<6x640xf32> to vector<1x3xf32>
    %49 = arith.mulf %48, %48 : vector<1x3xf32>
    %cst_28 = arith.constant dense<0.000000e+00> : vector<1xf32>
    %50 = vector.multi_reduction <add>, %49, %cst_28 [1] : vector<1x3xf32> to vector<1xf32>
    %51 = vector.shape_cast %50 : vector<1xf32> to vector<1x1xf32>
    %52 = math.rsqrt %51 : vector<1x1xf32>
    %53 = vector.broadcast %52 : vector<1x1xf32> to vector<1x3xf32>
    %54 = arith.mulf %48, %53 : vector<1x3xf32>
    %55 = vector.extract_strided_slice %26 {offsets = [1, 256], sizes = [1, 3], strides = [1, 1]} : vector<6x640xf32> to vector<1x3xf32>
    %56 = arith.mulf %55, %55 : vector<1x3xf32>
    %cst_29 = arith.constant dense<0.000000e+00> : vector<1xf32>
    %57 = vector.multi_reduction <add>, %56, %cst_29 [1] : vector<1x3xf32> to vector<1xf32>
    %58 = vector.shape_cast %57 : vector<1xf32> to vector<1x1xf32>
    %59 = math.rsqrt %58 : vector<1x1xf32>
    %60 = vector.broadcast %59 : vector<1x1xf32> to vector<1x3xf32>
    %61 = arith.mulf %55, %60 : vector<1x3xf32>
    %62 = arith.addf %54, %61 : vector<1x3xf32>
    %63 = vector.extract_strided_slice %26 {offsets = [2, 384], sizes = [1, 3], strides = [1, 1]} : vector<6x640xf32> to vector<1x3xf32>
    %64 = arith.mulf %63, %63 : vector<1x3xf32>
    %cst_30 = arith.constant dense<0.000000e+00> : vector<1xf32>
    %65 = vector.multi_reduction <add>, %64, %cst_30 [1] : vector<1x3xf32> to vector<1xf32>
    %66 = vector.shape_cast %65 : vector<1xf32> to vector<1x1xf32>
    %67 = math.rsqrt %66 : vector<1x1xf32>
    %68 = vector.broadcast %67 : vector<1x1xf32> to vector<1x3xf32>
    %69 = arith.mulf %63, %68 : vector<1x3xf32>
    %70 = arith.addf %62, %69 : vector<1x3xf32>
    %cst_31 = arith.constant 0.333333343 : f32
    %71 = vector.broadcast %cst_31 : f32 to vector<1x3xf32>
    %72 = arith.mulf %70, %71 : vector<1x3xf32>
    %73 = arith.mulf %72, %72 : vector<1x3xf32>
    %cst_32 = arith.constant dense<0.000000e+00> : vector<1xf32>
    %74 = vector.multi_reduction <add>, %73, %cst_32 [1] : vector<1x3xf32> to vector<1xf32>
    %75 = vector.shape_cast %74 : vector<1xf32> to vector<1x1xf32>
    %76 = math.rsqrt %75 : vector<1x1xf32>
    %77 = vector.broadcast %76 : vector<1x1xf32> to vector<1x3xf32>
    %78 = arith.mulf %72, %77 : vector<1x3xf32>
    %79 = vector.extract_strided_slice %26 {offsets = [0, 512], sizes = [3, 3], strides = [1, 1]} : vector<6x640xf32> to vector<3x3xf32>
    %cst_33 = arith.constant dense<0.000000e+00> : vector<3xf32>
    %80 = vector.multi_reduction <add>, %79, %cst_33 [0] : vector<3x3xf32> to vector<3xf32>
    %81 = vector.shape_cast %80 : vector<3xf32> to vector<1x3xf32>
    %cst_34 = arith.constant 3.000000e+00 : f32
    %82 = vector.broadcast %cst_34 : f32 to vector<1x3xf32>
    %83 = arith.divf %81, %82 : vector<1x3xf32>
    %84 = tpu.concatenate %78, %83 in 1 : vector<1x3xf32>, vector<1x3xf32> -> vector<1x6xf32>
    %85 = vector.extract_strided_slice %26 {offsets = [3, 0], sizes = [3, 32], strides = [1, 1]} : vector<6x640xf32> to vector<3x32xf32>
    %86 = vector.extract_strided_slice %26 {offsets = [4, 0], sizes = [1, 32], strides = [1, 1]} : vector<6x640xf32> to vector<1x32xf32>
    %87 = vector.broadcast %86 : vector<1x32xf32> to vector<3x32xf32>
    %88 = arith.mulf %87, %85 : vector<3x32xf32>
    %cst_35 = arith.constant dense<0.000000e+00> : vector<3xf32>
    %89 = vector.multi_reduction <add>, %88, %cst_35 [1] : vector<3x32xf32> to vector<3xf32>
    %90 = vector.shape_cast %89 : vector<3xf32> to vector<3x1xf32>
    %cst_36 = arith.constant 0.176776692 : f32
    %91 = vector.broadcast %cst_36 : f32 to vector<3x1xf32>
    %92 = arith.mulf %90, %91 : vector<3x1xf32>
    %cst_37 = arith.constant dense<0xFF800000> : vector<1xf32>
    %93 = vector.multi_reduction <maximumf>, %92, %cst_37 [0] : vector<3x1xf32> to vector<1xf32>
    %94 = vector.shape_cast %93 : vector<1xf32> to vector<1x1xf32>
    %95 = vector.broadcast %94 : vector<1x1xf32> to vector<3x1xf32>
    %96 = arith.subf %92, %95 : vector<3x1xf32>
    %97 = math.exp %96 : vector<3x1xf32>
    %cst_38 = arith.constant dense<0.000000e+00> : vector<1xf32>
    %98 = vector.multi_reduction <add>, %97, %cst_38 [0] : vector<3x1xf32> to vector<1xf32>
    %99 = vector.shape_cast %98 : vector<1xf32> to vector<1x1xf32>
    %100 = vector.broadcast %99 : vector<1x1xf32> to vector<3x1xf32>
    %101 = arith.divf %97, %100 : vector<3x1xf32>
    %102 = vector.broadcast %101 : vector<3x1xf32> to vector<3x32xf32>
    %103 = arith.mulf %102, %85 : vector<3x32xf32>
    %cst_39 = arith.constant dense<0.000000e+00> : vector<32xf32>
    %104 = vector.multi_reduction <add>, %103, %cst_39 [0] : vector<3x32xf32> to vector<32xf32>
    %105 = vector.shape_cast %104 : vector<32xf32> to vector<1x32xf32>
    %106 = vector.extract_strided_slice %26 {offsets = [3, 128], sizes = [1, 3], strides = [1, 1]} : vector<6x640xf32> to vector<1x3xf32>
    %107 = arith.mulf %106, %106 : vector<1x3xf32>
    %cst_40 = arith.constant dense<0.000000e+00> : vector<1xf32>
    %108 = vector.multi_reduction <add>, %107, %cst_40 [1] : vector<1x3xf32> to vector<1xf32>
    %109 = vector.shape_cast %108 : vector<1xf32> to vector<1x1xf32>
    %110 = math.rsqrt %109 : vector<1x1xf32>
    %111 = vector.broadcast %110 : vector<1x1xf32> to vector<1x3xf32>
    %112 = arith.mulf %106, %111 : vector<1x3xf32>
    %113 = vector.extract_strided_slice %26 {offsets = [4, 256], sizes = [1, 3], strides = [1, 1]} : vector<6x640xf32> to vector<1x3xf32>
    %114 = arith.mulf %113, %113 : vector<1x3xf32>
    %cst_41 = arith.constant dense<0.000000e+00> : vector<1xf32>
    %115 = vector.multi_reduction <add>, %114, %cst_41 [1] : vector<1x3xf32> to vector<1xf32>
    %116 = vector.shape_cast %115 : vector<1xf32> to vector<1x1xf32>
    %117 = math.rsqrt %116 : vector<1x1xf32>
    %118 = vector.broadcast %117 : vector<1x1xf32> to vector<1x3xf32>
    %119 = arith.mulf %113, %118 : vector<1x3xf32>
    %120 = arith.addf %112, %119 : vector<1x3xf32>
    %121 = vector.extract_strided_slice %26 {offsets = [5, 384], sizes = [1, 3], strides = [1, 1]} : vector<6x640xf32> to vector<1x3xf32>
    %122 = arith.mulf %121, %121 : vector<1x3xf32>
    %cst_42 = arith.constant dense<0.000000e+00> : vector<1xf32>
    %123 = vector.multi_reduction <add>, %122, %cst_42 [1] : vector<1x3xf32> to vector<1xf32>
    %124 = vector.shape_cast %123 : vector<1xf32> to vector<1x1xf32>
    %125 = math.rsqrt %124 : vector<1x1xf32>
    %126 = vector.broadcast %125 : vector<1x1xf32> to vector<1x3xf32>
    %127 = arith.mulf %121, %126 : vector<1x3xf32>
    %128 = arith.addf %120, %127 : vector<1x3xf32>
    %cst_43 = arith.constant 0.333333343 : f32
    %129 = vector.broadcast %cst_43 : f32 to vector<1x3xf32>
    %130 = arith.mulf %128, %129 : vector<1x3xf32>
    %131 = arith.mulf %130, %130 : vector<1x3xf32>
    %cst_44 = arith.constant dense<0.000000e+00> : vector<1xf32>
    %132 = vector.multi_reduction <add>, %131, %cst_44 [1] : vector<1x3xf32> to vector<1xf32>
    %133 = vector.shape_cast %132 : vector<1xf32> to vector<1x1xf32>
    %134 = math.rsqrt %133 : vector<1x1xf32>
    %135 = vector.broadcast %134 : vector<1x1xf32> to vector<1x3xf32>
    %136 = arith.mulf %130, %135 : vector<1x3xf32>
    %137 = vector.extract_strided_slice %26 {offsets = [3, 512], sizes = [3, 3], strides = [1, 1]} : vector<6x640xf32> to vector<3x3xf32>
    %cst_45 = arith.constant dense<0.000000e+00> : vector<3xf32>
    %138 = vector.multi_reduction <add>, %137, %cst_45 [0] : vector<3x3xf32> to vector<3xf32>
    %139 = vector.shape_cast %138 : vector<3xf32> to vector<1x3xf32>
    %cst_46 = arith.constant 3.000000e+00 : f32
    %140 = vector.broadcast %cst_46 : f32 to vector<1x3xf32>
    %141 = arith.divf %139, %140 : vector<1x3xf32>
    %142 = tpu.concatenate %136, %141 in 1 : vector<1x3xf32>, vector<1x3xf32> -> vector<1x6xf32>
    %143 = tpu.concatenate %47, %105 in 0 : vector<1x32xf32>, vector<1x32xf32> -> vector<2x32xf32>
    %c0_47 = arith.constant 0 : index
    %c0_48 = arith.constant 0 : index
    %144 = vector.load %arg10[%c0_47, %c0_48] : memref<2x32xf32, #tpu.memory_space<vmem>>, vector<2x32xf32>
    tpu.vector_store %arg10[%c0_47, %c0_48], %143 {strides = array<i32>} : memref<2x32xf32, #tpu.memory_space<vmem>>, vector<2x32xf32>,
    %145 = tpu.concatenate %84, %142 in 0 : vector<1x6xf32>, vector<1x6xf32> -> vector<2x6xf32>
    %c0_49 = arith.constant 0 : index
    %c0_50 = arith.constant 0 : index
    %146 = vector.load %arg11[%c0_49, %c0_50] : memref<2x6xf32, #tpu.memory_space<vmem>>, vector<2x6xf32>
    tpu.vector_store %arg11[%c0_49, %c0_50], %145 {strides = array<i32>} : memref<2x6xf32, #tpu.memory_space<vmem>>, vector<2x6xf32>,
    return
  }
  func.func @transform_0(%arg0: i32) -> (i32, i32) {
    %c0_i32 = arith.constant 0 : i32
    %c0_i32_0 = arith.constant 0 : i32
    return %arg0, %c0_i32 : i32, i32
  }
  func.func @transform_1(%arg0: i32) -> (i32, i32) {
    %c0_i32 = arith.constant 0 : i32
    %c0_i32_0 = arith.constant 0 : i32
    %c0_i32_1 = arith.constant 0 : i32
    return %c0_i32, %c0_i32_0 : i32, i32
  }
  func.func @transform_2(%arg0: i32) -> (i32, i32) {
    %c0_i32 = arith.constant 0 : i32
    %c0_i32_0 = arith.constant 0 : i32
    %c0_i32_1 = arith.constant 0 : i32
    return %c0_i32, %c0_i32_0 : i32, i32
  }
  func.func @transform_3(%arg0: i32) -> (i32, i32) {
    %c0_i32 = arith.constant 0 : i32
    %c0_i32_0 = arith.constant 0 : i32
    %c0_i32_1 = arith.constant 0 : i32
    return %c0_i32, %c0_i32_0 : i32, i32
  }
  func.func @transform_4(%arg0: i32) -> (i32, i32) {
    %c0_i32 = arith.constant 0 : i32
    %c0_i32_0 = arith.constant 0 : i32
    %c0_i32_1 = arith.constant 0 : i32
    return %c0_i32, %c0_i32_0 : i32, i32
  }
  func.func @transform_5(%arg0: i32) -> (i32, i32) {
    %c0_i32 = arith.constant 0 : i32
    %c0_i32_0 = arith.constant 0 : i32
    %c0_i32_1 = arith.constant 0 : i32
    return %c0_i32, %c0_i32_0 : i32, i32
  }
  func.func @transform_6(%arg0: i32) -> (i32, i32) {
    %c0_i32 = arith.constant 0 : i32
    %c0_i32_0 = arith.constant 0 : i32
    %c0_i32_1 = arith.constant 0 : i32
    return %c0_i32, %c0_i32_0 : i32, i32
  }
  func.func @transform_7(%arg0: i32) -> (i32, i32) {
    %c0_i32 = arith.constant 0 : i32
    %c0_i32_0 = arith.constant 0 : i32
    %c0_i32_1 = arith.constant 0 : i32
    return %c0_i32, %c0_i32_0 : i32, i32
  }
  func.func @transform_8(%arg0: i32) -> (i32, i32) {
    %c0_i32 = arith.constant 0 : i32
    %c0_i32_0 = arith.constant 0 : i32
    %c0_i32_1 = arith.constant 0 : i32
    return %c0_i32, %c0_i32_0 : i32, i32
  }
  func.func @transform_9(%arg0: i32) -> (i32, i32) {
    %c0_i32 = arith.constant 0 : i32
    %c0_i32_0 = arith.constant 0 : i32
    return %arg0, %c0_i32 : i32, i32
  }
  func.func @transform_10(%arg0: i32) -> (i32, i32) {
    %c0_i32 = arith.constant 0 : i32
    %c0_i32_0 = arith.constant 0 : i32
    return %arg0, %c0_i32 : i32, i32
  }
}

</mosaic_0001>

<bundles_post_ra>
// kernel: avg_multi_view_forward.1
= control target key start
LH: loop header
LB: loop body
LE: loop exit
PB: predicated region body
PF: predicated region fallthrough
CT: control target
= control target key end

     0   :  { %16 = vsyncpa [#allocation3], 0  ;;  %s3657_s0 = inlined_call_operand.vmem [shape: f32[6,1024], index: 0, kind: input, shape index: {}]   ;;  %s3658_s1 = inlined_call_operand.hbm [shape: f32[1024,512], index: 1, kind: input, shape index: {}]   ;;  %s3659_s2 = inlined_call_operand.hbm [shape: f32[1,512], index: 2, kind: input, shape index: {}]   ;;  %s3660_s3 = inlined_call_operand.hbm [shape: f32[512,256], index: 3, kind: input, shape index: {}]   ;;  %s3661_s4 = inlined_call_operand.hbm [shape: f32[1,256], index: 4, kind: input, shape index: {}]   ;;  %s3662_s5 = inlined_call_operand.hbm [shape: f32[256,128], index: 5, kind: input, shape index: {}]   ;;  %s3663_s6 = inlined_call_operand.hbm [shape: f32[1,128], index: 6, kind: input, shape index: {}]   ;;  %s3664_s7 = inlined_call_operand.hbm [shape: f32[128,640], index: 7, kind: input, shape index: {}]   ;;  %s3665_s8 = inlined_call_operand.hbm [shape: f32[1,640], index: 8, kind: input, shape index: {}]   ;;  %s3666_s9 = inlined_call_operand.hbm [shape: f32[2,32], index: 9, kind: output, shape index: {0}]   ;;  %s3667_s10 = inlined_call_operand.hbm [shape: f32[2,6], index: 10, kind: output, shape index: {1}]  }
   0x1   :  { %17 = vsyncpa [#allocation6], 0 }
   0x2   :  { %18 = vsyncpa [#allocation9], 0 }
   0x3   :  { %19 = vsyncpa [#allocation12], 0 }
   0x4   :  { %20 = vsyncpa [#allocation15], 0 }
   0x5   :  { %21 = vsyncpa [#allocation4], 0 }
   0x6   :  { %22 = vsyncpa [#allocation18], 0  ;;  %s3338_s13 = smov [#allocation5]   ;;  %s3339_s15 = smov [#allocation8]  }
   0x7   :  { %s43_s14 = sshll.u32 %s3338_s13, 4  ;;  %s65_s16 = sshll.u32 %s3339_s15, 4  ;;  %s44_s14 = int_to_ptr.vmem [resolvable:$true] %s43_s14  ;;  %s66_s16 = int_to_ptr.vmem [resolvable:$true] %s65_s16 }
   0x8   :  { %s3104_s19 = scalar_lea.hbm %s3659_s2, 64 }
   0x9   :  { %p3105_p0 = scmp.ne.s32.totalorder %s3659_s2, %s3104_s19  ;;  %p3108_p1 = scmp.lt.u32.totalorder %s3104_s19, %s3659_s2 }
   0xb   :  { %p3110_p2 = pnand %p3108_p1, %p3105_p0 }
   0xd   :  { %3113 = shalt.err (!%p3110_p2)
}
   0xe   :  { %s3114_s24 = scalar_lea.vmem %s44_s14, 64  ;;  %p3119_p4 = scmp.lt.s32.totalorder %s44_s14, %s44_s14 }
   0xf   :  { %p3115_p3 = scmp.ne.s32.totalorder %s44_s14, %s3114_s24  ;;  %p3120_p5 = scmp.lt.s32.totalorder %s3114_s24, %s3114_s24 }
  0x11   :  { %p3121_p6 = por %p3120_p5, %p3119_p4 }
  0x13   :  { %p3122_p7 = pnand %p3121_p6, %p3115_p3 }
  0x15   :  { %3125 = shalt.err (!%p3122_p7)
}
  0x16   :  { %46 = dma.hbm_to_vmem [thread:$0]  %s3659_s2, 64, %s44_s14, [#allocation6]  }
  0x17   :  { %s3126_s29 = scalar_lea.hbm %s3661_s4, 32 }
  0x18   :  { %p3127_p8 = scmp.ne.s32.totalorder %s3661_s4, %s3126_s29  ;;  %p3130_p9 = scmp.lt.u32.totalorder %s3126_s29, %s3661_s4 }
  0x1a   :  { %p3132_p10 = pnand %p3130_p9, %p3127_p8 }
  0x1c   :  { %3135 = shalt.err (!%p3132_p10)
}
  0x1d   :  { %s3136_s15 = scalar_lea.vmem %s66_s16, 32  ;;  %p3141_p12 = scmp.lt.s32.totalorder %s66_s16, %s66_s16 }
  0x1e   :  { %p3137_p11 = scmp.ne.s32.totalorder %s66_s16, %s3136_s15  ;;  %p3142_p13 = scmp.lt.s32.totalorder %s3136_s15, %s3136_s15 }
  0x20   :  { %p3143_p0 = por %p3142_p13, %p3141_p12 }
  0x22   :  { %p3144_p1 = pnand %p3143_p0, %p3137_p11 }
  0x24   :  { %3147 = shalt.err (!%p3144_p1)
}
  0x25   :  { %68 = dma.hbm_to_vmem [thread:$0]  %s3661_s4, 32, %s66_s16, [#allocation9]  }
  0x26   :  { %s3340_s17 = smov [#allocation11]   ;;  %s3341_s19 = smov [#allocation2]  }
  0x27   :  { %s87_s18 = sshll.u32 %s3340_s17, 4  ;;  %s30_s20 = sshll.u32 %s3341_s19, 4  ;;  %s88_s18 = int_to_ptr.vmem [resolvable:$true] %s87_s18  ;;  %s3439_s20 = int_to_ptr.vmem [resolvable:$true] %s30_s20 }
  0x28   :  { %s3148_s23 = scalar_lea.hbm %s3663_s6, 16 }
  0x29   :  { %p3149_p2 = scmp.ne.s32.totalorder %s3663_s6, %s3148_s23  ;;  %p3152_p3 = scmp.lt.u32.totalorder %s3148_s23, %s3663_s6 }
  0x2b   :  { %p3154_p4 = pnand %p3152_p3, %p3149_p2 }
  0x2d   :  { %3157 = shalt.err (!%p3154_p4)
}
  0x2e   :  { %s3158_s4 = scalar_lea.vmem %s88_s18, 16  ;;  %s3162_s16 = scalar_lea.vmem %s88_s18, 32 }
  0x2f   :  { %p3159_p5 = scmp.ne.s32.totalorder %s88_s18, %s3158_s4  ;;  %p3163_p6 = scmp.lt.s32.totalorder %s88_s18, %s88_s18 }
  0x30   :  { %p3164_p7 = scmp.lt.s32.totalorder %s3162_s16, %s3158_s4 }
  0x32   :  { %p3165_p8 = por %p3164_p7, %p3163_p6 }
  0x34   :  { %p3166_p9 = pnand %p3165_p8, %p3159_p5 }
  0x36   :  { %3169 = shalt.err (!%p3166_p9)
}
  0x37   :  { %90 = dma.hbm_to_vmem [thread:$0]  %s3663_s6, 16, %s88_s18, [#allocation12]  }
  0x38   :  { %s3170_s12 = scalar_lea.hbm %s3658_s1, 65536 }
  0x39   :  { %p3171_p10 = scmp.ne.s32.totalorder %s3658_s1, %s3170_s12  ;;  %p3174_p11 = scmp.lt.u32.totalorder %s3170_s12, %s3658_s1 }
  0x3b   :  { %p3176_p12 = pnand %p3174_p11, %p3171_p10 }
  0x3d   :  { %3179 = shalt.err (!%p3176_p12)
}
  0x3e   :  { %s3180_s17 = scalar_lea.vmem %s3439_s20, 65536  ;;  %p3185_p0 = scmp.lt.s32.totalorder %s3439_s20, %s3439_s20 }
  0x3f   :  { %p3181_p13 = scmp.ne.s32.totalorder %s3439_s20, %s3180_s17  ;;  %p3186_p1 = scmp.lt.s32.totalorder %s3180_s17, %s3180_s17 }
  0x41   :  { %p3187_p2 = por %p3186_p1, %p3185_p0 }
  0x43   :  { %p3188_p3 = pnand %p3187_p2, %p3181_p13 }
  0x45   :  { %3191 = shalt.err (!%p3188_p3)
}
  0x46   :  { %s3342_s6 = smov 512   ;;  %s3343_s18 = smov 32  }
  0x47   :  { %36 = dma.hbm_to_vmem [thread:$0]  %s3658_s1, 65536, %s3439_s20, [#allocation3], %s3342_s6, %s3342_s6, %s3343_s18  }
  0x48   :  { %s3344_s22 = smov [#allocation7]   ;;  %s3192_s26 = scalar_lea.hbm %s3660_s3, 16384 }
  0x49   :  { %s52_s23 = sshll.u32 %s3344_s22, 4  ;;  %p3193_p4 = scmp.ne.s32.totalorder %s3660_s3, %s3192_s26  ;;  %s53_s23 = int_to_ptr.vmem [resolvable:$true] %s52_s23 }
  0x4a   :  { %p3196_p5 = scmp.lt.u32.totalorder %s3192_s26, %s3660_s3 }
  0x4c   :  { %p3198_p6 = pnand %p3196_p5, %p3193_p4 }
  0x4e   :  { %3201 = shalt.err (!%p3198_p6)
}
  0x4f   :  { %s3202_s29 = scalar_lea.vmem %s53_s23, 16384  ;;  %p3207_p8 = scmp.lt.s32.totalorder %s53_s23, %s53_s23 }
  0x50   :  { %p3203_p7 = scmp.ne.s32.totalorder %s53_s23, %s3202_s29  ;;  %p3208_p9 = scmp.lt.s32.totalorder %s3202_s29, %s3202_s29 }
  0x52   :  { %p3209_p10 = por %p3208_p9, %p3207_p8 }
  0x54   :  { %p3210_p11 = pnand %p3209_p10, %p3203_p7 }
  0x56   :  { %3213 = shalt.err (!%p3210_p11)
}
  0x57   :  { %s3345_s1 = smov 256   ;;  %s3346_s20 = smov 16  }
  0x58   :  { %58 = dma.hbm_to_vmem [thread:$0]  %s3660_s3, 16384, %s53_s23, [#allocation6], %s3345_s1, %s3345_s1, %s3346_s20  }
  0x59   :  { %s3347_s12 = smov [#allocation10]   ;;  %s3214_s14 = scalar_lea.hbm %s3662_s5, 4096 }
  0x5a   :  { %s74_s13 = sshll.u32 %s3347_s12, 4  ;;  %p3215_p12 = scmp.ne.s32.totalorder %s3662_s5, %s3214_s14  ;;  %s75_s13 = int_to_ptr.vmem [resolvable:$true] %s74_s13 }
  0x5b   :  { %p3218_p13 = scmp.lt.u32.totalorder %s3214_s14, %s3662_s5 }
  0x5d   :  { %p3220_p0 = pnand %p3218_p13, %p3215_p12 }
  0x5f   :  { %3223 = shalt.err (!%p3220_p0)
}
  0x60   :  { %s3224_s21 = scalar_lea.vmem %s75_s13, 4096  ;;  %p3229_p2 = scmp.lt.s32.totalorder %s75_s13, %s75_s13 }
  0x61   :  { %p3225_p1 = scmp.ne.s32.totalorder %s75_s13, %s3224_s21  ;;  %p3230_p3 = scmp.lt.s32.totalorder %s3224_s21, %s3224_s21 }
  0x63   :  { %p3231_p4 = por %p3230_p3, %p3229_p2 }
  0x65   :  { %p3232_p5 = pnand %p3231_p4, %p3225_p1 }
  0x67   :  { %3235 = shalt.err (!%p3232_p5)
}
  0x68   :  { %s3348_s3 = smov 128   ;;  %s3349_s22 = smov 8  }
  0x69   :  { %80 = dma.hbm_to_vmem [thread:$0]  %s3662_s5, 4096, %s75_s13, [#allocation9], %s3348_s3, %s3348_s3, %s3349_s22  }
  0x6a   :  { %s3350_s25 = smov [#allocation13]   ;;  %s3236_s16 = scalar_lea.hbm %s3664_s7, 10240 }
  0x6b   :  { %s96_s26 = sshll.u32 %s3350_s25, 4  ;;  %p3237_p6 = scmp.ne.s32.totalorder %s3664_s7, %s3236_s16  ;;  %s97_s26 = int_to_ptr.vmem [resolvable:$true] %s96_s26 }
  0x6c   :  { %p3240_p7 = scmp.lt.u32.totalorder %s3236_s16, %s3664_s7 }
  0x6e   :  { %p3242_p8 = pnand %p3240_p7, %p3237_p6 }
  0x70   :  { %3245 = shalt.err (!%p3242_p8)
}
  0x71   :  { %s3246_s30 = scalar_lea.vmem %s97_s26, 10240  ;;  %p3251_p10 = scmp.lt.s32.totalorder %s97_s26, %s97_s26 }
  0x72   :  { %p3247_p9 = scmp.ne.s32.totalorder %s97_s26, %s3246_s30  ;;  %p3252_p11 = scmp.lt.s32.totalorder %s3246_s30, %s3246_s30 }
  0x74   :  { %p3253_p12 = por %p3252_p11, %p3251_p10 }
  0x76   :  { %p3254_p13 = pnand %p3253_p12, %p3247_p9 }
  0x78   :  { %3257 = shalt.err (!%p3254_p13)
}
  0x79   :  { %s3351_s5 = smov 640   ;;  %s3352_s11 = smov 40  }
  0x7a   :  { %102 = dma.hbm_to_vmem [thread:$0]  %s3664_s7, 10240, %s97_s26, [#allocation12], %s3351_s5, %s3351_s5, %s3352_s11  }
  0x7b   :  { %s3353_s15 = smov [#allocation14]   ;;  %s3258_s6 = scalar_lea.hbm %s3665_s8, 80 }
  0x7c   :  { %s109_s2 = sshll.u32 %s3353_s15, 4  ;;  %p3259_p0 = scmp.ne.s32.totalorder %s3665_s8, %s3258_s6  ;;  %s110_s2 = int_to_ptr.vmem [resolvable:$true] %s109_s2 }
  0x7d   :  { %p3262_p1 = scmp.lt.u32.totalorder %s3258_s6, %s3665_s8 }
  0x7f   :  { %p3264_p2 = pnand %p3262_p1, %p3259_p0 }
  0x81   :  { %3267 = shalt.err (!%p3264_p2)
}
  0x82   :  { %s3268_s22 = scalar_lea.vmem %s110_s2, 80  ;;  %s3272_s7 = scalar_lea.vmem %s110_s2, 96 }
  0x83   :  { %p3269_p3 = scmp.ne.s32.totalorder %s110_s2, %s3268_s22  ;;  %p3273_p4 = scmp.lt.s32.totalorder %s110_s2, %s110_s2 }
  0x84   :  { %p3274_p5 = scmp.lt.s32.totalorder %s3272_s7, %s3268_s22 }
  0x86   :  { %p3275_p6 = por %p3274_p5, %p3273_p4 }
  0x88   :  { %p3276_p7 = pnand %p3275_p6, %p3269_p3 }
  0x8a   :  { %3279 = shalt.err (!%p3276_p7)
}
  0x8b   :  { %112 = dma.hbm_to_vmem [thread:$0]  %s3665_s8, 80, %s110_s2, [#allocation15]  }
  0x8c   :  { %3324 = dma.done.wait [#allocation3], 65536  }
  0x8d   :  { %3325 = vsyncadd [#allocation3], 4294901760 }
  0x8e   :  { %3326 = dma.done.wait [#allocation6], 16448  }
  0x8f   :  { %3327 = vsyncadd [#allocation6], 4294950848 }
  0x90   :  { %3328 = dma.done.wait [#allocation9], 4128  }
  0x91   :  { %3329 = vsyncadd [#allocation9], 4294963168 }
  0x92   :  { %3330 = dma.done.wait [#allocation12], 10256  }
  0x93   :  { %3331 = vsyncadd [#allocation12], 4294957040 }
  0x94   :  { %3332 = dma.done.wait [#allocation15], 80  }
  0x95   :  { %3333 = vsyncadd [#allocation15], 4294967216  ;;  %v146_v0 = vld [vmem:[#allocation2 + $0x8] sm:$0xff]  ;;  %v148_v2 = vld [vmem:[#allocation2 + $0x18] sm:$0xff]  ;;  %vm3356_vm0 = vmmov 0   ;;  %vm2098_vm1 = vcmask 19459  }
  0x96   :  { %v150_v1 = vld [vmem:[#allocation2 + $0x28] sm:$0xff]  ;;  %v152_v4 = vld [vmem:[#allocation2 + $0x38] sm:$0xff]  ;;  %v145_v5 = vld [vmem:[#allocation2] sm:$0xff]  ;;  %vm2104_vm2 = vcmask 20484   ;;  %vm2114_vm3 = vcmask 21509   ;;  %vm2010_vm4 = vcmask 17409  }
  0x97   :  { %v2278_v3 = vpack.c.bf16 %v150_v1, %v146_v0  ;;  %v149_v6 = vld [vmem:[#allocation2 + $0x20] sm:$0xff]  ;;  %v2534_v7 = vpack.c.bf16 %v152_v4, %v148_v2  ;;  %v147_v9 = vld [vmem:[#allocation2 + $0x10] sm:$0xff]  ;;  %v154_v11 = vld [vmem:[#allocation2 + $0x48] sm:$0xff]  ;;  %vm2021_vm5 = vcmask 18434   ;;  %vm2003_vm6 = vcmask 16384   ;;  %s3358_s2 = smov [#allocation16]  }
  0x98   :  { %v2280_v8 = vpack.c.bf16 %v149_v6, %v145_v5  ;;  %v151_v10 = vld [vmem:[#allocation2 + $0x30] sm:$0xff]  ;;  %v158_v13 = vld [vmem:[#allocation2 + $0x68] sm:$0xff]  ;;  %v156_v14 = vld [vmem:[#allocation2 + $0x58] sm:$0xff]  ;;  %vm1969_vm7 = vcmask 256000   ;;  %vm2059_vm8 = vcmask 259075   ;;  %vm1974_vm9 = vcmask 1042432  }
  0x99   :  { %2279 = vmatprep.subr.bf16.mxu0 %v2278_v3  ;;  %v2536_v12 = vpack.c.bf16 %v151_v10, %v147_v9  ;;  %v160_v15 = vld [vmem:[#allocation2 + $0x78] sm:$0xff]  ;;  %2535 = vmatprep.subr.bf16.mxu1 %v2534_v7  ;;  %v2282_v16 = vpack.c.bf16 %v158_v13, %v154_v11  ;;  %v153_v18 = vld [vmem:[#allocation2 + $0x40] sm:$0xff]  ;;  %v155_v20 = vld [vmem:[#allocation2 + $0x50] sm:$0xff]  ;;  %vm2064_vm10 = vcmask 1045507   ;;  %vm2038_vm11 = vcmask 18432   ;;  %s2163_s14 = sshll.u32 %s3358_s2, 4  ;;  %s2164_s14 = int_to_ptr.vmem [resolvable:$true] %s2163_s14 }
  0x9a   :  { %2281 = vmatpush1.bf16.msra.mxu0 %v2280_v8  ;;  %v2538_v17 = vpack.c.bf16 %v160_v15, %v156_v14  ;;  %v157_v19 = vld [vmem:[#allocation2 + $0x60] sm:$0xff]  ;;  %v159_v22 = vld [vmem:[#allocation2 + $0x70] sm:$0xff]  ;;  %v162_v23 = vld [vmem:[#allocation2 + $0x88] sm:$0xff]  ;;  %vm2147_vm12 = vcmask 1040384   ;;  %vm2149_vm13 = vcmask 254976   ;;  %s3280_s17 = scalar_lea.vmem %s2164_s14, 32  ;;  %p3285_p9 = scmp.lt.s32.totalorder %s2164_s14, %s2164_s14 }
  0x9b   :  { %2537 = vmatpush1.bf16.msra.mxu1 %v2536_v12  ;;  %v2284_v21 = vpack.c.bf16 %v157_v19, %v153_v18  ;;  %v166_v24 = vld [vmem:[#allocation2 + $0xa8] sm:$0xff]  ;;  %2283 = vmatprep.subr.bf16.mxu0 %v2282_v16  ;;  %v2540_v25 = vpack.c.bf16 %v159_v22, %v155_v20  ;;  %v164_v27 = vld [vmem:[#allocation2 + $0x98] sm:$0xff]  ;;  %v161_v29 = vld [vmem:[#allocation2 + $0x80] sm:$0xff]  ;;  %p3281_p8 = scmp.ne.s32.totalorder %s2164_s14, %s3280_s17  ;;  %p3286_p10 = scmp.lt.s32.totalorder %s3280_s17, %s3280_s17 }
  0x9c   :  { %2539 = vmatprep.subr.bf16.mxu1 %v2538_v17  ;;  %v2286_v26 = vpack.c.bf16 %v166_v24, %v162_v23  ;;  %v168_v28 = vld [vmem:[#allocation2 + $0xb8] sm:$0xff]  ;;  %v165_v31 = vld [vmem:[#allocation2 + $0xa0] sm:$0xff]  ;;  %v163_v32 = vld [vmem:[#allocation2 + $0x90] sm:$0xff] }
  0x9d   :  { %v2542_v30 = vpack.c.bf16 %v168_v28, %v164_v27  ;;  %v167_v33 = vld [vmem:[#allocation2 + $0xb0] sm:$0xff]  ;;  %v2288_v34 = vpack.c.bf16 %v165_v31, %v161_v29  ;;  %v170_v35 = vld [vmem:[#allocation2 + $0xc8] sm:$0xff]  ;;  %v172_v37 = vld [vmem:[#allocation2 + $0xd8] sm:$0xff]  ;;  %p3287_p11 = por %p3286_p10, %p3285_p9 }
  0x9e   :  { %2285 = vmatpush1.bf16.msra.mxu0 %v2284_v21  ;;  %v174_v36 = vld [vmem:[#allocation2 + $0xe8] sm:$0xff]  ;;  %v2544_v38 = vpack.c.bf16 %v167_v33, %v163_v32  ;;  %v176_v40 = vld [vmem:[#allocation2 + $0xf8] sm:$0xff]  ;;  %v169_v41 = vld [vmem:[#allocation2 + $0xc0] sm:$0xff] }
  0x9f   :  { %2541 = vmatpush1.bf16.msra.mxu1 %v2540_v25  ;;  %2287 = vmatprep.subr.bf16.mxu0 %v2286_v26  ;;  %v2290_v39 = vpack.c.bf16 %v174_v36, %v170_v35  ;;  %v173_v42 = vld [vmem:[#allocation2 + $0xe0] sm:$0xff]  ;;  %v2546_v43 = vpack.c.bf16 %v176_v40, %v172_v37  ;;  %v171_v44 = vld [vmem:[#allocation2 + $0xd0] sm:$0xff]  ;;  %v178_v46 = vld [vmem:[#allocation2 + $0x108] sm:$0xff]  ;;  %p3288_p12 = pnand %p3287_p11, %p3281_p8 }
  0xa0   :  { %2543 = vmatprep.subr.bf16.mxu1 %v2542_v30  ;;  %v175_v45 = vld [vmem:[#allocation2 + $0xf0] sm:$0xff]  ;;  %v182_v47 = vld [vmem:[#allocation2 + $0x128] sm:$0xff]  ;;  %v180_v48 = vld [vmem:[#allocation2 + $0x118] sm:$0xff]  ;;  %v2292_v50 = vpack.c.bf16 %v173_v42, %v169_v41 }
  0xa1   :  { %v184_v49 = vld [vmem:[#allocation2 + $0x138] sm:$0xff]  ;;  %v2548_v51 = vpack.c.bf16 %v175_v45, %v171_v44  ;;  %v2294_v52 = vpack.c.bf16 %v182_v47, %v178_v46  ;;  %v177_v53 = vld [vmem:[#allocation2 + $0x100] sm:$0xff]  ;;  %v179_v55 = vld [vmem:[#allocation2 + $0x110] sm:$0xff] }
  0xa2   :  { %2289 = vmatpush1.bf16.msra.mxu0 %v2288_v34  ;;  %v181_v54 = vld [vmem:[#allocation2 + $0x120] sm:$0xff]  ;;  %v2550_v56 = vpack.c.bf16 %v184_v49, %v180_v48  ;;  %v183_v57 = vld [vmem:[#allocation2 + $0x130] sm:$0xff]  ;;  %v186_v58 = vld [vmem:[#allocation2 + $0x148] sm:$0xff] }
  0xa3   :  { %2545 = vmatpush1.bf16.msra.mxu1 %v2544_v38  ;;  %2291 = vmatprep.subr.bf16.mxu0 %v2290_v39  ;;  %v190_v59 = vld [vmem:[#allocation2 + $0x168] sm:$0xff]  ;;  %v188_v60 = vld [vmem:[#allocation2 + $0x158] sm:$0xff]  ;;  %v2296_v62 = vpack.c.bf16 %v181_v54, %v177_v53  ;;  %v2552_v63 = vpack.c.bf16 %v183_v57, %v179_v55  ;;  %v185_v1 = vld [vmem:[#allocation2 + $0x140] sm:$0xff] }
  0xa4   :  { %2547 = vmatprep.subr.bf16.mxu1 %v2546_v43  ;;  %v192_v61 = vld [vmem:[#allocation2 + $0x178] sm:$0xff]  ;;  %v2298_v0 = vpack.c.bf16 %v190_v59, %v186_v58  ;;  %v189_v2 = vld [vmem:[#allocation2 + $0x160] sm:$0xff]  ;;  %v187_v3 = vld [vmem:[#allocation2 + $0x150] sm:$0xff] }
  0xa5   :  { %v2554_v4 = vpack.c.bf16 %v192_v61, %v188_v60  ;;  %v191_v5 = vld [vmem:[#allocation2 + $0x170] sm:$0xff]  ;;  %v194_v6 = vld [vmem:[#allocation2 + $0x188] sm:$0xff]  ;;  %v196_v8 = vld [vmem:[#allocation2 + $0x198] sm:$0xff]  ;;  %v2300_v10 = vpack.c.bf16 %v189_v2, %v185_v1 }
  0xa6   :  { %2293 = vmatpush1.bf16.msra.mxu0 %v2292_v50  ;;  %v198_v7 = vld [vmem:[#allocation2 + $0x1a8] sm:$0xff]  ;;  %v200_v9 = vld [vmem:[#allocation2 + $0x1b8] sm:$0xff]  ;;  %v2556_v11 = vpack.c.bf16 %v191_v5, %v187_v3  ;;  %v193_v13 = vld [vmem:[#allocation2 + $0x180] sm:$0xff] }
  0xa7   :  { %2549 = vmatpush1.bf16.msra.mxu1 %v2548_v51  ;;  %2295 = vmatprep.subr.bf16.mxu0 %v2294_v52  ;;  %v2302_v12 = vpack.c.bf16 %v198_v7, %v194_v6  ;;  %v197_v14 = vld [vmem:[#allocation2 + $0x1a0] sm:$0xff]  ;;  %v195_v15 = vld [vmem:[#allocation2 + $0x190] sm:$0xff]  ;;  %v2558_v16 = vpack.c.bf16 %v200_v9, %v196_v8  ;;  %v202_v18 = vld [vmem:[#allocation2 + $0x1c8] sm:$0xff] }
  0xa8   :  { %2551 = vmatprep.subr.bf16.mxu1 %v2550_v56  ;;  %v199_v17 = vld [vmem:[#allocation2 + $0x1b0] sm:$0xff]  ;;  %v206_v19 = vld [vmem:[#allocation2 + $0x1e8] sm:$0xff]  ;;  %v204_v20 = vld [vmem:[#allocation2 + $0x1d8] sm:$0xff]  ;;  %v2304_v22 = vpack.c.bf16 %v197_v14, %v193_v13 }
  0xa9   :  { %v208_v21 = vld [vmem:[#allocation2 + $0x1f8] sm:$0xff]  ;;  %v2560_v23 = vpack.c.bf16 %v199_v17, %v195_v15  ;;  %v2306_v24 = vpack.c.bf16 %v206_v19, %v202_v18  ;;  %v201_v25 = vld [vmem:[#allocation2 + $0x1c0] sm:$0xff]  ;;  %v203_v27 = vld [vmem:[#allocation2 + $0x1d0] sm:$0xff] }
  0xaa   :  { %2297 = vmatpush1.bf16.msra.mxu0 %v2296_v62  ;;  %v205_v26 = vld [vmem:[#allocation2 + $0x1e0] sm:$0xff]  ;;  %v2562_v28 = vpack.c.bf16 %v208_v21, %v204_v20  ;;  %v207_v29 = vld [vmem:[#allocation2 + $0x1f0] sm:$0xff]  ;;  %v210_v30 = vld [vmem:[#allocation2 + $0x208] sm:$0xff] }
  0xab   :  { %2553 = vmatpush1.bf16.msra.mxu1 %v2552_v63  ;;  %2299 = vmatprep.subr.bf16.mxu0 %v2298_v0  ;;  %v214_v31 = vld [vmem:[#allocation2 + $0x228] sm:$0xff]  ;;  %v212_v32 = vld [vmem:[#allocation2 + $0x218] sm:$0xff]  ;;  %v2308_v34 = vpack.c.bf16 %v205_v26, %v201_v25  ;;  %v2564_v35 = vpack.c.bf16 %v207_v29, %v203_v27  ;;  %v209_v37 = vld [vmem:[#allocation2 + $0x200] sm:$0xff] }
  0xac   :  { %2555 = vmatprep.subr.bf16.mxu1 %v2554_v4  ;;  %v216_v33 = vld [vmem:[#allocation2 + $0x238] sm:$0xff]  ;;  %v2310_v36 = vpack.c.bf16 %v214_v31, %v210_v30  ;;  %v213_v38 = vld [vmem:[#allocation2 + $0x220] sm:$0xff]  ;;  %v211_v39 = vld [vmem:[#allocation2 + $0x210] sm:$0xff] }
  0xad   :  { %v2566_v40 = vpack.c.bf16 %v216_v33, %v212_v32  ;;  %v215_v41 = vld [vmem:[#allocation2 + $0x230] sm:$0xff]  ;;  %v218_v42 = vld [vmem:[#allocation2 + $0x248] sm:$0xff]  ;;  %v220_v44 = vld [vmem:[#allocation2 + $0x258] sm:$0xff]  ;;  %v2312_v46 = vpack.c.bf16 %v213_v38, %v209_v37 }
  0xae   :  { %2301 = vmatpush1.bf16.msra.mxu0 %v2300_v10  ;;  %v222_v43 = vld [vmem:[#allocation2 + $0x268] sm:$0xff]  ;;  %v224_v45 = vld [vmem:[#allocation2 + $0x278] sm:$0xff]  ;;  %v2568_v47 = vpack.c.bf16 %v215_v41, %v211_v39  ;;  %v217_v49 = vld [vmem:[#allocation2 + $0x240] sm:$0xff] }
  0xaf   :  { %2557 = vmatpush1.bf16.msra.mxu1 %v2556_v11  ;;  %2303 = vmatprep.subr.bf16.mxu0 %v2302_v12  ;;  %v2314_v48 = vpack.c.bf16 %v222_v43, %v218_v42  ;;  %v221_v50 = vld [vmem:[#allocation2 + $0x260] sm:$0xff]  ;;  %v219_v51 = vld [vmem:[#allocation2 + $0x250] sm:$0xff]  ;;  %v2570_v52 = vpack.c.bf16 %v224_v45, %v220_v44  ;;  %v226_v54 = vld [vmem:[#allocation2 + $0x288] sm:$0xff] }
  0xb0   :  { %2559 = vmatprep.subr.bf16.mxu1 %v2558_v16  ;;  %v223_v53 = vld [vmem:[#allocation2 + $0x270] sm:$0xff]  ;;  %v230_v55 = vld [vmem:[#allocation2 + $0x2a8] sm:$0xff]  ;;  %v228_v56 = vld [vmem:[#allocation2 + $0x298] sm:$0xff]  ;;  %v2316_v58 = vpack.c.bf16 %v221_v50, %v217_v49 }
  0xb1   :  { %v232_v57 = vld [vmem:[#allocation2 + $0x2b8] sm:$0xff]  ;;  %v2572_v59 = vpack.c.bf16 %v223_v53, %v219_v51  ;;  %v2318_v60 = vpack.c.bf16 %v230_v55, %v226_v54  ;;  %v225_v61 = vld [vmem:[#allocation2 + $0x280] sm:$0xff]  ;;  %v227_v63 = vld [vmem:[#allocation2 + $0x290] sm:$0xff] }
  0xb2   :  { %2305 = vmatpush1.bf16.msra.mxu0 %v2304_v22  ;;  %v229_v62 = vld [vmem:[#allocation2 + $0x2a0] sm:$0xff]  ;;  %v2574_v0 = vpack.c.bf16 %v232_v57, %v228_v56  ;;  %v231_v1 = vld [vmem:[#allocation2 + $0x2b0] sm:$0xff]  ;;  %v234_v2 = vld [vmem:[#allocation2 + $0x2c8] sm:$0xff] }
  0xb3   :  { %2561 = vmatpush1.bf16.msra.mxu1 %v2560_v23  ;;  %2307 = vmatprep.subr.bf16.mxu0 %v2306_v24  ;;  %v238_v3 = vld [vmem:[#allocation2 + $0x2e8] sm:$0xff]  ;;  %v236_v4 = vld [vmem:[#allocation2 + $0x2d8] sm:$0xff]  ;;  %v2320_v6 = vpack.c.bf16 %v229_v62, %v225_v61  ;;  %v233_v7 = vld [vmem:[#allocation2 + $0x2c0] sm:$0xff]  ;;  %v2576_v8 = vpack.c.bf16 %v231_v1, %v227_v63 }
  0xb4   :  { %2563 = vmatprep.subr.bf16.mxu1 %v2562_v28  ;;  %v240_v5 = vld [vmem:[#allocation2 + $0x2f8] sm:$0xff]  ;;  %v2322_v9 = vpack.c.bf16 %v238_v3, %v234_v2  ;;  %v237_v10 = vld [vmem:[#allocation2 + $0x2e0] sm:$0xff]  ;;  %v235_v11 = vld [vmem:[#allocation2 + $0x2d0] sm:$0xff] }
  0xb5   :  { %v239_v12 = vld [vmem:[#allocation2 + $0x2f0] sm:$0xff]  ;;  %v2578_v13 = vpack.c.bf16 %v240_v5, %v236_v4  ;;  %v242_v14 = vld [vmem:[#allocation2 + $0x308] sm:$0xff]  ;;  %v244_v17 = vld [vmem:[#allocation2 + $0x318] sm:$0xff]  ;;  %v2324_v19 = vpack.c.bf16 %v237_v10, %v233_v7 }
  0xb6   :  { %2309 = vmatpush1.bf16.msra.mxu0 %v2308_v34  ;;  %v246_v15 = vld [vmem:[#allocation2 + $0x328] sm:$0xff]  ;;  %v248_v18 = vld [vmem:[#allocation2 + $0x338] sm:$0xff]  ;;  %v2580_v20 = vpack.c.bf16 %v239_v12, %v235_v11  ;;  %v241_v22 = vld [vmem:[#allocation2 + $0x300] sm:$0xff] }
  0xb7   :  { %2565 = vmatpush1.bf16.msra.mxu1 %v2564_v35  ;;  %2311 = vmatprep.subr.bf16.mxu0 %v2310_v36  ;;  %v138_v16 = vld [vmem:[%s3657_s0 + $0x8] sm:$0x3f]  ;;  %v2326_v21 = vpack.c.bf16 %v246_v15, %v242_v14  ;;  %v245_v23 = vld [vmem:[#allocation2 + $0x320] sm:$0xff]  ;;  %v243_v24 = vld [vmem:[#allocation2 + $0x310] sm:$0xff]  ;;  %v2582_v25 = vpack.c.bf16 %v248_v18, %v244_v17 }
  0xb8   :  { %2567 = vmatprep.subr.bf16.mxu1 %v2566_v40  ;;  %743 = vmatprep.mubr.f32.mxu0 %v138_v16  ;;  %v247_v26 = vld [vmem:[#allocation2 + $0x330] sm:$0xff]  ;;  %v250_v27 = vld [vmem:[#allocation2 + $0x348] sm:$0xff]  ;;  %v252_v29 = vld [vmem:[#allocation2 + $0x358] sm:$0xff]  ;;  %v2328_v31 = vpack.c.bf16 %v245_v23, %v241_v22 }
  0xb9   :  { %1027 = vmatprep.mubr.f32.mxu1 %v138_v16  ;;  %v254_v28 = vld [vmem:[#allocation2 + $0x368] sm:$0xff]  ;;  %v256_v30 = vld [vmem:[#allocation2 + $0x378] sm:$0xff]  ;;  %v2584_v32 = vpack.c.bf16 %v247_v26, %v243_v24  ;;  %v249_v34 = vld [vmem:[#allocation2 + $0x340] sm:$0xff] }
  0xba   :  { %2313 = vmatpush1.bf16.msra.mxu0 %v2312_v46  ;;  %v2330_v33 = vpack.c.bf16 %v254_v28, %v250_v27  ;;  %v253_v35 = vld [vmem:[#allocation2 + $0x360] sm:$0xff]  ;;  %v251_v36 = vld [vmem:[#allocation2 + $0x350] sm:$0xff]  ;;  %v2586_v37 = vpack.c.bf16 %v256_v30, %v252_v29  ;;  %v258_v39 = vld [vmem:[#allocation2 + $0x388] sm:$0xff] }
  0xbb   :  { %2569 = vmatpush1.bf16.msra.mxu1 %v2568_v47  ;;  %2315 = vmatprep.subr.bf16.mxu0 %v2314_v48  ;;  %v255_v38 = vld [vmem:[#allocation2 + $0x370] sm:$0xff]  ;;  %v262_v40 = vld [vmem:[#allocation2 + $0x3a8] sm:$0xff]  ;;  %v260_v41 = vld [vmem:[#allocation2 + $0x398] sm:$0xff]  ;;  %v2332_v43 = vpack.c.bf16 %v253_v35, %v249_v34 }
  0xbc   :  { %2571 = vmatprep.subr.bf16.mxu1 %v2570_v52  ;;  %v264_v42 = vld [vmem:[#allocation2 + $0x3b8] sm:$0xff]  ;;  %v2588_v44 = vpack.c.bf16 %v255_v38, %v251_v36  ;;  %v2334_v45 = vpack.c.bf16 %v262_v40, %v258_v39  ;;  %v257_v46 = vld [vmem:[#allocation2 + $0x380] sm:$0xff]  ;;  %v259_v48 = vld [vmem:[#allocation2 + $0x390] sm:$0xff] }
  0xbd   :  { %v261_v47 = vld [vmem:[#allocation2 + $0x3a0] sm:$0xff]  ;;  %v2590_v49 = vpack.c.bf16 %v264_v42, %v260_v41  ;;  %v263_v50 = vld [vmem:[#allocation2 + $0x3b0] sm:$0xff]  ;;  %v266_v51 = vld [vmem:[#allocation2 + $0x3c8] sm:$0xff] }
  0xbe   :  { %2317 = vmatpush1.bf16.msra.mxu0 %v2316_v58  ;;  %v270_v52 = vld [vmem:[#allocation2 + $0x3e8] sm:$0xff]  ;;  %v268_v53 = vld [vmem:[#allocation2 + $0x3d8] sm:$0xff]  ;;  %v2336_v55 = vpack.c.bf16 %v261_v47, %v257_v46  ;;  %v2592_v56 = vpack.c.bf16 %v263_v50, %v259_v48  ;;  %v265_v58 = vld [vmem:[#allocation2 + $0x3c0] sm:$0xff] }
  0xbf   :  { %2573 = vmatpush1.bf16.msra.mxu1 %v2572_v59  ;;  %2319 = vmatprep.subr.bf16.mxu0 %v2318_v60  ;;  %v272_v54 = vld [vmem:[#allocation2 + $0x3f8] sm:$0xff]  ;;  %v2338_v57 = vpack.c.bf16 %v270_v52, %v266_v51  ;;  %v269_v59 = vld [vmem:[#allocation2 + $0x3e0] sm:$0xff]  ;;  %v267_v60 = vld [vmem:[#allocation2 + $0x3d0] sm:$0xff] }
  0xc0   :  { %2575 = vmatprep.subr.bf16.mxu1 %v2574_v0  ;;  %v2594_v61 = vpack.c.bf16 %v272_v54, %v268_v53  ;;  %v271_v62 = vld [vmem:[#allocation2 + $0x3f0] sm:$0xff]  ;;  %v274_v63 = vld [vmem:[#allocation2 + $0x408] sm:$0xff]  ;;  %v276_v1 = vld [vmem:[#allocation2 + $0x418] sm:$0xff]  ;;  %v2340_v3 = vpack.c.bf16 %v269_v59, %v265_v58 }
  0xc1   :  { %v278_v0 = vld [vmem:[#allocation2 + $0x428] sm:$0xff]  ;;  %v280_v2 = vld [vmem:[#allocation2 + $0x438] sm:$0xff]  ;;  %v2596_v4 = vpack.c.bf16 %v271_v62, %v267_v60  ;;  %v277_v7 = vld [vmem:[#allocation2 + $0x420] sm:$0xff] }
  0xc2   :  { %2321 = vmatpush1.bf16.msra.mxu0 %v2320_v6  ;;  %v2342_v5 = vpack.c.bf16 %v278_v0, %v274_v63  ;;  %v273_v6 = vld [vmem:[#allocation2 + $0x400] sm:$0xff]  ;;  %v279_v10 = vld [vmem:[#allocation2 + $0x430] sm:$0xff]  ;;  %v282_v11 = vld [vmem:[#allocation2 + $0x448] sm:$0xff] }
  0xc3   :  { %2577 = vmatpush1.bf16.msra.mxu1 %v2576_v8  ;;  %2323 = vmatprep.subr.bf16.mxu0 %v2322_v9  ;;  %v275_v8 = vld [vmem:[#allocation2 + $0x410] sm:$0xff]  ;;  %v2598_v9 = vpack.c.bf16 %v280_v2, %v276_v1  ;;  %v286_v12 = vld [vmem:[#allocation2 + $0x468] sm:$0xff]  ;;  %v288_v14 = vld [vmem:[#allocation2 + $0x478] sm:$0xff]  ;;  %v2344_v16 = vpack.c.bf16 %v277_v7, %v273_v6 }
  0xc4   :  { %2579 = vmatprep.subr.bf16.mxu1 %v2578_v13  ;;  %v284_v13 = vld [vmem:[#allocation2 + $0x458] sm:$0xff]  ;;  %v137_v15 = vld [vmem:[%s3657_s0] sm:$0x3f]  ;;  %v2600_v17 = vpack.c.bf16 %v279_v10, %v275_v8  ;;  %v2346_v18 = vpack.c.bf16 %v286_v12, %v282_v11  ;;  %v287_v23 = vld [vmem:[#allocation2 + $0x470] sm:$0xff] }
  0xc5   :  { %v2602_v22 = vpack.c.bf16 %v288_v14, %v284_v13  ;;  %v290_v24 = vld [vmem:[#allocation2 + $0x488] sm:$0xff]  ;;  %v292_v26 = vld [vmem:[#allocation2 + $0x498] sm:$0xff]  ;;  %v295_v35 = vld [vmem:[#allocation2 + $0x4b0] sm:$0xff] }
  0xc6   :  { %2325 = vmatpush1.bf16.msra.mxu0 %v2324_v19  ;;  %v281_v19 = vld [vmem:[#allocation2 + $0x440] sm:$0xff]  ;;  %v296_v27 = vld [vmem:[#allocation2 + $0x4b8] sm:$0xff]  ;;  %v298_v36 = vld [vmem:[#allocation2 + $0x4c8] sm:$0xff] }
  0xc7   :  { %2581 = vmatpush1.bf16.msra.mxu1 %v2580_v20  ;;  %2327 = vmatprep.subr.bf16.mxu0 %v2326_v21  ;;  %v285_v20 = vld [vmem:[#allocation2 + $0x460] sm:$0xff]  ;;  %v283_v21 = vld [vmem:[#allocation2 + $0x450] sm:$0xff]  ;;  %v2606_v34 = vpack.c.bf16 %v296_v27, %v292_v26  ;;  %v300_v38 = vld [vmem:[#allocation2 + $0x4d8] sm:$0xff] }
  0xc8   :  { %2583 = vmatprep.subr.bf16.mxu1 %v2582_v25  ;;  %v294_v25 = vld [vmem:[#allocation2 + $0x4a8] sm:$0xff]  ;;  %v2348_v28 = vpack.c.bf16 %v285_v20, %v281_v19  ;;  %v2604_v29 = vpack.c.bf16 %v287_v23, %v283_v21  ;;  %v304_v39 = vld [vmem:[#allocation2 + $0x4f8] sm:$0xff]  ;;  %v303_v47 = vld [vmem:[#allocation2 + $0x4f0] sm:$0xff] }
  0xc9   :  { %v2350_v30 = vpack.c.bf16 %v294_v25, %v290_v24  ;;  %v2610_v46 = vpack.c.bf16 %v304_v39, %v300_v38  ;;  %v306_v48 = vld [vmem:[#allocation2 + $0x508] sm:$0xff]  ;;  %v308_v50 = vld [vmem:[#allocation2 + $0x518] sm:$0xff]  ;;  %v311_v59 = vld [vmem:[#allocation2 + $0x530] sm:$0xff] }
  0xca   :  { %2329 = vmatpush1.bf16.msra.mxu0 %v2328_v31  ;;  %v289_v31 = vld [vmem:[#allocation2 + $0x480] sm:$0xff]  ;;  %v312_v51 = vld [vmem:[#allocation2 + $0x538] sm:$0xff]  ;;  %v314_v60 = vld [vmem:[#allocation2 + $0x548] sm:$0xff] }
  0xcb   :  { %2585 = vmatpush1.bf16.msra.mxu1 %v2584_v32  ;;  %2331 = vmatprep.subr.bf16.mxu0 %v2330_v33  ;;  %v293_v32 = vld [vmem:[#allocation2 + $0x4a0] sm:$0xff]  ;;  %v291_v33 = vld [vmem:[#allocation2 + $0x490] sm:$0xff]  ;;  %v2614_v58 = vpack.c.bf16 %v312_v51, %v308_v50  ;;  %v316_v62 = vld [vmem:[#allocation2 + $0x558] sm:$0xff] }
  0xcc   :  { %2587 = vmatprep.subr.bf16.mxu1 %v2586_v37  ;;  %v302_v37 = vld [vmem:[#allocation2 + $0x4e8] sm:$0xff]  ;;  %v2352_v40 = vpack.c.bf16 %v293_v32, %v289_v31  ;;  %v2608_v41 = vpack.c.bf16 %v295_v35, %v291_v33  ;;  %v320_v63 = vld [vmem:[#allocation2 + $0x578] sm:$0xff]  ;;  %v319_v7 = vld [vmem:[#allocation2 + $0x570] sm:$0xff] }
  0xcd   :  { %v2354_v42 = vpack.c.bf16 %v302_v37, %v298_v36  ;;  %v2618_v6 = vpack.c.bf16 %v320_v63, %v316_v62  ;;  %v322_v8 = vld [vmem:[#allocation2 + $0x588] sm:$0xff]  ;;  %v324_v10 = vld [vmem:[#allocation2 + $0x598] sm:$0xff]  ;;  %v321_v13 = vld [vmem:[#allocation2 + $0x580] sm:$0xff] }
  0xce   :  { %2333 = vmatpush1.bf16.msra.mxu0 %v2332_v43  ;;  %v297_v43 = vld [vmem:[#allocation2 + $0x4c0] sm:$0xff]  ;;  %v328_v11 = vld [vmem:[#allocation2 + $0x5b8] sm:$0xff]  ;;  %v330_v20 = vld [vmem:[#allocation2 + $0x5c8] sm:$0xff] }
  0xcf   :  { %2589 = vmatpush1.bf16.msra.mxu1 %v2588_v44  ;;  %2335 = vmatprep.subr.bf16.mxu0 %v2334_v45  ;;  %v301_v44 = vld [vmem:[#allocation2 + $0x4e0] sm:$0xff]  ;;  %v299_v45 = vld [vmem:[#allocation2 + $0x4d0] sm:$0xff]  ;;  %v2622_v19 = vpack.c.bf16 %v328_v11, %v324_v10  ;;  %v334_v21 = vld [vmem:[#allocation2 + $0x5e8] sm:$0xff] }
  0xd0   :  { %2591 = vmatprep.subr.bf16.mxu1 %v2590_v49  ;;  %v310_v49 = vld [vmem:[#allocation2 + $0x528] sm:$0xff]  ;;  %v2356_v52 = vpack.c.bf16 %v301_v44, %v297_v43  ;;  %v2612_v53 = vpack.c.bf16 %v303_v47, %v299_v45  ;;  %v332_v23 = vld [vmem:[#allocation2 + $0x5d8] sm:$0xff]  ;;  %v2370_v27 = vpack.c.bf16 %v334_v21, %v330_v20  ;;  %v335_v32 = vld [vmem:[#allocation2 + $0x5f0] sm:$0xff] }
  0xd1   :  { %v2358_v54 = vpack.c.bf16 %v310_v49, %v306_v48  ;;  %v336_v24 = vld [vmem:[#allocation2 + $0x5f8] sm:$0xff]  ;;  %v338_v33 = vld [vmem:[#allocation2 + $0x608] sm:$0xff]  ;;  %v343_v44 = vld [vmem:[#allocation2 + $0x630] sm:$0xff] }
  0xd2   :  { %2337 = vmatpush1.bf16.msra.mxu0 %v2336_v55  ;;  %v305_v55 = vld [vmem:[#allocation2 + $0x500] sm:$0xff]  ;;  %v2626_v31 = vpack.c.bf16 %v336_v24, %v332_v23  ;;  %v340_v35 = vld [vmem:[#allocation2 + $0x618] sm:$0xff]  ;;  %v346_v45 = vld [vmem:[#allocation2 + $0x648] sm:$0xff] }
  0xd3   :  { %2593 = vmatpush1.bf16.msra.mxu1 %v2592_v56  ;;  %2339 = vmatprep.subr.bf16.mxu0 %v2338_v57  ;;  %v309_v56 = vld [vmem:[#allocation2 + $0x520] sm:$0xff]  ;;  %v307_v57 = vld [vmem:[#allocation2 + $0x510] sm:$0xff]  ;;  %v344_v36 = vld [vmem:[#allocation2 + $0x638] sm:$0xff] }
  0xd4   :  { %2595 = vmatprep.subr.bf16.mxu1 %v2594_v61  ;;  %v318_v61 = vld [vmem:[#allocation2 + $0x568] sm:$0xff]  ;;  %v2360_v0 = vpack.c.bf16 %v309_v56, %v305_v55  ;;  %v2616_v1 = vpack.c.bf16 %v311_v59, %v307_v57  ;;  %v2630_v43 = vpack.c.bf16 %v344_v36, %v340_v35  ;;  %v348_v47 = vld [vmem:[#allocation2 + $0x658] sm:$0xff]  ;;  %v351_v56 = vld [vmem:[#allocation2 + $0x670] sm:$0xff] }
  0xd5   :  { %v2362_v2 = vpack.c.bf16 %v318_v61, %v314_v60  ;;  %v352_v48 = vld [vmem:[#allocation2 + $0x678] sm:$0xff]  ;;  %v354_v57 = vld [vmem:[#allocation2 + $0x688] sm:$0xff]  ;;  %v369_v24 = vld [vmem:[#allocation2 + $0x700] sm:$0xff] }
  0xd6   :  { %2341 = vmatpush1.bf16.msra.mxu0 %v2340_v3  ;;  %v313_v3 = vld [vmem:[#allocation2 + $0x540] sm:$0xff]  ;;  %v2634_v55 = vpack.c.bf16 %v352_v48, %v348_v47  ;;  %v356_v59 = vld [vmem:[#allocation2 + $0x698] sm:$0xff] }
  0xd7   :  { %2597 = vmatpush1.bf16.msra.mxu1 %v2596_v4  ;;  %2343 = vmatprep.subr.bf16.mxu0 %v2342_v5  ;;  %v317_v4 = vld [vmem:[#allocation2 + $0x560] sm:$0xff]  ;;  %v315_v5 = vld [vmem:[#allocation2 + $0x550] sm:$0xff]  ;;  %v360_v60 = vld [vmem:[#allocation2 + $0x6b8] sm:$0xff] }
  0xd8   :  { %2599 = vmatprep.subr.bf16.mxu1 %v2598_v9  ;;  %v326_v9 = vld [vmem:[#allocation2 + $0x5a8] sm:$0xff]  ;;  %v2364_v12 = vpack.c.bf16 %v317_v4, %v313_v3  ;;  %v2620_v14 = vpack.c.bf16 %v319_v7, %v315_v5  ;;  %v2638_v3 = vpack.c.bf16 %v360_v60, %v356_v59  ;;  %v359_v4 = vld [vmem:[#allocation2 + $0x6b0] sm:$0xff]  ;;  %v364_v7 = vld [vmem:[#allocation2 + $0x6d8] sm:$0xff] }
  0xd9   :  { %744 = vmatmul.mubr.f32.vlgmr.msra.gmra.mrb[0].mxu0 %v137_v15  ;;  %v362_v5 = vld [vmem:[#allocation2 + $0x6c8] sm:$0xff]  ;;  %v376_v20 = vld [vmem:[#allocation2 + $0x738] sm:$0xff]  ;;  %v377_v36 = vld [vmem:[#allocation2 + $0x740] sm:$0xff] }
  0xda   :  { %2345 = vmatpush1.bf16.msra.mxu0 %v2344_v16  ;;  %1028 = vmatmul.mubr.f32.vlgmr.msra.gmra.mrb[0].mxu1 %v137_v15  ;;  %v2366_v15 = vpack.c.bf16 %v326_v9, %v322_v8  ;;  %v325_v16 = vld [vmem:[#allocation2 + $0x5a0] sm:$0xff]  ;;  %v368_v8 = vld [vmem:[#allocation2 + $0x6f8] sm:$0xff] }
  0xdb   :  { %2601 = vmatpush1.bf16.msra.mxu1 %v2600_v17  ;;  %2347 = vmatprep.subr.bf16.mxu0 %v2346_v18  ;;  %v323_v17 = vld [vmem:[#allocation2 + $0x590] sm:$0xff]  ;;  %v2368_v25 = vpack.c.bf16 %v325_v16, %v321_v13  ;;  %v365_v13 = vld [vmem:[#allocation2 + $0x6e0] sm:$0xff] }
  0xdc   :  { %2603 = vmatprep.subr.bf16.mxu1 %v2602_v22  ;;  %v327_v18 = vld [vmem:[#allocation2 + $0x5b0] sm:$0xff]  ;;  %v140_v22 = vld [vmem:[%s3657_s0 + $0x18] sm:$0x3f]  ;;  %v385_v48 = vld [vmem:[#allocation2 + $0x780] sm:$0xff] }
  0xdd   :  { %814 = vmatprep.mubr.f32.mxu0 %v140_v22  ;;  %1098 = vmatprep.mubr.f32.mxu1 %v140_v22  ;;  %v2624_v26 = vpack.c.bf16 %v327_v18, %v323_v17  ;;  %v367_v16 = vld [vmem:[#allocation2 + $0x6f0] sm:$0xff]  ;;  %v370_v17 = vld [vmem:[#allocation2 + $0x708] sm:$0xff]  ;;  %v393_v60 = vld [vmem:[#allocation2 + $0x7c0] sm:$0xff] }
  0xde   :  { %2349 = vmatpush1.bf16.msra.mxu0 %v2348_v28  ;;  %v329_v28 = vld [vmem:[#allocation2 + $0x5c0] sm:$0xff]  ;;  %v374_v18 = vld [vmem:[#allocation2 + $0x728] sm:$0xff] }
  0xdf   :  { %2605 = vmatpush1.bf16.msra.mxu1 %v2604_v29  ;;  %2351 = vmatprep.subr.bf16.mxu0 %v2350_v30  ;;  %v333_v29 = vld [vmem:[#allocation2 + $0x5e0] sm:$0xff]  ;;  %v331_v30 = vld [vmem:[#allocation2 + $0x5d0] sm:$0xff]  ;;  %v2390_v23 = vpack.c.bf16 %v374_v18, %v370_v17 }
  0xe0   :  { %2607 = vmatprep.subr.bf16.mxu1 %v2606_v34  ;;  %v342_v34 = vld [vmem:[#allocation2 + $0x628] sm:$0xff]  ;;  %v2372_v37 = vpack.c.bf16 %v333_v29, %v329_v28  ;;  %v2628_v38 = vpack.c.bf16 %v335_v32, %v331_v30  ;;  %v375_v28 = vld [vmem:[#allocation2 + $0x730] sm:$0xff]  ;;  %v384_v32 = vld [vmem:[#allocation2 + $0x778] sm:$0xff] }
  0xe1   :  { %v2374_v39 = vpack.c.bf16 %v342_v34, %v338_v33  ;;  %v378_v29 = vld [vmem:[#allocation2 + $0x748] sm:$0xff]  ;;  %v139_v17 = vld [vmem:[%s3657_s0 + $0x10] sm:$0x3f] }
  0xe2   :  { %2353 = vmatpush1.bf16.msra.mxu0 %v2352_v40  ;;  %v337_v40 = vld [vmem:[#allocation2 + $0x600] sm:$0xff]  ;;  %v382_v30 = vld [vmem:[#allocation2 + $0x768] sm:$0xff] }
  0xe3   :  { %2609 = vmatpush1.bf16.msra.mxu1 %v2608_v41  ;;  %2355 = vmatprep.subr.bf16.mxu0 %v2354_v42  ;;  %v341_v41 = vld [vmem:[#allocation2 + $0x620] sm:$0xff]  ;;  %v339_v42 = vld [vmem:[#allocation2 + $0x610] sm:$0xff]  ;;  %v2394_v35 = vpack.c.bf16 %v382_v30, %v378_v29  ;;  %v424_v29 = vld [vmem:[#allocation2 + $0x8b8] sm:$0xff] }
  0xe4   :  { %2611 = vmatprep.subr.bf16.mxu1 %v2610_v46  ;;  %v350_v46 = vld [vmem:[#allocation2 + $0x668] sm:$0xff]  ;;  %v2376_v49 = vpack.c.bf16 %v341_v41, %v337_v40  ;;  %v2632_v50 = vpack.c.bf16 %v343_v44, %v339_v42  ;;  %v383_v40 = vld [vmem:[#allocation2 + $0x770] sm:$0xff]  ;;  %v392_v44 = vld [vmem:[#allocation2 + $0x7b8] sm:$0xff] }
  0xe5   :  { %v2378_v51 = vpack.c.bf16 %v350_v46, %v346_v45  ;;  %v386_v41 = vld [vmem:[#allocation2 + $0x788] sm:$0xff] }
  0xe6   :  { %2357 = vmatpush1.bf16.msra.mxu0 %v2356_v52  ;;  %v345_v52 = vld [vmem:[#allocation2 + $0x640] sm:$0xff]  ;;  %v390_v42 = vld [vmem:[#allocation2 + $0x7a8] sm:$0xff] }
  0xe7   :  { %2613 = vmatpush1.bf16.msra.mxu1 %v2612_v53  ;;  %2359 = vmatprep.subr.bf16.mxu0 %v2358_v54  ;;  %v349_v53 = vld [vmem:[#allocation2 + $0x660] sm:$0xff]  ;;  %v347_v54 = vld [vmem:[#allocation2 + $0x650] sm:$0xff]  ;;  %v2398_v47 = vpack.c.bf16 %v390_v42, %v386_v41  ;;  %v142_v30 = vld [vmem:[%s3657_s0 + $0x28] sm:$0x3f] }
  0xe8   :  { %2615 = vmatprep.subr.bf16.mxu1 %v2614_v58  ;;  %v358_v58 = vld [vmem:[#allocation2 + $0x6a8] sm:$0xff]  ;;  %v2380_v61 = vpack.c.bf16 %v349_v53, %v345_v52  ;;  %v2636_v62 = vpack.c.bf16 %v351_v56, %v347_v54  ;;  %v391_v52 = vld [vmem:[#allocation2 + $0x7b0] sm:$0xff]  ;;  %v400_v56 = vld [vmem:[#allocation2 + $0x7f8] sm:$0xff] }
  0xe9   :  { %v2382_v63 = vpack.c.bf16 %v358_v58, %v354_v57  ;;  %v394_v53 = vld [vmem:[#allocation2 + $0x7c8] sm:$0xff]  ;;  %v428_v41 = vld [vmem:[#allocation2 + $0x8d8] sm:$0xff] }
  0xea   :  { %2361 = vmatpush1.bf16.msra.mxu0 %v2360_v0  ;;  %v353_v0 = vld [vmem:[#allocation2 + $0x680] sm:$0xff]  ;;  %v398_v54 = vld [vmem:[#allocation2 + $0x7e8] sm:$0xff]  ;;  %v432_v42 = vld [vmem:[#allocation2 + $0x8f8] sm:$0xff] }
  0xeb   :  { %2617 = vmatpush1.bf16.msra.mxu1 %v2616_v1  ;;  %2363 = vmatprep.subr.bf16.mxu0 %v2362_v2  ;;  %v357_v1 = vld [vmem:[#allocation2 + $0x6a0] sm:$0xff]  ;;  %v355_v2 = vld [vmem:[#allocation2 + $0x690] sm:$0xff]  ;;  %v2402_v59 = vpack.c.bf16 %v398_v54, %v394_v53  ;;  %v436_v53 = vld [vmem:[#allocation2 + $0x918] sm:$0xff] }
  0xec   :  { %2619 = vmatprep.subr.bf16.mxu1 %v2618_v6  ;;  %v366_v6 = vld [vmem:[#allocation2 + $0x6e8] sm:$0xff]  ;;  %v2384_v9 = vpack.c.bf16 %v357_v1, %v353_v0  ;;  %v2640_v10 = vpack.c.bf16 %v359_v4, %v355_v2  ;;  %v399_v0 = vld [vmem:[#allocation2 + $0x7f0] sm:$0xff]  ;;  %v408_v4 = vld [vmem:[#allocation2 + $0x838] sm:$0xff] }
  0xed   :  { %v2386_v11 = vpack.c.bf16 %v366_v6, %v362_v5  ;;  %v402_v1 = vld [vmem:[#allocation2 + $0x808] sm:$0xff]  ;;  %v440_v54 = vld [vmem:[#allocation2 + $0x938] sm:$0xff] }
  0xee   :  { %2365 = vmatpush1.bf16.msra.mxu0 %v2364_v12  ;;  %v361_v12 = vld [vmem:[#allocation2 + $0x6c0] sm:$0xff]  ;;  %v406_v2 = vld [vmem:[#allocation2 + $0x828] sm:$0xff] }
  0xef   :  { %2621 = vmatpush1.bf16.msra.mxu1 %v2620_v14  ;;  %2367 = vmatprep.subr.bf16.mxu0 %v2366_v15  ;;  %v363_v14 = vld [vmem:[#allocation2 + $0x6d0] sm:$0xff]  ;;  %v2642_v15 = vpack.c.bf16 %v368_v8, %v364_v7  ;;  %v2388_v21 = vpack.c.bf16 %v365_v13, %v361_v12  ;;  %v2406_v7 = vpack.c.bf16 %v406_v2, %v402_v1  ;;  %v401_v8 = vld [vmem:[#allocation2 + $0x800] sm:$0xff]  ;;  %v410_v13 = vld [vmem:[#allocation2 + $0x848] sm:$0xff] }
  0xf0   :  { %2623 = vmatprep.subr.bf16.mxu1 %v2622_v19  ;;  %v372_v19 = vld [vmem:[#allocation2 + $0x718] sm:$0xff]  ;;  %v2644_v22 = vpack.c.bf16 %v367_v16, %v363_v14  ;;  %v407_v12 = vld [vmem:[#allocation2 + $0x830] sm:$0xff]  ;;  %v414_v14 = vld [vmem:[#allocation2 + $0x868] sm:$0xff] }
  0xf1   :  { %v416_v16 = vld [vmem:[#allocation2 + $0x878] sm:$0xff] }
  0xf2   :  { %2369 = vmatpush1.bf16.msra.mxu0 %v2368_v25  ;;  %v373_v25 = vld [vmem:[#allocation2 + $0x720] sm:$0xff]  ;;  %v444_v1 = vld [vmem:[#allocation2 + $0x958] sm:$0xff] }
  0xf3   :  { %2625 = vmatpush1.bf16.msra.mxu1 %v2624_v26  ;;  %2371 = vmatprep.subr.bf16.mxu0 %v2370_v27  ;;  %v371_v26 = vld [vmem:[#allocation2 + $0x710] sm:$0xff]  ;;  %v2646_v27 = vpack.c.bf16 %v376_v20, %v372_v19  ;;  %v2392_v33 = vpack.c.bf16 %v373_v25, %v369_v24  ;;  %v2410_v20 = vpack.c.bf16 %v414_v14, %v410_v13  ;;  %v448_v2 = vld [vmem:[#allocation2 + $0x978] sm:$0xff] }
  0xf4   :  { %2627 = vmatprep.subr.bf16.mxu1 %v2626_v31  ;;  %v380_v31 = vld [vmem:[#allocation2 + $0x758] sm:$0xff]  ;;  %v2648_v34 = vpack.c.bf16 %v375_v28, %v371_v26  ;;  %v415_v25 = vld [vmem:[#allocation2 + $0x870] sm:$0xff]  ;;  %v418_v26 = vld [vmem:[#allocation2 + $0x888] sm:$0xff] }
  0xf5   :  { %v420_v28 = vld [vmem:[#allocation2 + $0x898] sm:$0xff] }
  0xf6   :  { %2373 = vmatpush1.bf16.msra.mxu0 %v2372_v37  ;;  %v381_v37 = vld [vmem:[#allocation2 + $0x760] sm:$0xff]  ;;  %v452_v13 = vld [vmem:[#allocation2 + $0x998] sm:$0xff] }
  0xf7   :  { %2629 = vmatpush1.bf16.msra.mxu1 %v2628_v38  ;;  %2375 = vmatprep.subr.bf16.mxu0 %v2374_v39  ;;  %v379_v38 = vld [vmem:[#allocation2 + $0x750] sm:$0xff]  ;;  %v2650_v39 = vpack.c.bf16 %v384_v32, %v380_v31  ;;  %v2396_v45 = vpack.c.bf16 %v381_v37, %v377_v36  ;;  %v2670_v37 = vpack.c.bf16 %v424_v29, %v420_v28  ;;  %v456_v14 = vld [vmem:[#allocation2 + $0x9b8] sm:$0xff] }
  0xf8   :  { %2631 = vmatprep.subr.bf16.mxu1 %v2630_v43  ;;  %v388_v43 = vld [vmem:[#allocation2 + $0x798] sm:$0xff]  ;;  %v2652_v46 = vpack.c.bf16 %v383_v40, %v379_v38  ;;  %v419_v36 = vld [vmem:[#allocation2 + $0x890] sm:$0xff]  ;;  %v430_v40 = vld [vmem:[#allocation2 + $0x8e8] sm:$0xff] }
  0xf9   :  { %v423_v38 = vld [vmem:[#allocation2 + $0x8b0] sm:$0xff] }
  0xfa   :  { %2377 = vmatpush1.bf16.msra.mxu0 %v2376_v49  ;;  %v389_v49 = vld [vmem:[#allocation2 + $0x7a0] sm:$0xff] }
  0xfb   :  { %2633 = vmatpush1.bf16.msra.mxu1 %v2632_v50  ;;  %2379 = vmatprep.subr.bf16.mxu0 %v2378_v51  ;;  %v387_v50 = vld [vmem:[#allocation2 + $0x790] sm:$0xff]  ;;  %v2654_v51 = vpack.c.bf16 %v392_v44, %v388_v43  ;;  %v2400_v57 = vpack.c.bf16 %v389_v49, %v385_v48  ;;  %v2672_v44 = vpack.c.bf16 %v423_v38, %v419_v36  ;;  %v470_v36 = vld [vmem:[#allocation2 + $0xa28] sm:$0xff]  ;;  %v472_v38 = vld [vmem:[#allocation2 + $0xa38] sm:$0xff] }
  0xfc   :  { %2635 = vmatprep.subr.bf16.mxu1 %v2634_v55  ;;  %v396_v55 = vld [vmem:[#allocation2 + $0x7d8] sm:$0xff]  ;;  %v2656_v58 = vpack.c.bf16 %v391_v52, %v387_v50  ;;  %v427_v48 = vld [vmem:[#allocation2 + $0x8d0] sm:$0xff]  ;;  %v2674_v49 = vpack.c.bf16 %v432_v42, %v428_v41  ;;  %v438_v52 = vld [vmem:[#allocation2 + $0x928] sm:$0xff] }
  0xfd   :  { %v431_v50 = vld [vmem:[#allocation2 + $0x8f0] sm:$0xff]  ;;  %v465_v42 = vld [vmem:[#allocation2 + $0xa00] sm:$0xff] }
  0xfe   :  { %2381 = vmatpush1.bf16.msra.mxu0 %v2380_v61  ;;  %v397_v61 = vld [vmem:[#allocation2 + $0x7e0] sm:$0xff] }
  0xff   :  { %2637 = vmatpush1.bf16.msra.mxu1 %v2636_v62  ;;  %2383 = vmatprep.subr.bf16.mxu0 %v2382_v63  ;;  %v395_v62 = vld [vmem:[#allocation2 + $0x7d0] sm:$0xff]  ;;  %v2658_v63 = vpack.c.bf16 %v400_v56, %v396_v55  ;;  %v2404_v5 = vpack.c.bf16 %v397_v61, %v393_v60  ;;  %v2676_v56 = vpack.c.bf16 %v431_v50, %v427_v48  ;;  %v478_v48 = vld [vmem:[#allocation2 + $0xa68] sm:$0xff]  ;;  %v480_v50 = vld [vmem:[#allocation2 + $0xa78] sm:$0xff] }
 0x100   :  { %2639 = vmatprep.subr.bf16.mxu1 %v2638_v3  ;;  %v404_v3 = vld [vmem:[#allocation2 + $0x818] sm:$0xff]  ;;  %v2660_v6 = vpack.c.bf16 %v399_v0, %v395_v62  ;;  %v435_v60 = vld [vmem:[#allocation2 + $0x910] sm:$0xff]  ;;  %v2678_v61 = vpack.c.bf16 %v440_v54, %v436_v53  ;;  %v446_v0 = vld [vmem:[#allocation2 + $0x968] sm:$0xff] }
 0x101   :  { %v439_v62 = vld [vmem:[#allocation2 + $0x930] sm:$0xff]  ;;  %v473_v54 = vld [vmem:[#allocation2 + $0xa40] sm:$0xff] }
 0x102   :  { %2385 = vmatpush1.bf16.msra.mxu0 %v2384_v9  ;;  %v405_v9 = vld [vmem:[#allocation2 + $0x820] sm:$0xff] }
 0x103   :  { %2641 = vmatpush1.bf16.msra.mxu1 %v2640_v10  ;;  %2387 = vmatprep.subr.bf16.mxu0 %v2386_v11  ;;  %v403_v10 = vld [vmem:[#allocation2 + $0x810] sm:$0xff]  ;;  %v2662_v11 = vpack.c.bf16 %v408_v4, %v404_v3  ;;  %v2408_v18 = vpack.c.bf16 %v405_v9, %v401_v8  ;;  %v2680_v4 = vpack.c.bf16 %v439_v62, %v435_v60  ;;  %v486_v60 = vld [vmem:[#allocation2 + $0xaa8] sm:$0xff]  ;;  %v488_v62 = vld [vmem:[#allocation2 + $0xab8] sm:$0xff] }
 0x104   :  { %2643 = vmatprep.subr.bf16.mxu1 %v2642_v15  ;;  %v412_v15 = vld [vmem:[#allocation2 + $0x858] sm:$0xff]  ;;  %v2664_v19 = vpack.c.bf16 %v407_v12, %v403_v10  ;;  %v443_v8 = vld [vmem:[#allocation2 + $0x950] sm:$0xff]  ;;  %v2682_v9 = vpack.c.bf16 %v448_v2, %v444_v1  ;;  %v454_v12 = vld [vmem:[#allocation2 + $0x9a8] sm:$0xff] }
 0x105   :  { %v2666_v24 = vpack.c.bf16 %v416_v16, %v412_v15  ;;  %v447_v10 = vld [vmem:[#allocation2 + $0x970] sm:$0xff]  ;;  %v481_v2 = vld [vmem:[#allocation2 + $0xa80] sm:$0xff] }
 0x106   :  { %2389 = vmatpush1.bf16.msra.mxu0 %v2388_v21  ;;  %v409_v21 = vld [vmem:[#allocation2 + $0x840] sm:$0xff]  ;;  %v2684_v16 = vpack.c.bf16 %v447_v10, %v443_v8  ;;  %v494_v8 = vld [vmem:[#allocation2 + $0xae8] sm:$0xff]  ;;  %v496_v10 = vld [vmem:[#allocation2 + $0xaf8] sm:$0xff] }
 0x107   :  { %2645 = vmatpush1.bf16.msra.mxu1 %v2644_v22  ;;  %2391 = vmatprep.subr.bf16.mxu0 %v2390_v23  ;;  %v413_v22 = vld [vmem:[#allocation2 + $0x860] sm:$0xff]  ;;  %v411_v23 = vld [vmem:[#allocation2 + $0x850] sm:$0xff] }
 0x108   :  { %2647 = vmatprep.subr.bf16.mxu1 %v2646_v27  ;;  %v422_v27 = vld [vmem:[#allocation2 + $0x8a8] sm:$0xff]  ;;  %v2412_v31 = vpack.c.bf16 %v413_v22, %v409_v21  ;;  %v2668_v32 = vpack.c.bf16 %v415_v25, %v411_v23  ;;  %v2686_v21 = vpack.c.bf16 %v456_v14, %v452_v13  ;;  %v455_v22 = vld [vmem:[#allocation2 + $0x9b0] sm:$0xff]  ;;  %v460_v25 = vld [vmem:[#allocation2 + $0x9d8] sm:$0xff] }
 0x109   :  { %v458_v23 = vld [vmem:[#allocation2 + $0x9c8] sm:$0xff]  ;;  %v489_v14 = vld [vmem:[#allocation2 + $0xac0] sm:$0xff] }
 0x10a   :  { %2393 = vmatpush1.bf16.msra.mxu0 %v2392_v33  ;;  %v2414_v33 = vpack.c.bf16 %v422_v27, %v418_v26  ;;  %v464_v26 = vld [vmem:[#allocation2 + $0x9f8] sm:$0xff] }
 0x10b   :  { %2649 = vmatpush1.bf16.msra.mxu1 %v2648_v34  ;;  %2395 = vmatprep.subr.bf16.mxu0 %v2394_v35  ;;  %v417_v34 = vld [vmem:[#allocation2 + $0x880] sm:$0xff] }
 0x10c   :  { %2651 = vmatprep.subr.bf16.mxu1 %v2650_v39  ;;  %v421_v35 = vld [vmem:[#allocation2 + $0x8a0] sm:$0xff]  ;;  %v426_v39 = vld [vmem:[#allocation2 + $0x8c8] sm:$0xff] }
 0x10d   :  { %v2416_v43 = vpack.c.bf16 %v421_v35, %v417_v34  ;;  %v463_v34 = vld [vmem:[#allocation2 + $0x9f0] sm:$0xff]  ;;  %v466_v35 = vld [vmem:[#allocation2 + $0xa08] sm:$0xff] }
 0x10e   :  { %2397 = vmatpush1.bf16.msra.mxu0 %v2396_v45  ;;  %v2418_v45 = vpack.c.bf16 %v430_v40, %v426_v39  ;;  %v2438_v41 = vpack.c.bf16 %v470_v36, %v466_v35 }
 0x10f   :  { %2653 = vmatpush1.bf16.msra.mxu1 %v2652_v46  ;;  %2399 = vmatprep.subr.bf16.mxu0 %v2398_v47  ;;  %v425_v46 = vld [vmem:[#allocation2 + $0x8c0] sm:$0xff] }
 0x110   :  { %2655 = vmatprep.subr.bf16.mxu1 %v2654_v51  ;;  %v429_v47 = vld [vmem:[#allocation2 + $0x8e0] sm:$0xff]  ;;  %v434_v51 = vld [vmem:[#allocation2 + $0x908] sm:$0xff] }
 0x111   :  { %v2420_v55 = vpack.c.bf16 %v429_v47, %v425_v46  ;;  %v471_v46 = vld [vmem:[#allocation2 + $0xa30] sm:$0xff]  ;;  %v474_v47 = vld [vmem:[#allocation2 + $0xa48] sm:$0xff] }
 0x112   :  { %2401 = vmatpush1.bf16.msra.mxu0 %v2400_v57  ;;  %v2422_v57 = vpack.c.bf16 %v438_v52, %v434_v51  ;;  %v2442_v53 = vpack.c.bf16 %v478_v48, %v474_v47 }
 0x113   :  { %2657 = vmatpush1.bf16.msra.mxu1 %v2656_v58  ;;  %2403 = vmatprep.subr.bf16.mxu0 %v2402_v59  ;;  %v433_v58 = vld [vmem:[#allocation2 + $0x900] sm:$0xff] }
 0x114   :  { %2659 = vmatprep.subr.bf16.mxu1 %v2658_v63  ;;  %v437_v59 = vld [vmem:[#allocation2 + $0x920] sm:$0xff]  ;;  %v442_v63 = vld [vmem:[#allocation2 + $0x948] sm:$0xff] }
 0x115   :  { %v2424_v3 = vpack.c.bf16 %v437_v59, %v433_v58  ;;  %v479_v58 = vld [vmem:[#allocation2 + $0xa70] sm:$0xff]  ;;  %v482_v59 = vld [vmem:[#allocation2 + $0xa88] sm:$0xff] }
 0x116   :  { %2405 = vmatpush1.bf16.msra.mxu0 %v2404_v5  ;;  %v2426_v5 = vpack.c.bf16 %v446_v0, %v442_v63  ;;  %v2446_v1 = vpack.c.bf16 %v486_v60, %v482_v59 }
 0x117   :  { %2661 = vmatpush1.bf16.msra.mxu1 %v2660_v6  ;;  %2407 = vmatprep.subr.bf16.mxu0 %v2406_v7  ;;  %v441_v6 = vld [vmem:[#allocation2 + $0x940] sm:$0xff] }
 0x118   :  { %2663 = vmatprep.subr.bf16.mxu1 %v2662_v11  ;;  %v445_v7 = vld [vmem:[#allocation2 + $0x960] sm:$0xff]  ;;  %v450_v11 = vld [vmem:[#allocation2 + $0x988] sm:$0xff] }
 0x119   :  { %815 = vmatmul.mubr.f32.vlgmr.msra.gmra.mrb[0].mxu0 %v139_v17  ;;  %v2428_v15 = vpack.c.bf16 %v445_v7, %v441_v6  ;;  %v487_v6 = vld [vmem:[#allocation2 + $0xab0] sm:$0xff]  ;;  %v490_v7 = vld [vmem:[#allocation2 + $0xac8] sm:$0xff] }
 0x11a   :  { %2409 = vmatpush1.bf16.msra.mxu0 %v2408_v18  ;;  %1099 = vmatmul.mubr.f32.vlgmr.msra.gmra.mrb[0].mxu1 %v139_v17  ;;  %v2430_v17 = vpack.c.bf16 %v454_v12, %v450_v11  ;;  %v449_v18 = vld [vmem:[#allocation2 + $0x980] sm:$0xff]  ;;  %v2450_v13 = vpack.c.bf16 %v494_v8, %v490_v7 }
 0x11b   :  { %2665 = vmatpush1.bf16.msra.mxu1 %v2664_v19  ;;  %2411 = vmatprep.subr.bf16.mxu0 %v2410_v20  ;;  %v453_v19 = vld [vmem:[#allocation2 + $0x9a0] sm:$0xff]  ;;  %v451_v20 = vld [vmem:[#allocation2 + $0x990] sm:$0xff] }
 0x11c   :  { %2667 = vmatprep.subr.bf16.mxu1 %v2666_v24  ;;  %885 = vmatprep.mubr.f32.mxu0 %v142_v30  ;;  %v462_v24 = vld [vmem:[#allocation2 + $0x9e8] sm:$0xff]  ;;  %v2432_v27 = vpack.c.bf16 %v453_v19, %v449_v18  ;;  %v2688_v28 = vpack.c.bf16 %v455_v22, %v451_v20  ;;  %v495_v18 = vld [vmem:[#allocation2 + $0xaf0] sm:$0xff]  ;;  %v504_v22 = vld [vmem:[#allocation2 + $0xb38] sm:$0xff] }
 0x11d   :  { %1169 = vmatprep.mubr.f32.mxu1 %v142_v30  ;;  %v2434_v29 = vpack.c.bf16 %v462_v24, %v458_v23  ;;  %v457_v30 = vld [vmem:[#allocation2 + $0x9c0] sm:$0xff]  ;;  %v498_v19 = vld [vmem:[#allocation2 + $0xb08] sm:$0xff] }
 0x11e   :  { %2413 = vmatpush1.bf16.msra.mxu0 %v2412_v31  ;;  %v461_v31 = vld [vmem:[#allocation2 + $0x9e0] sm:$0xff]  ;;  %v502_v20 = vld [vmem:[#allocation2 + $0xb28] sm:$0xff] }
 0x11f   :  { %2669 = vmatpush1.bf16.msra.mxu1 %v2668_v32  ;;  %2415 = vmatprep.subr.bf16.mxu0 %v2414_v33  ;;  %v459_v32 = vld [vmem:[#allocation2 + $0x9d0] sm:$0xff]  ;;  %v2690_v33 = vpack.c.bf16 %v464_v26, %v460_v25  ;;  %v2436_v39 = vpack.c.bf16 %v461_v31, %v457_v30  ;;  %v2454_v25 = vpack.c.bf16 %v502_v20, %v498_v19  ;;  %v497_v26 = vld [vmem:[#allocation2 + $0xb00] sm:$0xff]  ;;  %v506_v31 = vld [vmem:[#allocation2 + $0xb48] sm:$0xff] }
 0x120   :  { %2671 = vmatprep.subr.bf16.mxu1 %v2670_v37  ;;  %v468_v37 = vld [vmem:[#allocation2 + $0xa18] sm:$0xff]  ;;  %v2692_v40 = vpack.c.bf16 %v463_v34, %v459_v32  ;;  %v503_v30 = vld [vmem:[#allocation2 + $0xb30] sm:$0xff]  ;;  %v510_v32 = vld [vmem:[#allocation2 + $0xb68] sm:$0xff] }
 0x121   :  { %v512_v34 = vld [vmem:[#allocation2 + $0xb78] sm:$0xff]  ;;  %v141_v19 = vld [vmem:[%s3657_s0 + $0x20] sm:$0x3f] }
 0x122   :  { %2417 = vmatpush1.bf16.msra.mxu0 %v2416_v43  ;;  %v469_v43 = vld [vmem:[#allocation2 + $0xa20] sm:$0xff] }
 0x123   :  { %2673 = vmatpush1.bf16.msra.mxu1 %v2672_v44  ;;  %2419 = vmatprep.subr.bf16.mxu0 %v2418_v45  ;;  %v467_v44 = vld [vmem:[#allocation2 + $0xa10] sm:$0xff]  ;;  %v2694_v45 = vpack.c.bf16 %v472_v38, %v468_v37  ;;  %v2440_v51 = vpack.c.bf16 %v469_v43, %v465_v42  ;;  %v2458_v37 = vpack.c.bf16 %v510_v32, %v506_v31  ;;  %v505_v38 = vld [vmem:[#allocation2 + $0xb40] sm:$0xff]  ;;  %v514_v43 = vld [vmem:[#allocation2 + $0xb88] sm:$0xff] }
 0x124   :  { %2675 = vmatprep.subr.bf16.mxu1 %v2674_v49  ;;  %v476_v49 = vld [vmem:[#allocation2 + $0xa58] sm:$0xff]  ;;  %v2696_v52 = vpack.c.bf16 %v471_v46, %v467_v44  ;;  %v511_v42 = vld [vmem:[#allocation2 + $0xb70] sm:$0xff]  ;;  %v518_v44 = vld [vmem:[#allocation2 + $0xba8] sm:$0xff] }
 0x125   :  { %v520_v46 = vld [vmem:[#allocation2 + $0xbb8] sm:$0xff] }
 0x126   :  { %2421 = vmatpush1.bf16.msra.mxu0 %v2420_v55  ;;  %v477_v55 = vld [vmem:[#allocation2 + $0xa60] sm:$0xff]  ;;  %v552_v31 = vld [vmem:[#allocation2 + $0xcb8] sm:$0xff] }
 0x127   :  { %2677 = vmatpush1.bf16.msra.mxu1 %v2676_v56  ;;  %2423 = vmatprep.subr.bf16.mxu0 %v2422_v57  ;;  %v475_v56 = vld [vmem:[#allocation2 + $0xa50] sm:$0xff]  ;;  %v2698_v57 = vpack.c.bf16 %v480_v50, %v476_v49  ;;  %v2444_v63 = vpack.c.bf16 %v477_v55, %v473_v54  ;;  %v2462_v49 = vpack.c.bf16 %v518_v44, %v514_v43  ;;  %v513_v50 = vld [vmem:[#allocation2 + $0xb80] sm:$0xff]  ;;  %v522_v55 = vld [vmem:[#allocation2 + $0xbc8] sm:$0xff] }
 0x128   :  { %2679 = vmatprep.subr.bf16.mxu1 %v2678_v61  ;;  %v484_v61 = vld [vmem:[#allocation2 + $0xa98] sm:$0xff]  ;;  %v2700_v0 = vpack.c.bf16 %v479_v58, %v475_v56  ;;  %v519_v54 = vld [vmem:[#allocation2 + $0xbb0] sm:$0xff]  ;;  %v526_v56 = vld [vmem:[#allocation2 + $0xbe8] sm:$0xff] }
 0x129   :  { %v528_v58 = vld [vmem:[#allocation2 + $0xbf8] sm:$0xff] }
 0x12a   :  { %2425 = vmatpush1.bf16.msra.mxu0 %v2424_v3  ;;  %v485_v3 = vld [vmem:[#allocation2 + $0xaa0] sm:$0xff]  ;;  %v144_v32 = vld [vmem:[%s3657_s0 + $0x38] sm:$0x3f] }
 0x12b   :  { %2681 = vmatpush1.bf16.msra.mxu1 %v2680_v4  ;;  %2427 = vmatprep.subr.bf16.mxu0 %v2426_v5  ;;  %v483_v4 = vld [vmem:[#allocation2 + $0xa90] sm:$0xff]  ;;  %v2702_v5 = vpack.c.bf16 %v488_v62, %v484_v61  ;;  %v2448_v11 = vpack.c.bf16 %v485_v3, %v481_v2  ;;  %v2466_v61 = vpack.c.bf16 %v526_v56, %v522_v55  ;;  %v521_v62 = vld [vmem:[#allocation2 + $0xbc0] sm:$0xff]  ;;  %v530_v3 = vld [vmem:[#allocation2 + $0xc08] sm:$0xff] }
 0x12c   :  { %2683 = vmatprep.subr.bf16.mxu1 %v2682_v9  ;;  %v492_v9 = vld [vmem:[#allocation2 + $0xad8] sm:$0xff]  ;;  %v2704_v12 = vpack.c.bf16 %v487_v6, %v483_v4  ;;  %v527_v2 = vld [vmem:[#allocation2 + $0xbf0] sm:$0xff]  ;;  %v534_v4 = vld [vmem:[#allocation2 + $0xc28] sm:$0xff] }
 0x12d   :  { %v536_v6 = vld [vmem:[#allocation2 + $0xc38] sm:$0xff] }
 0x12e   :  { %2429 = vmatpush1.bf16.msra.mxu0 %v2428_v15  ;;  %v493_v15 = vld [vmem:[#allocation2 + $0xae0] sm:$0xff]  ;;  %v556_v43 = vld [vmem:[#allocation2 + $0xcd8] sm:$0xff] }
 0x12f   :  { %2685 = vmatpush1.bf16.msra.mxu1 %v2684_v16  ;;  %2431 = vmatprep.subr.bf16.mxu0 %v2430_v17  ;;  %v491_v16 = vld [vmem:[#allocation2 + $0xad0] sm:$0xff]  ;;  %v2706_v17 = vpack.c.bf16 %v496_v10, %v492_v9  ;;  %v2452_v23 = vpack.c.bf16 %v493_v15, %v489_v14  ;;  %v2470_v9 = vpack.c.bf16 %v534_v4, %v530_v3  ;;  %v529_v10 = vld [vmem:[#allocation2 + $0xc00] sm:$0xff]  ;;  %v538_v15 = vld [vmem:[#allocation2 + $0xc48] sm:$0xff] }
 0x130   :  { %2687 = vmatprep.subr.bf16.mxu1 %v2686_v21  ;;  %v500_v21 = vld [vmem:[#allocation2 + $0xb18] sm:$0xff]  ;;  %v2708_v24 = vpack.c.bf16 %v495_v18, %v491_v16  ;;  %v535_v14 = vld [vmem:[#allocation2 + $0xc30] sm:$0xff]  ;;  %v542_v16 = vld [vmem:[#allocation2 + $0xc68] sm:$0xff] }
 0x131   :  { %v544_v18 = vld [vmem:[#allocation2 + $0xc78] sm:$0xff] }
 0x132   :  { %2433 = vmatpush1.bf16.msra.mxu0 %v2432_v27  ;;  %v501_v27 = vld [vmem:[#allocation2 + $0xb20] sm:$0xff]  ;;  %v560_v44 = vld [vmem:[#allocation2 + $0xcf8] sm:$0xff] }
 0x133   :  { %2689 = vmatpush1.bf16.msra.mxu1 %v2688_v28  ;;  %2435 = vmatprep.subr.bf16.mxu0 %v2434_v29  ;;  %v499_v28 = vld [vmem:[#allocation2 + $0xb10] sm:$0xff]  ;;  %v2710_v29 = vpack.c.bf16 %v504_v22, %v500_v21  ;;  %v2456_v35 = vpack.c.bf16 %v501_v27, %v497_v26  ;;  %v2474_v22 = vpack.c.bf16 %v542_v16, %v538_v15  ;;  %v564_v55 = vld [vmem:[#allocation2 + $0xd18] sm:$0xff] }
 0x134   :  { %2691 = vmatprep.subr.bf16.mxu1 %v2690_v33  ;;  %v508_v33 = vld [vmem:[#allocation2 + $0xb58] sm:$0xff]  ;;  %v2712_v36 = vpack.c.bf16 %v503_v30, %v499_v28  ;;  %v543_v27 = vld [vmem:[#allocation2 + $0xc70] sm:$0xff]  ;;  %v546_v28 = vld [vmem:[#allocation2 + $0xc88] sm:$0xff] }
 0x135   :  { %v548_v30 = vld [vmem:[#allocation2 + $0xc98] sm:$0xff] }
 0x136   :  { %2437 = vmatpush1.bf16.msra.mxu0 %v2436_v39  ;;  %v509_v39 = vld [vmem:[#allocation2 + $0xb60] sm:$0xff]  ;;  %v568_v56 = vld [vmem:[#allocation2 + $0xd38] sm:$0xff] }
 0x137   :  { %2693 = vmatpush1.bf16.msra.mxu1 %v2692_v40  ;;  %2439 = vmatprep.subr.bf16.mxu0 %v2438_v41  ;;  %v507_v40 = vld [vmem:[#allocation2 + $0xb50] sm:$0xff]  ;;  %v2714_v41 = vpack.c.bf16 %v512_v34, %v508_v33  ;;  %v2460_v47 = vpack.c.bf16 %v509_v39, %v505_v38  ;;  %v2734_v39 = vpack.c.bf16 %v552_v31, %v548_v30  ;;  %v572_v3 = vld [vmem:[#allocation2 + $0xd58] sm:$0xff] }
 0x138   :  { %2695 = vmatprep.subr.bf16.mxu1 %v2694_v45  ;;  %v516_v45 = vld [vmem:[#allocation2 + $0xb98] sm:$0xff]  ;;  %v2716_v48 = vpack.c.bf16 %v511_v42, %v507_v40  ;;  %v547_v38 = vld [vmem:[#allocation2 + $0xc90] sm:$0xff]  ;;  %v558_v42 = vld [vmem:[#allocation2 + $0xce8] sm:$0xff] }
 0x139   :  { %v551_v40 = vld [vmem:[#allocation2 + $0xcb0] sm:$0xff]  ;;  %v576_v4 = vld [vmem:[#allocation2 + $0xd78] sm:$0xff] }
 0x13a   :  { %2441 = vmatpush1.bf16.msra.mxu0 %v2440_v51  ;;  %v517_v51 = vld [vmem:[#allocation2 + $0xba0] sm:$0xff]  ;;  %v580_v15 = vld [vmem:[#allocation2 + $0xd98] sm:$0xff] }
 0x13b   :  { %2697 = vmatpush1.bf16.msra.mxu1 %v2696_v52  ;;  %2443 = vmatprep.subr.bf16.mxu0 %v2442_v53  ;;  %v515_v52 = vld [vmem:[#allocation2 + $0xb90] sm:$0xff]  ;;  %v2718_v53 = vpack.c.bf16 %v520_v46, %v516_v45  ;;  %v2464_v59 = vpack.c.bf16 %v517_v51, %v513_v50  ;;  %v2736_v46 = vpack.c.bf16 %v551_v40, %v547_v38  ;;  %v584_v16 = vld [vmem:[#allocation2 + $0xdb8] sm:$0xff]  ;;  %v598_v38 = vld [vmem:[#allocation2 + $0xe28] sm:$0xff] }
 0x13c   :  { %2699 = vmatprep.subr.bf16.mxu1 %v2698_v57  ;;  %v524_v57 = vld [vmem:[#allocation2 + $0xbd8] sm:$0xff]  ;;  %v2720_v60 = vpack.c.bf16 %v519_v54, %v515_v52  ;;  %v555_v50 = vld [vmem:[#allocation2 + $0xcd0] sm:$0xff]  ;;  %v2738_v51 = vpack.c.bf16 %v560_v44, %v556_v43  ;;  %v566_v54 = vld [vmem:[#allocation2 + $0xd28] sm:$0xff] }
 0x13d   :  { %v559_v52 = vld [vmem:[#allocation2 + $0xcf0] sm:$0xff]  ;;  %v600_v40 = vld [vmem:[#allocation2 + $0xe38] sm:$0xff]  ;;  %v593_v44 = vld [vmem:[#allocation2 + $0xe00] sm:$0xff] }
 0x13e   :  { %2445 = vmatpush1.bf16.msra.mxu0 %v2444_v63  ;;  %v525_v63 = vld [vmem:[#allocation2 + $0xbe0] sm:$0xff] }
 0x13f   :  { %2701 = vmatpush1.bf16.msra.mxu1 %v2700_v0  ;;  %2447 = vmatprep.subr.bf16.mxu0 %v2446_v1  ;;  %v523_v0 = vld [vmem:[#allocation2 + $0xbd0] sm:$0xff]  ;;  %v2722_v1 = vpack.c.bf16 %v528_v58, %v524_v57  ;;  %v2468_v7 = vpack.c.bf16 %v525_v63, %v521_v62  ;;  %v2740_v58 = vpack.c.bf16 %v559_v52, %v555_v50  ;;  %v606_v50 = vld [vmem:[#allocation2 + $0xe68] sm:$0xff]  ;;  %v608_v52 = vld [vmem:[#allocation2 + $0xe78] sm:$0xff] }
 0x140   :  { %2703 = vmatprep.subr.bf16.mxu1 %v2702_v5  ;;  %v532_v5 = vld [vmem:[#allocation2 + $0xc18] sm:$0xff]  ;;  %v2724_v8 = vpack.c.bf16 %v527_v2, %v523_v0  ;;  %v563_v62 = vld [vmem:[#allocation2 + $0xd10] sm:$0xff]  ;;  %v2742_v63 = vpack.c.bf16 %v568_v56, %v564_v55  ;;  %v574_v2 = vld [vmem:[#allocation2 + $0xd68] sm:$0xff] }
 0x141   :  { %v567_v0 = vld [vmem:[#allocation2 + $0xd30] sm:$0xff]  ;;  %v601_v56 = vld [vmem:[#allocation2 + $0xe40] sm:$0xff] }
 0x142   :  { %2449 = vmatpush1.bf16.msra.mxu0 %v2448_v11  ;;  %v533_v11 = vld [vmem:[#allocation2 + $0xc20] sm:$0xff] }
 0x143   :  { %2705 = vmatpush1.bf16.msra.mxu1 %v2704_v12  ;;  %2451 = vmatprep.subr.bf16.mxu0 %v2450_v13  ;;  %v531_v12 = vld [vmem:[#allocation2 + $0xc10] sm:$0xff]  ;;  %v2726_v13 = vpack.c.bf16 %v536_v6, %v532_v5  ;;  %v2472_v20 = vpack.c.bf16 %v533_v11, %v529_v10  ;;  %v2744_v6 = vpack.c.bf16 %v567_v0, %v563_v62  ;;  %v614_v62 = vld [vmem:[#allocation2 + $0xea8] sm:$0xff]  ;;  %v616_v0 = vld [vmem:[#allocation2 + $0xeb8] sm:$0xff] }
 0x144   :  { %2707 = vmatprep.subr.bf16.mxu1 %v2706_v17  ;;  %v540_v17 = vld [vmem:[#allocation2 + $0xc58] sm:$0xff]  ;;  %v2728_v21 = vpack.c.bf16 %v535_v14, %v531_v12  ;;  %v571_v10 = vld [vmem:[#allocation2 + $0xd50] sm:$0xff]  ;;  %v2746_v11 = vpack.c.bf16 %v576_v4, %v572_v3  ;;  %v582_v14 = vld [vmem:[#allocation2 + $0xda8] sm:$0xff] }
 0x145   :  { %v2730_v26 = vpack.c.bf16 %v544_v18, %v540_v17  ;;  %v575_v12 = vld [vmem:[#allocation2 + $0xd70] sm:$0xff]  ;;  %v609_v4 = vld [vmem:[#allocation2 + $0xe80] sm:$0xff] }
 0x146   :  { %2453 = vmatpush1.bf16.msra.mxu0 %v2452_v23  ;;  %v537_v23 = vld [vmem:[#allocation2 + $0xc40] sm:$0xff]  ;;  %v2748_v18 = vpack.c.bf16 %v575_v12, %v571_v10  ;;  %v622_v10 = vld [vmem:[#allocation2 + $0xee8] sm:$0xff]  ;;  %v624_v12 = vld [vmem:[#allocation2 + $0xef8] sm:$0xff] }
 0x147   :  { %2709 = vmatpush1.bf16.msra.mxu1 %v2708_v24  ;;  %2455 = vmatprep.subr.bf16.mxu0 %v2454_v25  ;;  %v541_v24 = vld [vmem:[#allocation2 + $0xc60] sm:$0xff]  ;;  %v539_v25 = vld [vmem:[#allocation2 + $0xc50] sm:$0xff] }
 0x148   :  { %2711 = vmatprep.subr.bf16.mxu1 %v2710_v29  ;;  %v550_v29 = vld [vmem:[#allocation2 + $0xca8] sm:$0xff]  ;;  %v2476_v33 = vpack.c.bf16 %v541_v24, %v537_v23  ;;  %v2732_v34 = vpack.c.bf16 %v543_v27, %v539_v25  ;;  %v2750_v23 = vpack.c.bf16 %v584_v16, %v580_v15  ;;  %v583_v24 = vld [vmem:[#allocation2 + $0xdb0] sm:$0xff]  ;;  %v588_v27 = vld [vmem:[#allocation2 + $0xdd8] sm:$0xff] }
 0x149   :  { %v586_v25 = vld [vmem:[#allocation2 + $0xdc8] sm:$0xff]  ;;  %v617_v16 = vld [vmem:[#allocation2 + $0xec0] sm:$0xff] }
 0x14a   :  { %2457 = vmatpush1.bf16.msra.mxu0 %v2456_v35  ;;  %v2478_v35 = vpack.c.bf16 %v550_v29, %v546_v28  ;;  %v592_v28 = vld [vmem:[#allocation2 + $0xdf8] sm:$0xff] }
 0x14b   :  { %2713 = vmatpush1.bf16.msra.mxu1 %v2712_v36  ;;  %2459 = vmatprep.subr.bf16.mxu0 %v2458_v37  ;;  %v545_v36 = vld [vmem:[#allocation2 + $0xc80] sm:$0xff] }
 0x14c   :  { %2715 = vmatprep.subr.bf16.mxu1 %v2714_v41  ;;  %v549_v37 = vld [vmem:[#allocation2 + $0xca0] sm:$0xff]  ;;  %v554_v41 = vld [vmem:[#allocation2 + $0xcc8] sm:$0xff] }
 0x14d   :  { %v2480_v45 = vpack.c.bf16 %v549_v37, %v545_v36  ;;  %v591_v36 = vld [vmem:[#allocation2 + $0xdf0] sm:$0xff]  ;;  %v594_v37 = vld [vmem:[#allocation2 + $0xe08] sm:$0xff] }
 0x14e   :  { %2461 = vmatpush1.bf16.msra.mxu0 %v2460_v47  ;;  %v2482_v47 = vpack.c.bf16 %v558_v42, %v554_v41  ;;  %v2502_v43 = vpack.c.bf16 %v598_v38, %v594_v37 }
 0x14f   :  { %2717 = vmatpush1.bf16.msra.mxu1 %v2716_v48  ;;  %2463 = vmatprep.subr.bf16.mxu0 %v2462_v49  ;;  %v553_v48 = vld [vmem:[#allocation2 + $0xcc0] sm:$0xff] }
 0x150   :  { %2719 = vmatprep.subr.bf16.mxu1 %v2718_v53  ;;  %v557_v49 = vld [vmem:[#allocation2 + $0xce0] sm:$0xff]  ;;  %v562_v53 = vld [vmem:[#allocation2 + $0xd08] sm:$0xff] }
 0x151   :  { %v2484_v57 = vpack.c.bf16 %v557_v49, %v553_v48  ;;  %v599_v48 = vld [vmem:[#allocation2 + $0xe30] sm:$0xff]  ;;  %v602_v49 = vld [vmem:[#allocation2 + $0xe48] sm:$0xff] }
 0x152   :  { %2465 = vmatpush1.bf16.msra.mxu0 %v2464_v59  ;;  %v2486_v59 = vpack.c.bf16 %v566_v54, %v562_v53  ;;  %v2506_v55 = vpack.c.bf16 %v606_v50, %v602_v49 }
 0x153   :  { %2721 = vmatpush1.bf16.msra.mxu1 %v2720_v60  ;;  %2467 = vmatprep.subr.bf16.mxu0 %v2466_v61  ;;  %v561_v60 = vld [vmem:[#allocation2 + $0xd00] sm:$0xff] }
 0x154   :  { %2723 = vmatprep.subr.bf16.mxu1 %v2722_v1  ;;  %v565_v61 = vld [vmem:[#allocation2 + $0xd20] sm:$0xff]  ;;  %v570_v1 = vld [vmem:[#allocation2 + $0xd48] sm:$0xff] }
 0x155   :  { %v2488_v5 = vpack.c.bf16 %v565_v61, %v561_v60  ;;  %v607_v60 = vld [vmem:[#allocation2 + $0xe70] sm:$0xff]  ;;  %v610_v61 = vld [vmem:[#allocation2 + $0xe88] sm:$0xff] }
 0x156   :  { %2469 = vmatpush1.bf16.msra.mxu0 %v2468_v7  ;;  %v2490_v7 = vpack.c.bf16 %v574_v2, %v570_v1  ;;  %v2510_v3 = vpack.c.bf16 %v614_v62, %v610_v61 }
 0x157   :  { %2725 = vmatpush1.bf16.msra.mxu1 %v2724_v8  ;;  %2471 = vmatprep.subr.bf16.mxu0 %v2470_v9  ;;  %v569_v8 = vld [vmem:[#allocation2 + $0xd40] sm:$0xff] }
 0x158   :  { %2727 = vmatprep.subr.bf16.mxu1 %v2726_v13  ;;  %v573_v9 = vld [vmem:[#allocation2 + $0xd60] sm:$0xff]  ;;  %v578_v13 = vld [vmem:[#allocation2 + $0xd88] sm:$0xff] }
 0x159   :  { %886 = vmatmul.mubr.f32.vlgmr.msra.gmra.mrb[0].mxu0 %v141_v19  ;;  %v2492_v17 = vpack.c.bf16 %v573_v9, %v569_v8  ;;  %v615_v8 = vld [vmem:[#allocation2 + $0xeb0] sm:$0xff]  ;;  %v618_v9 = vld [vmem:[#allocation2 + $0xec8] sm:$0xff] }
 0x15a   :  { %2473 = vmatpush1.bf16.msra.mxu0 %v2472_v20  ;;  %1170 = vmatmul.mubr.f32.vlgmr.msra.gmra.mrb[0].mxu1 %v141_v19  ;;  %v2494_v19 = vpack.c.bf16 %v582_v14, %v578_v13  ;;  %v577_v20 = vld [vmem:[#allocation2 + $0xd80] sm:$0xff]  ;;  %v2514_v15 = vpack.c.bf16 %v622_v10, %v618_v9 }
 0x15b   :  { %2729 = vmatpush1.bf16.msra.mxu1 %v2728_v21  ;;  %2475 = vmatprep.subr.bf16.mxu0 %v2474_v22  ;;  %v581_v21 = vld [vmem:[#allocation2 + $0xda0] sm:$0xff]  ;;  %v579_v22 = vld [vmem:[#allocation2 + $0xd90] sm:$0xff] }
 0x15c   :  { %2731 = vmatprep.subr.bf16.mxu1 %v2730_v26  ;;  %956 = vmatprep.mubr.f32.mxu0 %v144_v32  ;;  %v590_v26 = vld [vmem:[#allocation2 + $0xde8] sm:$0xff]  ;;  %v2496_v29 = vpack.c.bf16 %v581_v21, %v577_v20  ;;  %v2752_v30 = vpack.c.bf16 %v583_v24, %v579_v22  ;;  %v623_v20 = vld [vmem:[#allocation2 + $0xef0] sm:$0xff]  ;;  %v632_v24 = vld [vmem:[#allocation2 + $0xf38] sm:$0xff] }
 0x15d   :  { %1240 = vmatprep.mubr.f32.mxu1 %v144_v32  ;;  %v2498_v31 = vpack.c.bf16 %v590_v26, %v586_v25  ;;  %v585_v32 = vld [vmem:[#allocation2 + $0xdc0] sm:$0xff]  ;;  %v626_v21 = vld [vmem:[#allocation2 + $0xf08] sm:$0xff] }
 0x15e   :  { %2477 = vmatpush1.bf16.msra.mxu0 %v2476_v33  ;;  %v589_v33 = vld [vmem:[#allocation2 + $0xde0] sm:$0xff]  ;;  %v630_v22 = vld [vmem:[#allocation2 + $0xf28] sm:$0xff] }
 0x15f   :  { %2733 = vmatpush1.bf16.msra.mxu1 %v2732_v34  ;;  %2479 = vmatprep.subr.bf16.mxu0 %v2478_v35  ;;  %v587_v34 = vld [vmem:[#allocation2 + $0xdd0] sm:$0xff]  ;;  %v2754_v35 = vpack.c.bf16 %v592_v28, %v588_v27  ;;  %v2500_v41 = vpack.c.bf16 %v589_v33, %v585_v32  ;;  %v2518_v27 = vpack.c.bf16 %v630_v22, %v626_v21  ;;  %v625_v28 = vld [vmem:[#allocation2 + $0xf00] sm:$0xff]  ;;  %v634_v33 = vld [vmem:[#allocation2 + $0xf48] sm:$0xff] }
 0x160   :  { %2735 = vmatprep.subr.bf16.mxu1 %v2734_v39  ;;  %v596_v39 = vld [vmem:[#allocation2 + $0xe18] sm:$0xff]  ;;  %v2756_v42 = vpack.c.bf16 %v591_v36, %v587_v34  ;;  %v631_v32 = vld [vmem:[#allocation2 + $0xf30] sm:$0xff]  ;;  %v638_v34 = vld [vmem:[#allocation2 + $0xf68] sm:$0xff] }
 0x161   :  { %v640_v36 = vld [vmem:[#allocation2 + $0xf78] sm:$0xff]  ;;  %v1251_v10 = vld [vmem:[#allocation7] sm:$0xff] }
 0x162   :  { %2481 = vmatpush1.bf16.msra.mxu0 %v2480_v45  ;;  %v597_v45 = vld [vmem:[#allocation2 + $0xe20] sm:$0xff] }
 0x163   :  { %2737 = vmatpush1.bf16.msra.mxu1 %v2736_v46  ;;  %2483 = vmatprep.subr.bf16.mxu0 %v2482_v47  ;;  %v595_v46 = vld [vmem:[#allocation2 + $0xe10] sm:$0xff]  ;;  %v2758_v47 = vpack.c.bf16 %v600_v40, %v596_v39  ;;  %v2504_v53 = vpack.c.bf16 %v597_v45, %v593_v44  ;;  %v2522_v39 = vpack.c.bf16 %v638_v34, %v634_v33  ;;  %v633_v40 = vld [vmem:[#allocation2 + $0xf40] sm:$0xff]  ;;  %v642_v45 = vld [vmem:[#allocation2 + $0xf88] sm:$0xff] }
 0x164   :  { %2739 = vmatprep.subr.bf16.mxu1 %v2738_v51  ;;  %v604_v51 = vld [vmem:[#allocation2 + $0xe58] sm:$0xff]  ;;  %v2760_v54 = vpack.c.bf16 %v599_v48, %v595_v46  ;;  %v639_v44 = vld [vmem:[#allocation2 + $0xf70] sm:$0xff]  ;;  %v646_v46 = vld [vmem:[#allocation2 + $0xfa8] sm:$0xff] }
 0x165   :  { %v648_v48 = vld [vmem:[#allocation2 + $0xfb8] sm:$0xff] }
 0x166   :  { %2485 = vmatpush1.bf16.msra.mxu0 %v2484_v57  ;;  %v605_v57 = vld [vmem:[#allocation2 + $0xe60] sm:$0xff] }
 0x167   :  { %2741 = vmatpush1.bf16.msra.mxu1 %v2740_v58  ;;  %2487 = vmatprep.subr.bf16.mxu0 %v2486_v59  ;;  %v603_v58 = vld [vmem:[#allocation2 + $0xe50] sm:$0xff]  ;;  %v2762_v59 = vpack.c.bf16 %v608_v52, %v604_v51  ;;  %v2508_v1 = vpack.c.bf16 %v605_v57, %v601_v56  ;;  %v2526_v51 = vpack.c.bf16 %v646_v46, %v642_v45  ;;  %v641_v52 = vld [vmem:[#allocation2 + $0xf80] sm:$0xff]  ;;  %v650_v57 = vld [vmem:[#allocation2 + $0xfc8] sm:$0xff] }
 0x168   :  { %2743 = vmatprep.subr.bf16.mxu1 %v2742_v63  ;;  %v612_v63 = vld [vmem:[#allocation2 + $0xe98] sm:$0xff]  ;;  %v2764_v2 = vpack.c.bf16 %v607_v60, %v603_v58  ;;  %v647_v56 = vld [vmem:[#allocation2 + $0xfb0] sm:$0xff]  ;;  %v654_v58 = vld [vmem:[#allocation2 + $0xfe8] sm:$0xff] }
 0x169   :  { %v656_v60 = vld [vmem:[#allocation2 + $0xff8] sm:$0xff] }
 0x16a   :  { %2489 = vmatpush1.bf16.msra.mxu0 %v2488_v5  ;;  %v613_v5 = vld [vmem:[#allocation2 + $0xea0] sm:$0xff] }
 0x16b   :  { %2745 = vmatpush1.bf16.msra.mxu1 %v2744_v6  ;;  %2491 = vmatprep.subr.bf16.mxu0 %v2490_v7  ;;  %v611_v6 = vld [vmem:[#allocation2 + $0xe90] sm:$0xff]  ;;  %v2766_v7 = vpack.c.bf16 %v616_v0, %v612_v63  ;;  %v2512_v13 = vpack.c.bf16 %v613_v5, %v609_v4  ;;  %v2530_v63 = vpack.c.bf16 %v654_v58, %v650_v57  ;;  %v649_v0 = vld [vmem:[#allocation2 + $0xfc0] sm:$0xff] }
 0x16c   :  { %2747 = vmatprep.subr.bf16.mxu1 %v2746_v11  ;;  %v620_v11 = vld [vmem:[#allocation2 + $0xed8] sm:$0xff]  ;;  %v2768_v14 = vpack.c.bf16 %v615_v8, %v611_v6  ;;  %v655_v4 = vld [vmem:[#allocation2 + $0xff0] sm:$0xff] }
 0x16d   :  { %v1252_v5 = vld [vmem:[#allocation7 + $0x8] sm:$0xff]  ;;  %v1254_v6 = vld [vmem:[#allocation7 + $0x18] sm:$0xff] }
 0x16e   :  { %2493 = vmatpush1.bf16.msra.mxu0 %v2492_v17  ;;  %v621_v17 = vld [vmem:[#allocation2 + $0xee0] sm:$0xff]  ;;  %v2790_v9 = vpack.c.bf16 %v1254_v6, %v1252_v5 }
 0x16f   :  { %2749 = vmatpush1.bf16.msra.mxu1 %v2748_v18  ;;  %2495 = vmatprep.subr.bf16.mxu0 %v2494_v19  ;;  %v619_v18 = vld [vmem:[#allocation2 + $0xed0] sm:$0xff]  ;;  %v2770_v19 = vpack.c.bf16 %v624_v12, %v620_v11  ;;  %v2516_v25 = vpack.c.bf16 %v621_v17, %v617_v16  ;;  %v1255_v17 = vld [vmem:[#allocation7 + $0x20] sm:$0xff] }
 0x170   :  { %2751 = vmatprep.subr.bf16.mxu1 %v2750_v23  ;;  %v628_v23 = vld [vmem:[#allocation2 + $0xf18] sm:$0xff]  ;;  %v2772_v26 = vpack.c.bf16 %v623_v20, %v619_v18  ;;  %v1256_v12 = vld [vmem:[#allocation7 + $0x28] sm:$0xff] }
 0x171   :  { %v1253_v11 = vld [vmem:[#allocation7 + $0x10] sm:$0xff]  ;;  %v1262_v20 = vld [vmem:[#allocation7 + $0x58] sm:$0xff] }
 0x172   :  { %2497 = vmatpush1.bf16.msra.mxu0 %v2496_v29  ;;  %v629_v29 = vld [vmem:[#allocation2 + $0xf20] sm:$0xff]  ;;  %v1257_v18 = vld [vmem:[#allocation7 + $0x30] sm:$0xff] }
 0x173   :  { %2753 = vmatpush1.bf16.msra.mxu1 %v2752_v30  ;;  %2499 = vmatprep.subr.bf16.mxu0 %v2498_v31  ;;  %v627_v30 = vld [vmem:[#allocation2 + $0xf10] sm:$0xff]  ;;  %v2774_v31 = vpack.c.bf16 %v632_v24, %v628_v23  ;;  %v2520_v37 = vpack.c.bf16 %v629_v29, %v625_v28  ;;  %v2796_v21 = vpack.c.bf16 %v1257_v18, %v1255_v17  ;;  %v1259_v23 = vld [vmem:[#allocation7 + $0x40] sm:$0xff] }
 0x174   :  { %2755 = vmatprep.subr.bf16.mxu1 %v2754_v35  ;;  %v636_v35 = vld [vmem:[#allocation2 + $0xf58] sm:$0xff]  ;;  %v2776_v38 = vpack.c.bf16 %v631_v32, %v627_v30  ;;  %v1263_v29 = vld [vmem:[#allocation7 + $0x60] sm:$0xff] }
 0x175   :  { %v1261_v24 = vld [vmem:[#allocation7 + $0x50] sm:$0xff]  ;;  %v1270_v32 = vld [vmem:[#allocation7 + $0x98] sm:$0xff] }
 0x176   :  { %2501 = vmatpush1.bf16.msra.mxu0 %v2500_v41  ;;  %v637_v41 = vld [vmem:[#allocation2 + $0xf60] sm:$0xff]  ;;  %v1265_v30 = vld [vmem:[#allocation7 + $0x70] sm:$0xff] }
 0x177   :  { %2757 = vmatpush1.bf16.msra.mxu1 %v2756_v42  ;;  %2503 = vmatprep.subr.bf16.mxu0 %v2502_v43  ;;  %v635_v42 = vld [vmem:[#allocation2 + $0xf50] sm:$0xff]  ;;  %v2778_v43 = vpack.c.bf16 %v640_v36, %v636_v35  ;;  %v2524_v49 = vpack.c.bf16 %v637_v41, %v633_v40  ;;  %v2804_v33 = vpack.c.bf16 %v1265_v30, %v1263_v29  ;;  %v1267_v35 = vld [vmem:[#allocation7 + $0x80] sm:$0xff] }
 0x178   :  { %2759 = vmatprep.subr.bf16.mxu1 %v2758_v47  ;;  %v644_v47 = vld [vmem:[#allocation2 + $0xf98] sm:$0xff]  ;;  %v2780_v50 = vpack.c.bf16 %v639_v44, %v635_v42  ;;  %v1271_v41 = vld [vmem:[#allocation7 + $0xa0] sm:$0xff] }
 0x179   :  { %v1269_v36 = vld [vmem:[#allocation7 + $0x90] sm:$0xff]  ;;  %v1278_v44 = vld [vmem:[#allocation7 + $0xd8] sm:$0xff] }
 0x17a   :  { %2505 = vmatpush1.bf16.msra.mxu0 %v2504_v53  ;;  %v645_v53 = vld [vmem:[#allocation2 + $0xfa0] sm:$0xff]  ;;  %v1273_v42 = vld [vmem:[#allocation7 + $0xb0] sm:$0xff] }
 0x17b   :  { %2761 = vmatpush1.bf16.msra.mxu1 %v2760_v54  ;;  %2507 = vmatprep.subr.bf16.mxu0 %v2506_v55  ;;  %v643_v54 = vld [vmem:[#allocation2 + $0xf90] sm:$0xff]  ;;  %v2782_v55 = vpack.c.bf16 %v648_v48, %v644_v47  ;;  %v2528_v61 = vpack.c.bf16 %v645_v53, %v641_v52  ;;  %v2812_v45 = vpack.c.bf16 %v1273_v42, %v1271_v41  ;;  %v1275_v47 = vld [vmem:[#allocation7 + $0xc0] sm:$0xff]  ;;  %v1318_v41 = vld [vmem:[#allocation7 + $0x218] sm:$0xff] }
 0x17c   :  { %2763 = vmatprep.subr.bf16.mxu1 %v2762_v59  ;;  %v652_v59 = vld [vmem:[#allocation2 + $0xfd8] sm:$0xff]  ;;  %v2784_v62 = vpack.c.bf16 %v647_v56, %v643_v54  ;;  %v1279_v53 = vld [vmem:[#allocation7 + $0xe0] sm:$0xff] }
 0x17d   :  { %v1277_v48 = vld [vmem:[#allocation7 + $0xd0] sm:$0xff]  ;;  %v1286_v56 = vld [vmem:[#allocation7 + $0x118] sm:$0xff] }
 0x17e   :  { %2509 = vmatpush1.bf16.msra.mxu0 %v2508_v1  ;;  %v653_v1 = vld [vmem:[#allocation2 + $0xfe0] sm:$0xff]  ;;  %v1281_v54 = vld [vmem:[#allocation7 + $0xf0] sm:$0xff] }
 0x17f   :  { %2765 = vmatpush1.bf16.msra.mxu1 %v2764_v2  ;;  %2511 = vmatprep.subr.bf16.mxu0 %v2510_v3  ;;  %v651_v2 = vld [vmem:[#allocation2 + $0xfd0] sm:$0xff]  ;;  %v2786_v3 = vpack.c.bf16 %v656_v60, %v652_v59  ;;  %v2820_v57 = vpack.c.bf16 %v1281_v54, %v1279_v53  ;;  %v1283_v59 = vld [vmem:[#allocation7 + $0x100] sm:$0xff] }
 0x180   :  { %2767 = vmatprep.subr.bf16.mxu1 %v2766_v7  ;;  %v2532_v7 = vpack.c.bf16 %v653_v1, %v649_v0  ;;  %v2788_v8 = vpack.c.bf16 %v655_v4, %v651_v2  ;;  %v1285_v60 = vld [vmem:[#allocation7 + $0x110] sm:$0xff]  ;;  %v1287_v1 = vld [vmem:[#allocation7 + $0x120] sm:$0xff]  ;;  %v1294_v4 = vld [vmem:[#allocation7 + $0x158] sm:$0xff] }
 0x181   :  { %v1289_v2 = vld [vmem:[#allocation7 + $0x130] sm:$0xff]  ;;  %v1538_v53 = vld [vmem:[#allocation10 + $0x18] sm:$0xff]  ;;  %v1555_v54 = vld [vmem:[#allocation10 + $0xa0] sm:$0xff] }
 0x182   :  { %2513 = vmatpush1.bf16.msra.mxu0 %v2512_v13  ;;  %v1258_v13 = vld [vmem:[#allocation7 + $0x38] sm:$0xff]  ;;  %v2828_v5 = vpack.c.bf16 %v1289_v2, %v1287_v1  ;;  %v1559_v2 = vld [vmem:[#allocation10 + $0xc0] sm:$0xff] }
 0x183   :  { %2769 = vmatpush1.bf16.msra.mxu1 %v2768_v14  ;;  %2515 = vmatprep.subr.bf16.mxu0 %v2514_v15  ;;  %v143_v14 = vld [vmem:[%s3657_s0 + $0x30] sm:$0x3f]  ;;  %v2792_v15 = vpack.c.bf16 %v1253_v11, %v1251_v10  ;;  %v2794_v16 = vpack.c.bf16 %v1258_v13, %v1256_v12  ;;  %v1298_v10 = vld [vmem:[#allocation7 + $0x178] sm:$0xff]  ;;  %v1295_v13 = vld [vmem:[#allocation7 + $0x160] sm:$0xff]  ;;  %s3357_s0 = smov 3  }
 0x184   :  { %2771 = vmatprep.subr.bf16.mxu1 %v2770_v19  ;;  %v1260_v19 = vld [vmem:[#allocation7 + $0x48] sm:$0xff]  ;;  %v1542_v1 = vld [vmem:[#allocation10 + $0x38] sm:$0xff] }
 0x185   :  { %v2798_v22 = vpack.c.bf16 %v1262_v20, %v1260_v19  ;;  %v1299_v19 = vld [vmem:[#allocation7 + $0x180] sm:$0xff]  ;;  %v1301_v20 = vld [vmem:[#allocation7 + $0x190] sm:$0xff] }
 0x186   :  { %2517 = vmatpush1.bf16.msra.mxu0 %v2516_v25  ;;  %v1264_v25 = vld [vmem:[#allocation7 + $0x68] sm:$0xff] }
 0x187   :  { %2773 = vmatpush1.bf16.msra.mxu1 %v2772_v26  ;;  %2519 = vmatprep.subr.bf16.mxu0 %v2518_v27  ;;  %v1266_v26 = vld [vmem:[#allocation7 + $0x78] sm:$0xff]  ;;  %v2800_v27 = vpack.c.bf16 %v1261_v24, %v1259_v23  ;;  %v2840_v23 = vpack.c.bf16 %v1301_v20, %v1299_v19 }
 0x188   :  { %2775 = vmatprep.subr.bf16.mxu1 %v2774_v31  ;;  %v2802_v28 = vpack.c.bf16 %v1266_v26, %v1264_v25  ;;  %v1268_v31 = vld [vmem:[#allocation7 + $0x88] sm:$0xff]  ;;  %v1303_v25 = vld [vmem:[#allocation7 + $0x1a0] sm:$0xff]  ;;  %v1305_v26 = vld [vmem:[#allocation7 + $0x1b0] sm:$0xff] }
 0x189   :  { %v2806_v34 = vpack.c.bf16 %v1270_v32, %v1268_v31  ;;  %v2844_v29 = vpack.c.bf16 %v1305_v26, %v1303_v25  ;;  %v1307_v31 = vld [vmem:[#allocation7 + $0x1c0] sm:$0xff]  ;;  %v1309_v32 = vld [vmem:[#allocation7 + $0x1d0] sm:$0xff] }
 0x18a   :  { %2521 = vmatpush1.bf16.msra.mxu0 %v2520_v37  ;;  %v1272_v37 = vld [vmem:[#allocation7 + $0xa8] sm:$0xff] }
 0x18b   :  { %2777 = vmatpush1.bf16.msra.mxu1 %v2776_v38  ;;  %2523 = vmatprep.subr.bf16.mxu0 %v2522_v39  ;;  %v1274_v38 = vld [vmem:[#allocation7 + $0xb8] sm:$0xff]  ;;  %v2808_v39 = vpack.c.bf16 %v1269_v36, %v1267_v35 }
 0x18c   :  { %2779 = vmatprep.subr.bf16.mxu1 %v2778_v43  ;;  %v2810_v40 = vpack.c.bf16 %v1274_v38, %v1272_v37  ;;  %v1276_v43 = vld [vmem:[#allocation7 + $0xc8] sm:$0xff]  ;;  %v1314_v35 = vld [vmem:[#allocation7 + $0x1f8] sm:$0xff]  ;;  %v1311_v37 = vld [vmem:[#allocation7 + $0x1e0] sm:$0xff] }
 0x18d   :  { %v2814_v46 = vpack.c.bf16 %v1278_v44, %v1276_v43  ;;  %v1313_v38 = vld [vmem:[#allocation7 + $0x1f0] sm:$0xff]  ;;  %v1551_v43 = vld [vmem:[#allocation10 + $0x80] sm:$0xff] }
 0x18e   :  { %2525 = vmatpush1.bf16.msra.mxu0 %v2524_v49  ;;  %v1280_v49 = vld [vmem:[#allocation7 + $0xe8] sm:$0xff] }
 0x18f   :  { %2781 = vmatpush1.bf16.msra.mxu1 %v2780_v50  ;;  %2527 = vmatprep.subr.bf16.mxu0 %v2526_v51  ;;  %v1282_v50 = vld [vmem:[#allocation7 + $0xf8] sm:$0xff]  ;;  %v2816_v51 = vpack.c.bf16 %v1277_v48, %v1275_v47  ;;  %v1552_v44 = vld [vmem:[#allocation10 + $0x88] sm:$0xff] }
 0x190   :  { %2783 = vmatprep.subr.bf16.mxu1 %v2782_v55  ;;  %v2818_v52 = vpack.c.bf16 %v1282_v50, %v1280_v49  ;;  %v1284_v55 = vld [vmem:[#allocation7 + $0x108] sm:$0xff]  ;;  %v1553_v48 = vld [vmem:[#allocation10 + $0x90] sm:$0xff]  ;;  %v1554_v49 = vld [vmem:[#allocation10 + $0x98] sm:$0xff] }
 0x191   :  { %v2822_v58 = vpack.c.bf16 %v1286_v56, %v1284_v55  ;;  %v1536_v47 = vld [vmem:[#allocation10 + $0x8] sm:$0xff] }
 0x192   :  { %2529 = vmatpush1.bf16.msra.mxu0 %v2528_v61  ;;  %v1288_v61 = vld [vmem:[#allocation7 + $0x128] sm:$0xff] }
 0x193   :  { %2785 = vmatpush1.bf16.msra.mxu1 %v2784_v62  ;;  %2531 = vmatprep.subr.bf16.mxu0 %v2530_v63  ;;  %v1290_v62 = vld [vmem:[#allocation7 + $0x138] sm:$0xff]  ;;  %v2824_v63 = vpack.c.bf16 %v1285_v60, %v1283_v59  ;;  %v1556_v55 = vld [vmem:[#allocation10 + $0xa8] sm:$0xff] }
 0x194   :  { %2787 = vmatprep.subr.bf16.mxu1 %v2786_v3  ;;  %v2826_v0 = vpack.c.bf16 %v1290_v62, %v1288_v61  ;;  %v1292_v3 = vld [vmem:[#allocation7 + $0x148] sm:$0xff]  ;;  %v1557_v60 = vld [vmem:[#allocation10 + $0xb0] sm:$0xff]  ;;  %v1558_v61 = vld [vmem:[#allocation10 + $0xb8] sm:$0xff] }
 0x195   :  { %v2830_v6 = vpack.c.bf16 %v1294_v4, %v1292_v3  ;;  %v1540_v59 = vld [vmem:[#allocation10 + $0x28] sm:$0xff] }
 0x196   :  { %2533 = vmatpush1.bf16.msra.mxu0 %v2532_v7  ;;  %v1291_v7 = vld [vmem:[#allocation7 + $0x140] sm:$0xff]  ;;  %v1560_v3 = vld [vmem:[#allocation10 + $0xc8] sm:$0xff] }
 0x197   :  { %2789 = vmatpush1.bf16.msra.mxu1 %v2788_v8  ;;  %2791 = vmatprep.subr.bf16.mxu0 %v2790_v9  ;;  %v1293_v8 = vld [vmem:[#allocation7 + $0x150] sm:$0xff]  ;;  %v1296_v9 = vld [vmem:[#allocation7 + $0x168] sm:$0xff] }
 0x198   :  { %v2832_v11 = vpack.c.bf16 %v1293_v8, %v1291_v7  ;;  %v2834_v12 = vpack.c.bf16 %v1298_v10, %v1296_v9  ;;  %v1544_v7 = vld [vmem:[#allocation10 + $0x48] sm:$0xff]  ;;  %v1561_v8 = vld [vmem:[#allocation10 + $0xd0] sm:$0xff]  ;;  %v1562_v9 = vld [vmem:[#allocation10 + $0xd8] sm:$0xff] }
 0x199   :  { %957 = vmatmul.mubr.f32.vlgmr.msra.gmra.mrb[0].mxu0 %v143_v14 }
 0x19a   :  { %1241 = vmatmul.mubr.f32.vlgmr.msra.gmra.mrb[0].mxu1 %v143_v14  ;;  %2793 = vmatpush1.bf16.msra.mxu0 %v2792_v15  ;;  %v1297_v14 = vld [vmem:[#allocation7 + $0x170] sm:$0xff]  ;;  %v1300_v15 = vld [vmem:[#allocation7 + $0x188] sm:$0xff] }
 0x19b   :  { %2795 = vmatprep.subr.bf16.mxu0 %v2794_v16  ;;  %v1302_v16 = vld [vmem:[#allocation7 + $0x198] sm:$0xff]  ;;  %v2836_v17 = vpack.c.bf16 %v1297_v14, %v1295_v13  ;;  %v1563_v14 = vld [vmem:[#allocation10 + $0xe0] sm:$0xff] }
 0x19c   :  { %v2838_v18 = vpack.c.bf16 %v1302_v16, %v1300_v15  ;;  %v1546_v13 = vld [vmem:[#allocation10 + $0x58] sm:$0xff]  ;;  %v1564_v15 = vld [vmem:[#allocation10 + $0xe8] sm:$0xff] }
 0x19e   :  { %2797 = vmatpush1.bf16.msra.mxu0 %v2796_v21  ;;  %v1304_v21 = vld [vmem:[#allocation7 + $0x1a8] sm:$0xff] }
 0x19f   :  { %2799 = vmatprep.subr.bf16.mxu0 %v2798_v22  ;;  %v1306_v22 = vld [vmem:[#allocation7 + $0x1b8] sm:$0xff] }
 0x1a0   :  { %v2842_v24 = vpack.c.bf16 %v1306_v22, %v1304_v21  ;;  %v3547_v21 = vld [vmem:[#allocation5] sm:$0xf] }
 0x1a2   :  { %2801 = vmatpush1.bf16.msra.mxu0 %v2800_v27  ;;  %v1308_v27 = vld [vmem:[#allocation7 + $0x1c8] sm:$0xff] }
 0x1a3   :  { %2803 = vmatprep.subr.bf16.mxu0 %v2802_v28  ;;  %v1310_v28 = vld [vmem:[#allocation7 + $0x1d8] sm:$0xff] }
 0x1a4   :  { %v2846_v30 = vpack.c.bf16 %v1310_v28, %v1308_v27 }
 0x1a6   :  { %2805 = vmatpush1.bf16.msra.mxu0 %v2804_v33  ;;  %v2848_v33 = vpack.c.bf16 %v1309_v32, %v1307_v31  ;;  %v1315_v31 = vld [vmem:[#allocation7 + $0x200] sm:$0xff]  ;;  %v1317_v32 = vld [vmem:[#allocation7 + $0x210] sm:$0xff] }
 0x1a7   :  { %2807 = vmatprep.subr.bf16.mxu0 %v2806_v34  ;;  %v1312_v34 = vld [vmem:[#allocation7 + $0x1e8] sm:$0xff] }
 0x1a8   :  { %v2850_v36 = vpack.c.bf16 %v1314_v35, %v1312_v34  ;;  %v1320_v35 = vld [vmem:[#allocation7 + $0x228] sm:$0xff] }
 0x1aa   :  { %2809 = vmatpush1.bf16.msra.mxu0 %v2808_v39  ;;  %v2852_v39 = vpack.c.bf16 %v1313_v38, %v1311_v37 }
 0x1ab   :  { %2811 = vmatprep.subr.bf16.mxu0 %v2810_v40  ;;  %v1316_v40 = vld [vmem:[#allocation7 + $0x208] sm:$0xff] }
 0x1ac   :  { %v2854_v42 = vpack.c.bf16 %v1318_v41, %v1316_v40 }
 0x1ae   :  { %2813 = vmatpush1.bf16.msra.mxu0 %v2812_v45  ;;  %v1535_v45 = vld [vmem:[#allocation10] sm:$0xff] }
 0x1af   :  { %2815 = vmatprep.subr.bf16.mxu0 %v2814_v46  ;;  %v2918_v46 = vpack.c.bf16 %v1552_v44, %v1551_v43  ;;  %v2920_v50 = vpack.c.bf16 %v1536_v47, %v1535_v45  ;;  %v1321_v43 = vld [vmem:[#allocation7 + $0x230] sm:$0xff]  ;;  %v1324_v45 = vld [vmem:[#allocation7 + $0x248] sm:$0xff] }
 0x1b1   :  { %2919 = vmatprep.subr.bf16.mxu1 %v2918_v46  ;;  %v1326_v46 = vld [vmem:[#allocation7 + $0x258] sm:$0xff] }
 0x1b2   :  { %2817 = vmatpush1.bf16.msra.mxu0 %v2816_v51  ;;  %v2922_v51 = vpack.c.bf16 %v1554_v49, %v1553_v48  ;;  %2921 = vmatpush3.bf16.msra.mxu1 %v2920_v50  ;;  %v2862_v48 = vpack.c.bf16 %v1326_v46, %v1324_v45  ;;  %v1323_v49 = vld [vmem:[#allocation7 + $0x240] sm:$0xff]  ;;  %v1325_v50 = vld [vmem:[#allocation7 + $0x250] sm:$0xff] }
 0x1b3   :  { %2819 = vmatprep.subr.bf16.mxu0 %v2818_v52  ;;  %v1537_v52 = vld [vmem:[#allocation10 + $0x10] sm:$0xff]  ;;  %v1359_v45 = vld [vmem:[#allocation7 + $0x360] sm:$0xff] }
 0x1b4   :  { %v2924_v56 = vpack.c.bf16 %v1538_v53, %v1537_v52  ;;  %2923 = vmatprep.subr.bf16.mxu1 %v2922_v51  ;;  %v1328_v51 = vld [vmem:[#allocation7 + $0x268] sm:$0xff]  ;;  %v1330_v52 = vld [vmem:[#allocation7 + $0x278] sm:$0xff]  ;;  %v2864_v53 = vpack.c.bf16 %v1325_v50, %v1323_v49  ;;  %v1361_v46 = vld [vmem:[#allocation7 + $0x370] sm:$0xff] }
 0x1b5   :  { %v2900_v49 = vpack.c.bf16 %v1361_v46, %v1359_v45  ;;  %v1666_v45 = vld [vmem:[#allocation13 + $0xa8] sm:$0xff]  ;;  %v1671_v46 = vld [vmem:[#allocation13 + $0xd0] sm:$0xff] }
 0x1b6   :  { %2821 = vmatpush1.bf16.msra.mxu0 %v2820_v57  ;;  %v2926_v57 = vpack.c.bf16 %v1556_v55, %v1555_v54  ;;  %2925 = vmatpush3.bf16.msra.mxu1 %v2924_v56  ;;  %v2866_v54 = vpack.c.bf16 %v1330_v52, %v1328_v51  ;;  %v1327_v55 = vld [vmem:[#allocation7 + $0x260] sm:$0xff]  ;;  %v1329_v56 = vld [vmem:[#allocation7 + $0x270] sm:$0xff] }
 0x1b7   :  { %2823 = vmatprep.subr.bf16.mxu0 %v2822_v58  ;;  %v1539_v58 = vld [vmem:[#allocation10 + $0x20] sm:$0xff]  ;;  %v1365_v52 = vld [vmem:[#allocation7 + $0x390] sm:$0xff] }
 0x1b8   :  { %v2928_v62 = vpack.c.bf16 %v1540_v59, %v1539_v58  ;;  %2927 = vmatprep.subr.bf16.mxu1 %v2926_v57  ;;  %v1332_v57 = vld [vmem:[#allocation7 + $0x288] sm:$0xff]  ;;  %v1334_v58 = vld [vmem:[#allocation7 + $0x298] sm:$0xff]  ;;  %v2868_v59 = vpack.c.bf16 %v1329_v56, %v1327_v55  ;;  %v1363_v51 = vld [vmem:[#allocation7 + $0x380] sm:$0xff] }
 0x1b9   :  { %v2904_v55 = vpack.c.bf16 %v1365_v52, %v1363_v51  ;;  %v1676_v51 = vld [vmem:[#allocation13 + $0xf8] sm:$0xff]  ;;  %v1681_v52 = vld [vmem:[#allocation13 + $0x120] sm:$0xff] }
 0x1ba   :  { %2825 = vmatpush1.bf16.msra.mxu0 %v2824_v63  ;;  %v2930_v63 = vpack.c.bf16 %v1558_v61, %v1557_v60  ;;  %2929 = vmatpush3.bf16.msra.mxu1 %v2928_v62  ;;  %v2870_v60 = vpack.c.bf16 %v1334_v58, %v1332_v57  ;;  %v1331_v61 = vld [vmem:[#allocation7 + $0x280] sm:$0xff]  ;;  %v1333_v62 = vld [vmem:[#allocation7 + $0x290] sm:$0xff] }
 0x1bb   :  { %2827 = vmatprep.subr.bf16.mxu0 %v2826_v0  ;;  %v1541_v0 = vld [vmem:[#allocation10 + $0x30] sm:$0xff]  ;;  %v1367_v57 = vld [vmem:[#allocation7 + $0x3a0] sm:$0xff] }
 0x1bc   :  { %v2932_v4 = vpack.c.bf16 %v1542_v1, %v1541_v0  ;;  %2931 = vmatprep.subr.bf16.mxu1 %v2930_v63  ;;  %v1336_v63 = vld [vmem:[#allocation7 + $0x2a8] sm:$0xff]  ;;  %v1338_v0 = vld [vmem:[#allocation7 + $0x2b8] sm:$0xff]  ;;  %v2872_v1 = vpack.c.bf16 %v1333_v62, %v1331_v61  ;;  %v1369_v58 = vld [vmem:[#allocation7 + $0x3b0] sm:$0xff] }
 0x1bd   :  { %v2908_v61 = vpack.c.bf16 %v1369_v58, %v1367_v57  ;;  %v1686_v57 = vld [vmem:[#allocation13 + $0x148] sm:$0xff]  ;;  %v1691_v58 = vld [vmem:[#allocation13 + $0x170] sm:$0xff] }
 0x1be   :  { %2829 = vmatpush1.bf16.msra.mxu0 %v2828_v5  ;;  %v2934_v5 = vpack.c.bf16 %v1560_v3, %v1559_v2  ;;  %2933 = vmatpush3.bf16.msra.mxu1 %v2932_v4  ;;  %v2874_v2 = vpack.c.bf16 %v1338_v0, %v1336_v63  ;;  %v1335_v3 = vld [vmem:[#allocation7 + $0x2a0] sm:$0xff]  ;;  %v1337_v4 = vld [vmem:[#allocation7 + $0x2b0] sm:$0xff] }
 0x1bf   :  { %2831 = vmatprep.subr.bf16.mxu0 %v2830_v6  ;;  %v1543_v6 = vld [vmem:[#allocation10 + $0x40] sm:$0xff] }
 0x1c0   :  { %v2936_v10 = vpack.c.bf16 %v1544_v7, %v1543_v6  ;;  %2935 = vmatprep.subr.bf16.mxu1 %v2934_v5  ;;  %v1340_v5 = vld [vmem:[#allocation7 + $0x2c8] sm:$0xff]  ;;  %v1342_v6 = vld [vmem:[#allocation7 + $0x2d8] sm:$0xff]  ;;  %v2876_v7 = vpack.c.bf16 %v1337_v4, %v1335_v3  ;;  %v1371_v0 = vld [vmem:[#allocation7 + $0x3c0] sm:$0xff] }
 0x1c1   :  { %v1378_v3 = vld [vmem:[#allocation7 + $0x3f8] sm:$0xff] }
 0x1c2   :  { %2833 = vmatpush1.bf16.msra.mxu0 %v2832_v11  ;;  %v2938_v11 = vpack.c.bf16 %v1562_v9, %v1561_v8  ;;  %2937 = vmatpush3.bf16.msra.mxu1 %v2936_v10  ;;  %v2878_v8 = vpack.c.bf16 %v1342_v6, %v1340_v5  ;;  %v1339_v9 = vld [vmem:[#allocation7 + $0x2c0] sm:$0xff]  ;;  %v1341_v10 = vld [vmem:[#allocation7 + $0x2d0] sm:$0xff] }
 0x1c3   :  { %2835 = vmatprep.subr.bf16.mxu0 %v2834_v12  ;;  %v1545_v12 = vld [vmem:[#allocation10 + $0x50] sm:$0xff] }
 0x1c4   :  { %v2940_v16 = vpack.c.bf16 %v1546_v13, %v1545_v12  ;;  %2939 = vmatprep.subr.bf16.mxu1 %v2938_v11  ;;  %v1344_v11 = vld [vmem:[#allocation7 + $0x2e8] sm:$0xff]  ;;  %v1346_v12 = vld [vmem:[#allocation7 + $0x2f8] sm:$0xff]  ;;  %v2880_v13 = vpack.c.bf16 %v1341_v10, %v1339_v9 }
 0x1c6   :  { %2837 = vmatpush1.bf16.msra.mxu0 %v2836_v17  ;;  %v2942_v17 = vpack.c.bf16 %v1564_v15, %v1563_v14  ;;  %2941 = vmatpush3.bf16.msra.mxu1 %v2940_v16  ;;  %v2882_v14 = vpack.c.bf16 %v1346_v12, %v1344_v11  ;;  %v1343_v15 = vld [vmem:[#allocation7 + $0x2e0] sm:$0xff]  ;;  %v1345_v16 = vld [vmem:[#allocation7 + $0x2f0] sm:$0xff] }
 0x1c7   :  { %2839 = vmatprep.subr.bf16.mxu0 %v2838_v18  ;;  %v659_v18 = vlaneseq  ;;  %v1547_v12 = vld [vmem:[#allocation10 + $0x60] sm:$0xff] }
 0x1c8   :  { %2943 = vmatprep.subr.bf16.mxu1 %v2942_v17  ;;  %v1348_v17 = vld [vmem:[#allocation7 + $0x308] sm:$0xff] }
 0x1c9   :  { %v3542_v19 = vshrl.u32 %v659_v18, 7  ;;  %v1350_v18 = vld [vmem:[#allocation7 + $0x318] sm:$0xff] }
 0x1ca   :  { %2841 = vmatpush1.bf16.msra.mxu0 %v2840_v23 }
 0x1cb   :  { %2843 = vmatprep.subr.bf16.mxu0 %v2842_v24  ;;  %v3545_v20 = vsub.s32 0, %v3542_v19  ;;  %v3550_v22 = vsub.s32 1, %v3542_v19  ;;  %v673_v23 = vsub.s32 3, %v3542_v19  ;;  %v669_v62 = vsub.s32 2, %v3542_v19 }
 0x1cd   :  { %v662_v24 = vrot.slane %v3547_v21, %v3545_v20  ;;  %v666_v25 = vrot.slane %v3547_v21, %v3550_v22  ;;  %v674_v26 = vrot.slane %v3547_v21, %v673_v23  ;;  %v670_v5 = vrot.slane %v3547_v21, %v669_v62  ;;  %v1549_v21 = vld [vmem:[#allocation10 + $0x70] sm:$0xff] }
 0x1ce   :  { %2845 = vmatpush1.bf16.msra.mxu0 %v2844_v29 }
 0x1cf   :  { %2847 = vmatprep.subr.bf16.mxu0 %v2846_v30 }
 0x1d2   :  { %2849 = vmatpush1.bf16.msra.mxu0 %v2848_v33 }
 0x1d3   :  { %2851 = vmatprep.subr.bf16.mxu0 %v2850_v36  ;;  %v1322_v36 = vld [vmem:[#allocation7 + $0x238] sm:$0xff] }
 0x1d4   :  { %v2858_v41 = vpack.c.bf16 %v1322_v36, %v1320_v35  ;;  %v1356_v35 = vld [vmem:[#allocation7 + $0x348] sm:$0xff]  ;;  %v1358_v36 = vld [vmem:[#allocation7 + $0x358] sm:$0xff] }
 0x1d6   :  { %2853 = vmatpush1.bf16.msra.mxu0 %v2852_v39  ;;  %v2856_v39 = vpack.c.bf16 %v1317_v32, %v1315_v31 }
 0x1d7   :  { %2855 = vmatprep.subr.bf16.mxu0 %v2854_v42  ;;  %v1319_v42 = vld [vmem:[#allocation7 + $0x220] sm:$0xff] }
 0x1d8   :  { %v2860_v47 = vpack.c.bf16 %v1321_v43, %v1319_v42  ;;  %v1362_v42 = vld [vmem:[#allocation7 + $0x378] sm:$0xff] }
 0x26c   :  { %v958_v27 = vpop.f32.mrb[0].mxu0 }
 0x26d   :  { %v3038_v28 = vadd.f32 %v958_v27, %v662_v24  ;;  %v3560_v29 = vpop.f32.mrb[0].mxu1  ;;  %v960_v30 = vpop.f32.mrb[1].mxu0  ;;  %v2884_v24 = vpack.c.bf16 %v1345_v16, %v1343_v15  ;;  %v1349_v27 = vld [vmem:[#allocation7 + $0x310] sm:$0xff]  ;;  %v1566_v16 = vld [vmem:[#allocation10 + $0xf8] sm:$0xff] }
 0x26e   :  { %v3039_v33 = vadd.f32 %v960_v30, %v666_v25  ;;  %v1244_v34 = vpop.f32.mrb[1].mxu1  ;;  %v2886_v25 = vpack.c.bf16 %v1350_v18, %v1348_v17  ;;  %v1354_v30 = vld [vmem:[#allocation7 + $0x338] sm:$0xff]  ;;  %v3040_v10 = vadd.f32 %v3560_v29, %v670_v5  ;;  %v1379_v29 = vld [vmem:[#allocation8] sm:$0x3] }
 0x26f   :  { %v3041_v37 = vadd.f32 %v1244_v34, %v674_v26  ;;  %v1247_v40 = vmax.f32 %v3038_v28, 0.0  ;;  %v1347_v26 = vld [vmem:[#allocation7 + $0x300] sm:$0xff]  ;;  %v1352_v28 = vld [vmem:[#allocation7 + $0x328] sm:$0xff]  ;;  %v1353_v34 = vld [vmem:[#allocation7 + $0x330] sm:$0xff] }
 0x270   :  { %v1248_v38 = vmax.f32 %v3039_v33, 0.0  ;;  %v2888_v31 = vpack.c.bf16 %v1349_v27, %v1347_v26  ;;  %v2890_v32 = vpack.c.bf16 %v1354_v30, %v1352_v28  ;;  %v1351_v33 = vld [vmem:[#allocation7 + $0x320] sm:$0xff]  ;;  %v1249_v11 = vmax.f32 %v3040_v10, 0.0  ;;  %v1565_v15 = vld [vmem:[#allocation10 + $0xf0] sm:$0xff] }
 0x271   :  { %v1250_v44 = vmax.f32 %v3041_v37, 0.0  ;;  %v2892_v37 = vpack.c.bf16 %v1353_v34, %v1351_v33  ;;  %v2946_v17 = vpack.c.bf16 %v1566_v16, %v1565_v15  ;;  %v1550_v18 = vld [vmem:[#allocation10 + $0x78] sm:$0xff]  ;;  %v1384_v28 = vrot.slane %v1379_v29, %v3545_v20  ;;  %v1645_v34 = vld [vmem:[#allocation13] sm:$0xff] }
 0x272   :  { %1455 = vmatprep.mubr.f32.mxu0 %v1248_v38  ;;  %v2894_v38 = vpack.c.bf16 %v1358_v36, %v1356_v35  ;;  %v1651_v26 = vld [vmem:[#allocation13 + $0x30] sm:$0xff]  ;;  %v1388_v30 = vrot.slane %v1379_v29, %v3550_v22  ;;  %v1650_v35 = vld [vmem:[#allocation13 + $0x28] sm:$0xff]  ;;  %v1700_v5 = vld [vmem:[#allocation13 + $0x1b8] sm:$0xff] }
 0x273   :  { %1456 = vmatmul.mubr.f32.vlgmr.msra.gmra.mrb[2].mxu0 %v1247_v40  ;;  %v1357_v40 = vld [vmem:[#allocation7 + $0x350] sm:$0xff]  ;;  %v1705_v10 = vld [vmem:[#allocation13 + $0x1e0] sm:$0xff]  ;;  %v2190_v29 = vld [vmem:[#allocation11] ss:$0 sm:$0xff] }
 0x274   :  { %2857 = vmatpush1.bf16.msra.mxu0 %v2856_v39  ;;  %1526 = vmatprep.mubr.f32.mxu0 %v1250_v44  ;;  %v1355_v39 = vld [vmem:[#allocation7 + $0x340] sm:$0xff]  ;;  %v1715_v16 = vld [vmem:[#allocation13 + $0x230] sm:$0xff] }
 0x275   :  { %2859 = vmatprep.subr.bf16.mxu0 %v2858_v41  ;;  %v1360_v41 = vld [vmem:[#allocation7 + $0x368] sm:$0xff]  ;;  %v2896_v43 = vpack.c.bf16 %v1357_v40, %v1355_v39  ;;  %v2952_v40 = vpack.c.bf16 %v1650_v35, %v1645_v34  ;;  %v1663_v34 = vld [vmem:[#allocation13 + $0x90] sm:$0xff] }
 0x276   :  { %v2898_v44 = vpack.c.bf16 %v1362_v42, %v1360_v41 }
 0x278   :  { %2861 = vmatpush1.bf16.msra.mxu0 %v2860_v47  ;;  %v1364_v47 = vld [vmem:[#allocation7 + $0x388] sm:$0xff] }
 0x279   :  { %2863 = vmatprep.subr.bf16.mxu0 %v2862_v48  ;;  %v1366_v48 = vld [vmem:[#allocation7 + $0x398] sm:$0xff] }
 0x27a   :  { %v2902_v50 = vpack.c.bf16 %v1366_v48, %v1364_v47  ;;  %v2958_v48 = vpack.c.bf16 %v1671_v46, %v1666_v45  ;;  %v1667_v45 = vld [vmem:[#allocation13 + $0xb0] sm:$0xff]  ;;  %v1672_v46 = vld [vmem:[#allocation13 + $0xd8] sm:$0xff] }
 0x27c   :  { %2865 = vmatpush1.bf16.msra.mxu0 %v2864_v53  ;;  %v1368_v53 = vld [vmem:[#allocation7 + $0x3a8] sm:$0xff] }
 0x27d   :  { %2867 = vmatprep.subr.bf16.mxu0 %v2866_v54  ;;  %v1370_v54 = vld [vmem:[#allocation7 + $0x3b8] sm:$0xff] }
 0x27e   :  { %v2906_v56 = vpack.c.bf16 %v1370_v54, %v1368_v53  ;;  %v2962_v54 = vpack.c.bf16 %v1681_v52, %v1676_v51  ;;  %v1677_v51 = vld [vmem:[#allocation13 + $0x100] sm:$0xff]  ;;  %v1682_v52 = vld [vmem:[#allocation13 + $0x128] sm:$0xff] }
 0x280   :  { %2869 = vmatpush1.bf16.msra.mxu0 %v2868_v59  ;;  %v1372_v59 = vld [vmem:[#allocation7 + $0x3c8] sm:$0xff] }
 0x281   :  { %2871 = vmatprep.subr.bf16.mxu0 %v2870_v60  ;;  %v1374_v60 = vld [vmem:[#allocation7 + $0x3d8] sm:$0xff] }
 0x282   :  { %v2910_v63 = vpack.c.bf16 %v1374_v60, %v1372_v59  ;;  %v2966_v60 = vpack.c.bf16 %v1691_v58, %v1686_v57  ;;  %v1687_v57 = vld [vmem:[#allocation13 + $0x150] sm:$0xff]  ;;  %v1692_v58 = vld [vmem:[#allocation13 + $0x178] sm:$0xff] }
 0x284   :  { %2873 = vmatpush1.bf16.msra.mxu0 %v2872_v1  ;;  %v1373_v1 = vld [vmem:[#allocation7 + $0x3d0] sm:$0xff] }
 0x285   :  { %2875 = vmatprep.subr.bf16.mxu0 %v2874_v2  ;;  %v1376_v2 = vld [vmem:[#allocation7 + $0x3e8] sm:$0xff]  ;;  %v2912_v4 = vpack.c.bf16 %v1373_v1, %v1371_v0  ;;  %v1696_v0 = vld [vmem:[#allocation13 + $0x198] sm:$0xff] }
 0x286   :  { %v2914_v6 = vpack.c.bf16 %v1378_v3, %v1376_v2  ;;  %v1701_v1 = vld [vmem:[#allocation13 + $0x1c0] sm:$0xff] }
 0x287   :  { %v2970_v3 = vpack.c.bf16 %v1701_v1, %v1696_v0  ;;  %v1697_v0 = vld [vmem:[#allocation13 + $0x1a0] sm:$0xff]  ;;  %v1702_v1 = vld [vmem:[#allocation13 + $0x1c8] sm:$0xff] }
 0x288   :  { %2877 = vmatpush1.bf16.msra.mxu0 %v2876_v7  ;;  %v1375_v7 = vld [vmem:[#allocation7 + $0x3e0] sm:$0xff] }
 0x289   :  { %2879 = vmatprep.subr.bf16.mxu0 %v2878_v8  ;;  %v1377_v8 = vld [vmem:[#allocation7 + $0x3f0] sm:$0xff] }
 0x28a   :  { %v2916_v9 = vpack.c.bf16 %v1377_v8, %v1375_v7  ;;  %v1711_v7 = vld [vmem:[#allocation13 + $0x210] sm:$0xff] }
 0x28c   :  { %2881 = vmatpush1.bf16.msra.mxu0 %v2880_v13  ;;  %v1548_v13 = vld [vmem:[#allocation10 + $0x68] sm:$0xff] }
 0x28d   :  { %2883 = vmatprep.subr.bf16.mxu0 %v2882_v14  ;;  %v2944_v14 = vpack.c.bf16 %v1548_v13, %v1547_v12  ;;  %v1716_v13 = vld [vmem:[#allocation13 + $0x238] sm:$0xff] }
 0x28f   :  { %2945 = vmatpush3.bf16.msra.mxu1 %v2944_v14  ;;  %v1721_v14 = vld [vmem:[#allocation13 + $0x260] sm:$0xff] }
 0x290   :  { %2885 = vmatpush1.bf16.msra.mxu0 %v2884_v24  ;;  %v2948_v24 = vpack.c.bf16 %v1550_v18, %v1549_v21  ;;  %2947 = vmatprep.subr.bf16.mxu1 %v2946_v17  ;;  %v2978_v15 = vpack.c.bf16 %v1721_v14, %v1716_v13  ;;  %v1720_v17 = vld [vmem:[#allocation13 + $0x258] sm:$0xff]  ;;  %v1722_v13 = vld [vmem:[#allocation13 + $0x268] sm:$0xff] }
 0x291   :  { %2887 = vmatprep.subr.bf16.mxu0 %v2886_v25  ;;  %v1646_v25 = vld [vmem:[#allocation13 + $0x8] sm:$0xff]  ;;  %v2980_v21 = vpack.c.bf16 %v1720_v17, %v1715_v16  ;;  %v1648_v18 = vld [vmem:[#allocation13 + $0x18] sm:$0xff] }
 0x292   :  { %v2950_v27 = vpack.c.bf16 %v1651_v26, %v1646_v25  ;;  %v3354_v26 = vmov 0.0   ;;  %v1654_v16 = vld [vmem:[#allocation13 + $0x48] sm:$0xff] }
 0x293   :  { %2949 = vmatpush3.bf16.msra.mxu1 %v2948_v24  ;;  %v1653_v24 = vld [vmem:[#allocation13 + $0x40] sm:$0xff] }
 0x294   :  { %2889 = vmatpush1.bf16.msra.mxu0 %v2888_v31  ;;  %2951 = vmatprep.subr.bf16.mxu1 %v2950_v27  ;;  %v2982_v25 = vpack.c.bf16 %v1653_v24, %v1648_v18  ;;  %v1659_v18 = vld [vmem:[#allocation13 + $0x70] sm:$0xff]  ;;  %v1664_v24 = vld [vmem:[#allocation13 + $0x98] sm:$0xff] }
 0x295   :  { %2891 = vmatprep.subr.bf16.mxu0 %v2890_v32 }
 0x298   :  { %2893 = vmatpush1.bf16.msra.mxu0 %v2892_v37  ;;  %v1656_v37 = vld [vmem:[#allocation13 + $0x58] sm:$0xff] }
 0x299   :  { %2895 = vmatprep.subr.bf16.mxu0 %v2894_v38  ;;  %v1661_v38 = vld [vmem:[#allocation13 + $0x80] sm:$0xff] }
 0x29a   :  { %v2954_v42 = vpack.c.bf16 %v1661_v38, %v1656_v37 }
 0x29c   :  { %2897 = vmatpush1.bf16.msra.mxu0 %v2896_v43  ;;  %v1655_v43 = vld [vmem:[#allocation13 + $0x50] sm:$0xff] }
 0x29d   :  { %2899 = vmatprep.subr.bf16.mxu0 %v2898_v44  ;;  %v1660_v44 = vld [vmem:[#allocation13 + $0x78] sm:$0xff] }
 0x29e   :  { %v2956_v47 = vpack.c.bf16 %v1660_v44, %v1655_v43 }
 0x2a0   :  { %2901 = vmatpush1.bf16.msra.mxu0 %v2900_v49  ;;  %v1665_v49 = vld [vmem:[#allocation13 + $0xa0] sm:$0xff] }
 0x2a1   :  { %2903 = vmatprep.subr.bf16.mxu0 %v2902_v50  ;;  %v1670_v50 = vld [vmem:[#allocation13 + $0xc8] sm:$0xff] }
 0x2a2   :  { %v2960_v53 = vpack.c.bf16 %v1670_v50, %v1665_v49  ;;  %v2992_v49 = vpack.c.bf16 %v1672_v46, %v1667_v45  ;;  %v1725_v45 = vld [vmem:[#allocation14] sm:$0x1f] }
 0x2a3   :  { %v1734_v46 = vrot.slane %v1725_v45, %v3550_v22 }
 0x2a4   :  { %2905 = vmatpush1.bf16.msra.mxu0 %v2904_v55  ;;  %v1675_v55 = vld [vmem:[#allocation13 + $0xf0] sm:$0xff] }
 0x2a5   :  { %2907 = vmatprep.subr.bf16.mxu0 %v2906_v56  ;;  %v1680_v56 = vld [vmem:[#allocation13 + $0x118] sm:$0xff] }
 0x2a6   :  { %v2964_v59 = vpack.c.bf16 %v1680_v56, %v1675_v55  ;;  %v2996_v55 = vpack.c.bf16 %v1682_v52, %v1677_v51  ;;  %v1738_v52 = vrot.slane %v1725_v45, %v669_v62 }
 0x2a8   :  { %2909 = vmatpush1.bf16.msra.mxu0 %v2908_v61  ;;  %v1685_v61 = vld [vmem:[#allocation13 + $0x140] sm:$0xff] }
 0x2a9   :  { %2911 = vmatprep.subr.bf16.mxu0 %v2910_v63  ;;  %v1690_v63 = vld [vmem:[#allocation13 + $0x168] sm:$0xff] }
 0x2aa   :  { %v2968_v2 = vpack.c.bf16 %v1690_v63, %v1685_v61  ;;  %v3000_v61 = vpack.c.bf16 %v1692_v58, %v1687_v57 }
 0x2ac   :  { %2913 = vmatpush1.bf16.msra.mxu0 %v2912_v4  ;;  %v1695_v4 = vld [vmem:[#allocation13 + $0x190] sm:$0xff] }
 0x2ad   :  { %2915 = vmatprep.subr.bf16.mxu0 %v2914_v6  ;;  %v1706_v6 = vld [vmem:[#allocation13 + $0x1e8] sm:$0xff]  ;;  %v2972_v8 = vpack.c.bf16 %v1700_v5, %v1695_v4  ;;  %v3004_v4 = vpack.c.bf16 %v1702_v1, %v1697_v0 }
 0x2b0   :  { %2917 = vmatpush1.bf16.msra.mxu0 %v2916_v9  ;;  %v2974_v9 = vpack.c.bf16 %v1711_v7, %v1706_v6  ;;  %v1707_v6 = vld [vmem:[#allocation13 + $0x1f0] sm:$0xff]  ;;  %v1712_v7 = vld [vmem:[#allocation13 + $0x218] sm:$0xff] }
 0x2b3   :  { %1527 = vmatmul.mubr.f32.vlgmr.msra.gmra.mrb[2].mxu0 %v1249_v11  ;;  %v1710_v11 = vld [vmem:[#allocation13 + $0x208] sm:$0xff] }
 0x2b4   :  { %v2976_v12 = vpack.c.bf16 %v1710_v11, %v1705_v10  ;;  %v3008_v10 = vpack.c.bf16 %v1712_v7, %v1707_v6 }
 0x386   :  { %v1528_v31 = vpop.f32.mrb[2].mxu0 }
 0x387   :  { %v3042_v32 = vadd.f32 %v1528_v31, %v1384_v28  ;;  %v1530_v33 = vpop.f32.mrb[3].mxu0  ;;  %v1647_v31 = vld [vmem:[#allocation13 + $0x10] sm:$0xff] }
 0x388   :  { %v3043_v36 = vadd.f32 %v1530_v33, %v1388_v30  ;;  %v1658_v33 = vld [vmem:[#allocation13 + $0x68] sm:$0xff] }
 0x389   :  { %v1533_v41 = vmax.f32 %v3042_v32, 0.0  ;;  %v1652_v32 = vld [vmem:[#allocation13 + $0x38] sm:$0xff]  ;;  %v2986_v38 = vpack.c.bf16 %v1663_v34, %v1658_v33  ;;  %v1689_v33 = vld [vmem:[#allocation13 + $0x160] sm:$0xff]  ;;  %v1694_v34 = vld [vmem:[#allocation13 + $0x188] sm:$0xff] }
 0x38a   :  { %v1534_v39 = vmax.f32 %v3043_v36, 0.0  ;;  %v2984_v36 = vpack.c.bf16 %v1652_v32, %v1647_v31  ;;  %v1684_v31 = vld [vmem:[#allocation13 + $0x138] sm:$0xff] }
 0x38c   :  { %1638 = vmatprep.mubr.f32.mxu1 %v1534_v39  ;;  %v1657_v39 = vld [vmem:[#allocation13 + $0x60] sm:$0xff] }
 0x38d   :  { %1639 = vmatmul.mubr.f32.vlgmr.msra.gmra.mrb[2].mxu1 %v1533_v41  ;;  %v1668_v41 = vld [vmem:[#allocation13 + $0xb8] sm:$0xff] }
 0x38e   :  { %2953 = vmatpush1.bf16.msra.mxu1 %v2952_v40  ;;  %1816 = vmatprep.mubr.f32.mxu1 %v3354_v26  ;;  %v1662_v40 = vld [vmem:[#allocation13 + $0x88] sm:$0xff] }
 0x38f   :  { %2955 = vmatprep.subr.bf16.mxu1 %v2954_v42  ;;  %v1673_v42 = vld [vmem:[#allocation13 + $0xe0] sm:$0xff]  ;;  %v2988_v43 = vpack.c.bf16 %v1662_v40, %v1657_v39  ;;  %v1714_v40 = vld [vmem:[#allocation13 + $0x228] sm:$0xff] }
 0x390   :  { %v2990_v44 = vpack.c.bf16 %v1673_v42, %v1668_v41  ;;  %v1709_v39 = vld [vmem:[#allocation13 + $0x200] sm:$0xff]  ;;  %v1719_v42 = vld [vmem:[#allocation13 + $0x250] sm:$0xff] }
 0x391   :  { %v3033_v41 = vpack.c.bf16 %v1714_v40, %v1709_v39 }
 0x392   :  { %2957 = vmatpush1.bf16.msra.mxu1 %v2956_v47  ;;  %v1678_v47 = vld [vmem:[#allocation13 + $0x108] sm:$0xff] }
 0x393   :  { %2959 = vmatprep.subr.bf16.mxu1 %v2958_v48  ;;  %v1683_v48 = vld [vmem:[#allocation13 + $0x130] sm:$0xff] }
 0x394   :  { %v2994_v50 = vpack.c.bf16 %v1683_v48, %v1678_v47 }
 0x396   :  { %2961 = vmatpush1.bf16.msra.mxu1 %v2960_v53  ;;  %v1688_v53 = vld [vmem:[#allocation13 + $0x158] sm:$0xff] }
 0x397   :  { %2963 = vmatprep.subr.bf16.mxu1 %v2962_v54  ;;  %v1693_v54 = vld [vmem:[#allocation13 + $0x180] sm:$0xff] }
 0x398   :  { %v2998_v56 = vpack.c.bf16 %v1693_v54, %v1688_v53  ;;  %v1730_v53 = vrot.slane %v1725_v45, %v3545_v20 }
 0x39a   :  { %2965 = vmatpush1.bf16.msra.mxu1 %v2964_v59  ;;  %v1698_v59 = vld [vmem:[#allocation13 + $0x1a8] sm:$0xff] }
 0x39b   :  { %2967 = vmatprep.subr.bf16.mxu1 %v2966_v60  ;;  %v1703_v60 = vld [vmem:[#allocation13 + $0x1d0] sm:$0xff] }
 0x39c   :  { %v3002_v63 = vpack.c.bf16 %v1703_v60, %v1698_v59  ;;  %v1745_v60 = vsub.s32 4, %v3542_v19 }
 0x39e   :  { %2969 = vmatpush1.bf16.msra.mxu1 %v2968_v2  ;;  %v1708_v2 = vld [vmem:[#allocation13 + $0x1f8] sm:$0xff] }
 0x39f   :  { %2971 = vmatprep.subr.bf16.mxu1 %v2970_v3  ;;  %v1713_v3 = vld [vmem:[#allocation13 + $0x220] sm:$0xff] }
 0x3a0   :  { %v3006_v5 = vpack.c.bf16 %v1713_v3, %v1708_v2 }
 0x3a2   :  { %2973 = vmatpush1.bf16.msra.mxu1 %v2972_v8  ;;  %v1718_v8 = vld [vmem:[#allocation13 + $0x248] sm:$0xff] }
 0x3a3   :  { %2975 = vmatprep.subr.bf16.mxu1 %v2974_v9  ;;  %v1723_v9 = vld [vmem:[#allocation13 + $0x270] sm:$0xff] }
 0x3a4   :  { %v3010_v11 = vpack.c.bf16 %v1723_v9, %v1718_v8 }
 0x3a6   :  { %2977 = vmatpush1.bf16.msra.mxu1 %v2976_v12  ;;  %v1717_v12 = vld [vmem:[#allocation13 + $0x240] sm:$0xff] }
 0x3a7   :  { %2979 = vmatprep.subr.bf16.mxu1 %v2978_v15  ;;  %v3012_v14 = vpack.c.bf16 %v1722_v13, %v1717_v12  ;;  %v1649_v15 = vld [vmem:[#allocation13 + $0x20] sm:$0xff]  ;;  %v1746_v12 = vrot.slane %v1725_v45, %v1745_v60 }
 0x3a8   :  { %v3015_v17 = vpack.c.bf16 %v1654_v16, %v1649_v15 }
 0x3aa   :  { %2981 = vmatpush1.bf16.msra.mxu1 %v2980_v21  ;;  %v3355_v21 = vmov 0.0|0.0  }
 0x3ab   :  { %2983 = vmatprep.subr.bf16.mxu1 %v2982_v25  ;;  %v3018_v25 = vpack.c.bf16 %v1664_v24, %v1659_v18 }
 0x460   :  { %v2223_v27 = vpop.f32.mrb[2].mxu1 }
 0x461   :  { %v2224_v28 = vpop.f32.mrb[3].mxu1 }
 0x462   :  { %v2225_v30 = vadd.f32 %v2224_v28, %v2223_v27  ;;  %v1669_v27 = vld [vmem:[#allocation13 + $0xc0] sm:$0xff] }
 0x464   :  { %v1641_v35 = vadd.f32 %v2225_v30, %v2190_v29  ;;  %v1674_v29 = vld [vmem:[#allocation13 + $0xe8] sm:$0xff]  ;;  %v1679_v30 = vld [vmem:[#allocation13 + $0x110] sm:$0xff] }
 0x465   :  { %v3021_v28 = vpack.c.bf16 %v1674_v29, %v1669_v27  ;;  %v3024_v32 = vpack.c.bf16 %v1684_v31, %v1679_v30 }
 0x466   :  { %v3570_v37 = vmax.f32 %v1641_v35, 0.0  ;;  %v3027_v35 = vpack.c.bf16 %v1694_v34, %v1689_v33 }
 0x468   :  { %1817 = vmatmul.mubr.f32.vlgmr.msra.gmra.mrb[4].mxu1 %v3570_v37 }
 0x469   :  { %2985 = vmatpush1.bf16.msra.mxu1 %v2984_v36  ;;  %1887 = vmatprep.mubr.f32.mxu1 %v3354_v26  ;;  %v1699_v36 = vld [vmem:[#allocation13 + $0x1b0] sm:$0xff] }
 0x46a   :  { %2987 = vmatprep.subr.bf16.mxu1 %v2986_v38  ;;  %v1704_v38 = vld [vmem:[#allocation13 + $0x1d8] sm:$0xff] }
 0x46d   :  { %2989 = vmatpush1.bf16.msra.mxu1 %v2988_v43  ;;  %v1724_v43 = vld [vmem:[#allocation13 + $0x278] sm:$0xff] }
 0x46e   :  { %2991 = vmatprep.subr.bf16.mxu1 %v2990_v44  ;;  %v3036_v44 = vpack.c.bf16 %v1724_v43, %v1719_v42 }
 0x471   :  { %2993 = vmatpush1.bf16.msra.mxu1 %v2992_v49 }
 0x472   :  { %2995 = vmatprep.subr.bf16.mxu1 %v2994_v50 }
 0x475   :  { %2997 = vmatpush1.bf16.msra.mxu1 %v2996_v55 }
 0x476   :  { %2999 = vmatprep.subr.bf16.mxu1 %v2998_v56 }
 0x479   :  { %3001 = vmatpush1.bf16.msra.mxu1 %v3000_v61 }
 0x47a   :  { %3003 = vmatprep.subr.bf16.mxu1 %v3002_v63 }
 0x47d   :  { %3005 = vmatpush1.bf16.msra.mxu1 %v3004_v4 }
 0x47e   :  { %3007 = vmatprep.subr.bf16.mxu1 %v3006_v5 }
 0x481   :  { %3009 = vmatpush1.bf16.msra.mxu1 %v3008_v10 }
 0x482   :  { %3011 = vmatprep.subr.bf16.mxu1 %v3010_v11 }
 0x485   :  { %3013 = vmatpush1.bf16.msra.mxu1 %v3012_v14 }
 0x486   :  { %3014 = vmatprep.subr.bf16.mxu1 %v3355_v21 }
 0x488   :  { %1888 = vmatmul.mubr.f32.vlgmr.msra.gmra.mrb[6].mxu1 %v3570_v37 }
 0x489   :  { %3016 = vmatpush3.bf16.msra.mxu1 %v3015_v17  ;;  %2275 = vmatprep.mubr.msk.f32.mxu1 %vm3356_vm0, %v3354_v26  ;;  %v3030_v26 = vpack.c.bf16 %v1704_v38, %v1699_v36 }
 0x48a   :  { %3017 = vmatprep.subr.bf16.mxu1 %v3355_v21 }
 0x48d   :  { %3019 = vmatpush3.bf16.msra.mxu1 %v3018_v25 }
 0x48e   :  { %3020 = vmatprep.subr.bf16.mxu1 %v3355_v21 }
 0x491   :  { %3022 = vmatpush3.bf16.msra.mxu1 %v3021_v28 }
 0x492   :  { %3023 = vmatprep.subr.bf16.mxu1 %v3355_v21 }
 0x495   :  { %3025 = vmatpush3.bf16.msra.mxu1 %v3024_v32 }
 0x496   :  { %3026 = vmatprep.subr.bf16.mxu1 %v3355_v21 }
 0x499   :  { %3028 = vmatpush3.bf16.msra.mxu1 %v3027_v35 }
 0x49a   :  { %3029 = vmatprep.subr.bf16.mxu1 %v3355_v21 }
 0x49d   :  { %3031 = vmatpush3.bf16.msra.mxu1 %v3030_v26 }
 0x49e   :  { %3032 = vmatprep.subr.bf16.mxu1 %v3355_v21 }
 0x4a1   :  { %3034 = vmatpush3.bf16.msra.mxu1 %v3033_v41 }
 0x4a2   :  { %3035 = vmatprep.subr.bf16.mxu1 %v3355_v21 }
 0x4a5   :  { %3037 = vmatpush3.bf16.msra.mxu1 %v3036_v44 }
 0x4a8   :  { %2276 = vmatmul.mubr.f32.vlgmr.msra.gmra.mrb[8].mxu1 %v3570_v37  ;;  %v1742_v37 = vrot.slane %v1725_v45, %v673_v23 }
 0x53b   :  { %v1818_v47 = vpop.f32.mrb[4].mxu1 }
 0x53c   :  { %v1820_v48 = vpop.f32.mrb[5].mxu1  ;;  %v3590_v57 = vadd.f32 %v1818_v47, %v1730_v53 }
 0x53d   :  { %v3578_v49 = vadd.f32 %v1820_v48, %v1734_v46 }
 0x53e   :  { %v1967_v61 = vrot.slane %v3590_v57, %v3550_v22  ;;  %v2057_v0 = vrot.slane %v3590_v57, %v1745_v60 }
 0x53f   :  { %v2002_v50 = vmul.f32 %v3578_v49, %v3578_v49 }
 0x540   :  { %v1968_v2 = vmul.f32 %v1967_v61, %v3590_v57  ;;  %v2058_v3 = vmul.f32 %v2057_v0, %v3590_v57 }
 0x541   :  { %v2099_v51 = vsel %vm2098_vm1, %v2002_v50, 0.0  ;;  %v2004_v19 = vsel %vm2003_vm6, %v2002_v50, 0.0 }
 0x542   :  { %2100 = vadd.xlane.f32.xlu1 %v2099_v51  ;;  %v1970_v4 = vsel %vm1969_vm7, %v1968_v2, 0.0  ;;  %v2060_v22 = vsel %vm2059_vm8, %v2058_v3, 0.0 }
 0x55b   :  { %v1889_v54 = vpop.f32.mrb[6].mxu1 }
 0x55c   :  { %v3588_v55 = vadd.f32 %v1889_v54, %v1738_v52  ;;  %v1891_v56 = vpop.f32.mrb[7].mxu1 }
 0x55d   :  { %v3592_v58 = vadd.f32 %v1891_v56, %v1742_v37 }
 0x55e   :  { %v2009_v59 = vmul.f32 %v3588_v55, %v3588_v55 }
 0x55f   :  { %v2020_v62 = vmul.f32 %v3592_v58, %v3592_v58 }
 0x560   :  { %v2105_v20 = vsel %vm2104_vm2, %v2009_v59, 0.0  ;;  %v2011_v63 = vsel %vm2010_vm4, %v2009_v59, 0.0 }
 0x561   :  { %2106 = vadd.xlane.f32.xlu0 %v2105_v20  ;;  %v2115_v23 = vsel %vm2114_vm3, %v2020_v62, 0.0  ;;  %v2022_v1 = vsel %vm2021_vm5, %v2020_v62, 0.0 }
 0x562   :  { %2116 = vadd.xlane.f32.xlu1 %v2115_v23 }
 0x565   :  { %2012 = vadd.xlane.f32.xlu0 %v2011_v63 }
 0x566   :  { %2023 = vadd.xlane.f32.xlu1 %v2022_v1 }
 0x569   :  { %2005 = vadd.xlane.f32.xlu0 %v2004_v19 }
 0x56a   :  { %1971 = vadd.xlane.f32.xlu1 %v1970_v4 }
 0x56d   :  { %2061 = vadd.xlane.f32.xlu0 %v2060_v22 }
 0x57b   :  { %v1960_v5 = vpop.f32.mrb[8].mxu1 }
 0x57c   :  { %v2277_v6 = vpop.f32.mrb[9].mxu1  ;;  %v1961_v16 = vadd.f32 %v1960_v5, %v1746_v12 }
 0x57e   :  { %v2132_v31 = vrot.slane %v1961_v16, 3  ;;  %v2039_v42 = vsel %vm2038_vm11, %v1961_v16, 0.0 }
 0x57f   :  { %v2040_v54 = vrot.slane %v2039_v42, 4 }
 0x580   :  { %v2134_v44 = vsel %vm2038_vm11, %v2132_v31, 0.0 }
 0x581   :  { %v2135_v56 = vrot.slane %v2134_v44, 4  ;;  %v2041_v2 = vadd.f32 %v2040_v54, %v2039_v42 }
 0x583   :  { %v2136_v0 = vadd.f32 %v2135_v56, %v2134_v44  ;;  %v2042_v6 = vrot.slane %v2041_v2, 2 }
 0x585   :  { %v2137_v5 = vrot.slane %v2136_v0, 2 }
 0x5cf   :  { %v2101_v7 = vpop.xlane.xlu1 %2100 }
 0x5d0   :  { %3080 = vrsqrt.f32 %v2101_v7 }
 0x5da   :  { %v3081_v15 = vpop.eup %3080 }
 0x5db   :  { %v2103_v32 = vmul.f32 %v3081_v15, %v3578_v49 }
 0x5ee   :  { %v2107_v8 = vpop.xlane.xlu0 %2106 }
 0x5ef   :  { %3082 = vrsqrt.f32 %v2107_v8  ;;  %v2117_v9 = vpop.xlane.xlu1 %2116 }
 0x5f0   :  { %3084 = vrsqrt.f32 %v2117_v9  ;;  %v2138_v9 = vadd.f32 %v2137_v5, %v2136_v0 }
 0x5f2   :  { %v2013_v10 = vpop.xlane.xlu0 %2012 }
 0x5f3   :  { %3086 = vrsqrt.f32 %v2013_v10  ;;  %v2024_v11 = vpop.xlane.xlu1 %2023  ;;  %v2043_v10 = vadd.f32 %v2042_v6, %v2041_v2 }
 0x5f4   :  { %3088 = vrsqrt.f32 %v2024_v11  ;;  %v2139_v11 = vrot.slane %v2138_v9, 1 }
 0x5f5   :  { %v2044_v12 = vrot.slane %v2043_v10, 1 }
 0x5f6   :  { %v2006_v13 = vpop.xlane.xlu0 %2005  ;;  %v2140_v16 = vadd.f32 %v2139_v11, %v2138_v9 }
 0x5f7   :  { %3090 = vrsqrt.f32 %v2006_v13  ;;  %v1972_v14 = vpop.xlane.xlu1 %1971 }
 0x5f8   :  { %v1973_v17 = vmul.f32 0.17677669, %v1972_v14 }
 0x5f9   :  { %v3083_v21 = vpop.eup %3082 }
 0x5fa   :  { %v3085_v18 = vpop.eup %3084  ;;  %v1975_v24 = vsel %vm1974_vm9, %v1973_v17, -inf  ;;  %v2062_v25 = vpop.xlane.xlu0 %2061  ;;  %v2109_v27 = vmul.f32 %v3083_v21, %v3588_v55  ;;  %v2045_v21 = vadd.f32 %v2044_v12, %v2043_v10 }
 0x5fb   :  { %v1976_v29 = vrot.slane %v1975_v24, 4  ;;  %v2063_v28 = vmul.f32 0.17677669, %v2062_v25  ;;  %v2119_v30 = vmul.f32 %v3085_v18, %v3592_v58 }
 0x5fc   :  { %v2111_v33 = vrot.slane %v2109_v27, 1 }
 0x5fd   :  { %v3087_v34 = vpop.eup %3086  ;;  %v1977_v35 = vmax.f32 %v1975_v24, %v1976_v29  ;;  %v2065_v36 = vsel %vm2064_vm10, %v2063_v28, -inf  ;;  %v2121_v38 = vrot.slane %v2119_v30, 2  ;;  %v2141_v29 = vmul.f32 0.33333334, %v2140_v16 }
 0x5fe   :  { %v3089_v26 = vpop.eup %3088  ;;  %v2066_v39 = vrot.slane %v2065_v36, 4  ;;  %v2113_v40 = vadd.f32 %v2111_v33, %v2103_v32  ;;  %v2015_v41 = vmul.f32 %v3087_v34, %v3588_v55  ;;  %v2047_v30 = vmul.f32 0.33333334, %v2045_v21 }
 0x5ff   :  { %v1978_v43 = vrot.slane %v1977_v35, 2  ;;  %v2026_v47 = vmul.f32 %v3089_v26, %v3592_v58 }
 0x600   :  { %v2067_v45 = vmax.f32 %v2065_v36, %v2066_v39  ;;  %v2123_v46 = vadd.f32 %v2121_v38, %v2113_v40  ;;  %v2017_v37 = vrot.slane %v2015_v41, 1 }
 0x601   :  { %v3091_v48 = vpop.eup %3090  ;;  %v1979_v50 = vmax.f32 %v1977_v35, %v1978_v43  ;;  %v2028_v60 = vrot.slane %v2026_v47, 2 }
 0x602   :  { %v2068_v51 = vrot.slane %v2067_v45, 2  ;;  %v3612_v52 = vmul.f32 0.33333334, %v2123_v46  ;;  %v2008_v53 = vmul.f32 %v3091_v48, %v3578_v49 }
 0x603   :  { %v1980_v59 = vrot.slane %v1979_v50, 1 }
 0x604   :  { %v2069_v62 = vmax.f32 %v2067_v45, %v2068_v51  ;;  %v2125_v55 = vmul.f32 %v3612_v52, %v3612_v52  ;;  %v2019_v20 = vadd.f32 %v2017_v37, %v2008_v53 }
 0x605   :  { %v1981_v23 = vmax.f32 %v1979_v50, %v1980_v59 }
 0x606   :  { %v2070_v61 = vrot.slane %v2069_v62, 1  ;;  %v2126_v58 = vsel %vm2098_vm1, %v2125_v55, 0.0  ;;  %v2030_v63 = vadd.f32 %v2028_v60, %v2019_v20 }
 0x607   :  { %v1982_v1 = vsub.f32 %v1973_v17, %v1981_v23  ;;  %2127 = vadd.xlane.f32.xlu0 %v2126_v58 }
 0x608   :  { %v2071_v49 = vmax.f32 %v2069_v62, %v2070_v61  ;;  %v3618_v19 = vmul.f32 0.33333334, %v2030_v63 }
 0x609   :  { %v1983_v3 = vmul.f32 1.442695, %v1982_v1 }
 0x60a   :  { %v2072_v4 = vsub.f32 %v2063_v28, %v2071_v49  ;;  %v2032_v22 = vmul.f32 %v3618_v19, %v3618_v19 }
 0x60b   :  { %3092 = vpow2.f32 %v1983_v3 }
 0x60c   :  { %v2073_v7 = vmul.f32 1.442695, %v2072_v4  ;;  %v2033_v8 = vsel %vm2003_vm6, %v2032_v22, 0.0 }
 0x60d   :  { %2034 = vadd.xlane.f32.xlu1 %v2033_v8 }
 0x60e   :  { %3094 = vpow2.f32 %v2073_v7 }
 0x615   :  { %v3093_v13 = vpop.eup %3092 }
 0x616   :  { %v1985_v14 = vsel %vm1974_vm9, %v3093_v13, 0.0 }
 0x617   :  { %v1986_v15 = vrot.slane %v1985_v14, 4 }
 0x618   :  { %v3095_v17 = vpop.eup %3094 }
 0x619   :  { %v1987_v18 = vadd.f32 %v1986_v15, %v1985_v14  ;;  %v2076_v24 = vrot.slane %v3095_v17, 3 }
 0x61b   :  { %v1988_v25 = vrot.slane %v1987_v18, 2  ;;  %v2078_v27 = vsel %vm1974_vm9, %v2076_v24, 0.0 }
 0x61c   :  { %v2079_v28 = vrot.slane %v2078_v27, 4 }
 0x61d   :  { %v1989_v31 = vadd.f32 %v1988_v25, %v1987_v18  ;;  %2143 = vrot.lane.b32.xlu0 %v2141_v29, %s3357_s0 }
 0x61e   :  { %v2080_v32 = vadd.f32 %v2079_v28, %v2078_v27  ;;  %2049 = vrot.lane.b32.xlu1 %v2047_v30, %s3357_s0 }
 0x61f   :  { %v1990_v33 = vrot.slane %v1989_v31, 1 }
 0x620   :  { %v2081_v34 = vrot.slane %v2080_v32, 2 }
 0x621   :  { %v1991_v35 = vadd.f32 %v1990_v33, %v1989_v31 }
 0x622   :  { %v2082_v36 = vadd.f32 %v2081_v34, %v2080_v32 }
 0x623   :  { %3096 = vrcp.f32 %v1991_v35 }
 0x624   :  { %v2083_v38 = vrot.slane %v2082_v36, 1 }
 0x626   :  { %v2084_v26 = vadd.f32 %v2083_v38, %v2082_v36 }
 0x628   :  { %3098 = vrcp.f32 %v2084_v26 }
 0x62d   :  { %v3097_v39 = vpop.eup %3096 }
 0x62e   :  { %v1993_v40 = vmul.f32 %v3097_v39, %v3093_v13 }
 0x630   :  { %v1994_v41 = vmul.f32 %v1993_v40, %v3590_v57 }
 0x632   :  { %v3099_v42 = vpop.eup %3098  ;;  %v1995_v43 = vsel %vm1969_vm7, %v1994_v41, 0.0 }
 0x633   :  { %v2086_v44 = vmul.f32 %v3099_v42, %v3095_v17  ;;  %v1996_v45 = vrot.slane %v1995_v43, 4 }
 0x635   :  { %v1997_v46 = vadd.f32 %v1996_v45, %v1995_v43  ;;  %v2087_v47 = vmul.f32 %v2086_v44, %v3590_v57 }
 0x637   :  { %v2089_v48 = vrot.slane %v2087_v47, 3  ;;  %v1998_v50 = vrot.slane %v1997_v46, 2 }
 0x639   :  { %v2091_v51 = vsel %vm1969_vm7, %v2089_v48, 0.0  ;;  %v1999_v37 = vadd.f32 %v1998_v50, %v1997_v46 }
 0x63a   :  { %v2092_v53 = vrot.slane %v2091_v51, 4 }
 0x63b   :  { %v2000_v59 = vrot.slane %v1999_v37, 1 }
 0x63c   :  { %v2093_v54 = vadd.f32 %v2092_v53, %v2091_v51 }
 0x63d   :  { %v2001_v20 = vadd.f32 %v2000_v59, %v1999_v37 }
 0x63e   :  { %v2094_v56 = vrot.slane %v2093_v54, 2 }
 0x640   :  { %v2095_v62 = vadd.f32 %v2094_v56, %v2093_v54 }
 0x642   :  { %v2096_v55 = vrot.slane %v2095_v62, 1 }
 0x644   :  { %v2097_v60 = vadd.f32 %v2096_v55, %v2095_v62 }
 0x646   :  { %v2148_v57 = vsel %vm2147_vm12, %v2001_v20, %v2097_v60 }
 0x647   :  { %2150 = vst.msk [vmem:[#allocation16] sm:$0x3] %vm2149_vm13, %v2148_v57 }
 0x648   :  { %3291 = shalt.err (!%p3288_p12)
}
 0x649   :  { %s3292_s19 = scalar_lea.hbm %s3666_s9, 32 }
 0x64a   :  { %p3293_p13 = scmp.ne.s32.totalorder %s3666_s9, %s3292_s19  ;;  %p3296_p0 = scmp.lt.u32.totalorder %s3292_s19, %s3666_s9 }
 0x64c   :  { %p3298_p1 = pnand %p3296_p0, %p3293_p13 }
 0x64e   :  { %3301 = shalt.err (!%p3298_p1)
}
 0x64f   :  { %2166 = dma.vmem_to_hbm [thread:$0]  %s2164_s14, 32, %s3666_s9, [#allocation4]   ;;  %vm2052_vm14 = vcmask 23552   ;;  %vm2155_vm15 = vcmask 41984  }
 0x650   :  { %s3359_s8 = smov [#allocation17]  }
 0x651   :  { %s2173_s25 = sshll.u32 %s3359_s8, 4  ;;  %s2174_s25 = int_to_ptr.vmem [resolvable:$true] %s2173_s25 }
 0x652   :  { %s3302_s9 = scalar_lea.vmem %s2174_s25, 32  ;;  %p3307_p3 = scmp.lt.s32.totalorder %s2174_s25, %s2174_s25 }
 0x653   :  { %p3303_p2 = scmp.ne.s32.totalorder %s2174_s25, %s3302_s9  ;;  %p3308_p4 = scmp.lt.s32.totalorder %s3302_s9, %s3302_s9 }
 0x655   :  { %p3309_p5 = por %p3308_p4, %p3307_p3 }
 0x657   :  { %p3310_p6 = pnand %p3309_p5, %p3303_p2 }
 0x694   :  { %v2128_v23 = vpop.xlane.xlu0 %2127 }
 0x695   :  { %3100 = vrsqrt.f32 %v2128_v23 }
 0x698   :  { %v2144_v0 = vpop.permute.xlu0 %2143 }
 0x69a   :  { %v2035_v61 = vpop.xlane.xlu1 %2034 }
 0x69b   :  { %3102 = vrsqrt.f32 %v2035_v61 }
 0x69e   :  { %v2050_v4 = vpop.permute.xlu1 %2049 }
 0x69f   :  { %v3101_v58 = vpop.eup %3100 }
 0x6a0   :  { %v2130_v63 = vmul.f32 %v3101_v58, %v3612_v52 }
 0x6a2   :  { %v2146_v1 = vsel %vm2052_vm14, %v2130_v63, %v2144_v0 }
 0x6a3   :  { %v2152_v3 = vrot.slane %v2146_v1, 2 }
 0x6a5   :  { %v3103_v2 = vpop.eup %3102 }
 0x6a6   :  { %v2037_v49 = vmul.f32 %v3103_v2, %v3618_v19 }
 0x6a8   :  { %v2053_v22 = vsel %vm2052_vm14, %v2037_v49, %v2050_v4 }
 0x6a9   :  { %v2154_v5 = vsel %vm2147_vm12, %v2053_v22, %v2152_v3 }
 0x6aa   :  { %2156 = vst.msk [vmem:[#allocation17] sm:$0x3] %vm2155_vm15, %v2154_v5 }
 0x6ab   :  { %3313 = shalt.err (!%p3310_p6)
}
 0x6ac   :  { %s3314_s4 = scalar_lea.hbm %s3667_s10, 32 }
 0x6ad   :  { %p3315_p7 = scmp.ne.s32.totalorder %s3667_s10, %s3314_s4  ;;  %p3318_p8 = scmp.lt.u32.totalorder %s3314_s4, %s3667_s10 }
 0x6af   :  { %p3320_p9 = pnand %p3318_p8, %p3315_p7 }
 0x6b1   :  { %3323 = shalt.err (!%p3320_p9)
}
 0x6b2   :  { %2176 = dma.vmem_to_hbm [thread:$0]  %s2174_s25, 32, %s3667_s10, [#allocation18]  }
 0x6b3   :  { %3334 = dma.done.wait [#allocation4], 32  }
 0x6b4   :  { %3335 = vsyncadd [#allocation4], 4294967264 }
 0x6b5   :  { %3336 = dma.done.wait [#allocation18], 32  }
 0x6b6   :  { %3337 = vsyncadd [#allocation18], 4294967264 }
 0x6b7   :  { %2183 = vsyncpa [#allocation3], 1 }
 0x6b8   :  { %2184 = vsyncpa [#allocation6], 1 }
 0x6b9   :  { %2185 = vsyncpa [#allocation9], 1 }
 0x6ba   :  { %2186 = vsyncpa [#allocation12], 1 }
 0x6bb   :  { %2187 = vsyncpa [#allocation15], 1 }
 0x6bc   :  { %2188 = vsyncpa [#allocation4], 1 }
 0x6bd   :  { %2189 = vsyncpa [#allocation18], 1 }

</bundles_post_ra>
